<compile_context>
chip_gen: v7x
topology: tpu7x:2x2x1
jax: 0.10.0
libtpu: 0.0.40
codegen_flags: <defaults>
</compile_context>

<pallas_src>
import jax
import jax.numpy as jnp
import numpy as np
from jax.experimental import pallas as pl
from jax.experimental.pallas import tpu as pltpu

EPS = 1e-5  # nn.BatchNorm2d default eps


# ----------------------------- Pallas kernels -----------------------------

def make_conv_stats_kernel(N, H, W, Cin, Cout, TH, bn_input):
    """3x3 'same' conv as a single im2col matmul (bf16 operands, f32 accumulation),
    plus grid-accumulated per-channel sum / sum-of-squares for train-mode BatchNorm.

    If bn_input=True, the input is first normalized with the *previous* layer's batch
    statistics (sum, sumsq, gamma, beta) and ReLU'd inside the kernel, i.e. BN+ReLU of
    the previous layer is fused into this conv's padding stage (no extra HBM pass).
    """
    G = H // TH
    NTW = N * TH * W
    inv_cnt = 1.0 / float(N * H * W)   # full (N, H, W) extent -> correct batch stats

    def kernel(*refs):
        if bn_input:
            (x_ref, s_ref, ss_ref, g_ref, b_ref, w_ref,
             y_ref, sum_ref, ssq_ref, xpad_ref, col_ref) = refs
        else:
            (x_ref, w_ref, y_ref, sum_ref, ssq_ref, xpad_ref, col_ref) = refs

        i = pl.program_id(0)

        @pl.when(i == 0)
        def _init():
            # Build the zero-padded (and, if fused, BN+ReLU-normalized, bf16) input
            # once; the VMEM scratch persists across the sequential grid.
            xpad_ref[...] = jnp.zeros_like(xpad_ref)
            if bn_input:
                mean = s_ref[...] * inv_cnt                      # (1, Cin)
                var = ss_ref[...] * inv_cnt - mean * mean
                sc = g_ref[...] * jax.lax.rsqrt(var + EPS)
                sh = b_ref[...] - mean * sc
                scale = sc.reshape(1, 1, 1, Cin)                 # hoisted: built once
                shift = sh.reshape(1, 1, 1, Cin)
            for j in range(G):                                   # band-by-band keeps vreg pressure low
                xs = x_ref[:, j * TH:(j + 1) * TH, :, :]         # (N, TH, W, Cin) f32
                if bn_input:
                    xs = jnp.maximum(xs * scale + shift, 0.0)
                xpad_ref[:, 1 + j * TH:1 + (j + 1) * TH, 1:W + 1, :] = xs.astype(jnp.bfloat16)
            sum_ref[...] = jnp.zeros_like(sum_ref)
            ssq_ref[...] = jnp.zeros_like(ssq_ref)

        # im2col of this row band into a (N*TH*W, 9*Cin) bf16 scratch, then ONE matmul.
        r0 = pl.multiple_of(i * TH, TH)
        for dy in range(3):
            for dx in range(3):
                patch = xpad_ref[:, pl.ds(r0 + dy, TH), dx:dx + W, :]   # (N, TH, W, Cin) bf16
                tap = 3 * dy + dx
                col_ref[:, tap * Cin:(tap + 1) * Cin] = patch.reshape(NTW, Cin)

        acc = jnp.dot(col_ref[...], w_ref[...],
                      preferred_element_type=jnp.float32)               # (NTW, Cout) f32

        # Grid-accumulated full-batch statistics; normalization happens in the consumer.
        sum_ref[...] += jnp.sum(acc, axis=0, keepdims=True)
        ssq_ref[...] += jnp.sum(acc * acc, axis=0, keepdims=True)

        y_ref[...] = acc.reshape(N, TH, W, Cout)    # lane-dense store (Cout % 128 == 0)

    return kernel


def make_bn_relu_kernel(N, H, W, C, TH):
    """Train-mode BatchNorm (from grid-accumulated sum/sumsq) + ReLU, tiled over H bands."""
    inv_cnt = 1.0 / float(N * H * W)

    def kernel(y_ref, s_ref, ss_ref, g_ref, b_ref, o_ref):
        mean = s_ref[...] * inv_cnt                              # (1, C)
        var = ss_ref[...] * inv_cnt - mean * mean
        sc = g_ref[...] * jax.lax.rsqrt(var + EPS)
        sh = b_ref[...] - mean * sc
        y = y_ref[...]                                           # (N, TH, W, C) f32
        o_ref[...] = jnp.maximum(y * sc.reshape(1, 1, 1, C) + sh.reshape(1, 1, 1, C), 0.0)

    return kernel


# ----------------------------- pallas_call wrappers -----------------------------

def conv_bn_stats(x_nhwc, w_mat, prev=None, *, tile_h=8):
    """Returns (raw conv output (N,H,W,Cout) f32, channel sum (1,Cout), channel sumsq (1,Cout)).
    `prev=(sum, sumsq, gamma, beta)` fuses the previous layer's BN+ReLU into this conv."""
    N, H, W, Cin = x_nhwc.shape
    Cout = w_mat.shape[1]
    TH = min(tile_h, H)
    assert H % TH == 0, "H must be divisible by the row-band tile"
    G = H // TH
    bn_input = prev is not None

    def full_spec(shape):
        return pl.BlockSpec(shape, lambda *_: (0,) * len(shape))

    in_specs = [full_spec((N, H, W, Cin))]
    args = [x_nhwc]
    if bn_input:
        s, ss, g, b = prev
        in_specs += [full_spec((1, Cin))] * 4
        args += [s, ss, g.reshape(1, Cin), b.reshape(1, Cin)]
    in_specs.append(full_spec(w_mat.shape))
    args.append(w_mat)

    out_shape = (jax.ShapeDtypeStruct((N, H, W, Cout), jnp.float32),
                 jax.ShapeDtypeStruct((1, Cout), jnp.float32),
                 jax.ShapeDtypeStruct((1, Cout), jnp.float32))
    out_specs = (pl.BlockSpec((N, TH, W, Cout), lambda i: (0, i, 0, 0)),
                 pl.BlockSpec((1, Cout), lambda i: (0, 0)),
                 pl.BlockSpec((1, Cout), lambda i: (0, 0)))

    flops = 2 * N * H * W * 9 * Cin * Cout
    bytes_accessed = x_nhwc.size * 4 + w_mat.size * 2 + N * H * W * Cout * 4

    return pl.pallas_call(
        make_conv_stats_kernel(N, H, W, Cin, Cout, TH, bn_input),
        grid=(G,),
        in_specs=in_specs,
        out_specs=out_specs,
        out_shape=out_shape,
        scratch_shapes=[
            pltpu.VMEM((N, H + 2, W + 2, Cin), jnp.bfloat16),   # padded (+ normalized) input
            pltpu.VMEM((N * TH * W, 9 * Cin), jnp.bfloat16),    # im2col tile
        ],
        compiler_params=pltpu.CompilerParams(
            # stats are grid-accumulated and the padded scratch is built at step 0,
            # so this grid axis must run sequentially.
            dimension_semantics=("arbitrary",)),
        cost_estimate=pl.CostEstimate(flops=int(flops), transcendentals=0,
                                      bytes_accessed=int(bytes_accessed)),
    )(*args)


def bn_relu(y, s, ss, g, b, *, tile_h=8):
    N, H, W, C = y.shape
    TH = min(tile_h, H)
    assert H % TH == 0
    G = H // TH
    blk = pl.BlockSpec((N, TH, W, C), lambda i: (0, i, 0, 0))
    vec = pl.BlockSpec((1, C), lambda i: (0, 0))
    return pl.pallas_call(
        make_bn_relu_kernel(N, H, W, C, TH),
        grid=(G,),
        in_specs=[blk, vec, vec, vec, vec],
        out_specs=blk,
        out_shape=jax.ShapeDtypeStruct((N, H, W, C), jnp.float32),
        compiler_params=pltpu.CompilerParams(dimension_semantics=("parallel",)),
        cost_estimate=pl.CostEstimate(flops=int(3 * N * H * W * C),
                                      transcendentals=int(C),
                                      bytes_accessed=int(2 * N * H * W * C * 4)),
    )(y, s, ss, g.reshape(1, C), b.reshape(1, C))


# ----------------------------- DoubleConv forward -----------------------------

def double_conv(params, x_nchw, *, tile_h=8):
    """Forward of DoubleConv (training-mode BatchNorm batch statistics). NCHW in/out."""
    x = jnp.transpose(x_nchw, (0, 2, 3, 1))                       # NCHW -> NHWC (glue)
    # Layer 1: conv (raw, pre-BN) + batch sum/sumsq.  Conv bias is omitted in the
    # kernel path: it is exactly cancelled by the BN mean subtraction.
    y1, s1, ss1 = conv_bn_stats(x, params['w1m'], tile_h=tile_h)
    # Layer 2: BN1 + ReLU1 are fused into conv2's in-kernel padding stage.
    y2, s2, ss2 = conv_bn_stats(y1, params['w2m'],
                                prev=(s1, ss1, params['g1'], params['be1']),
                                tile_h=tile_h)
    out = bn_relu(y2, s2, ss2, params['g2'], params['be2'], tile_h=tile_h)
    return jnp.transpose(out, (0, 3, 1, 2))                       # NHWC -> NCHW


# ----------------------------- params -----------------------------

def _oihw_to_mat(w):
    # OIHW -> (9*Cin, Cout) bf16; row index = (3*dy + dx)*Cin + cin (im2col tap order).
    co, ci, kh, kw = w.shape
    return jnp.transpose(w, (2, 3, 1, 0)).reshape(kh * kw * ci, co).astype(jnp.bfloat16)


def init_params(key, in_channels, out_channels):
    ks = jax.random.split(key, 8)

    def conv_w(k, co, ci):
        bound = 1.0 / np.sqrt(ci * 9)
        return jax.random.uniform(k, (co, ci, 3, 3), jnp.float32, -bound, bound)

    def conv_b(k, co, ci):
        bound = 1.0 / np.sqrt(ci * 9)
        return jax.random.uniform(k, (co,), jnp.float32, -bound, bound)

    w1 = conv_w(ks[0], out_channels, in_channels)
    b1 = conv_b(ks[1], out_channels, in_channels)
    w2 = conv_w(ks[2], out_channels, out_channels)
    b2 = conv_b(ks[3], out_channels, out_channels)
    # PyTorch default BN init is gamma=1, beta=0; perturb so the affine path is exercised.
    g1 = 1.0 + 0.1 * jax.random.normal(ks[4], (out_channels,), jnp.float32)
    be1 = 0.1 * jax.random.normal(ks[5], (out_channels,), jnp.float32)
    g2 = 1.0 + 0.1 * jax.random.normal(ks[6], (out_channels,), jnp.float32)
    be2 = 0.1 * jax.random.normal(ks[7], (out_channels,), jnp.float32)
    return dict(w1=w1, b1=b1, g1=g1, be1=be1, w2=w2, b2=b2, g2=g2, be2=be2,
                w1m=_oihw_to_mat(w1), w2m=_oihw_to_mat(w2))


# ----------------------------- pure-JAX references -----------------------------

def ref_conv_bn_relu(x, w, b, g, beta, *, quantize):
    """Conv2d(3x3, pad=1, bias) -> BatchNorm2d(train mode) -> ReLU, NCHW/OIHW.
    quantize=True rounds the matmul operands to bf16 exactly like the kernel's MXU
    path (accumulation stays f32 in both cases)."""
    if quantize:
        x = x.astype(jnp.bfloat16).astype(jnp.float32)
        w = w.astype(jnp.bfloat16).astype(jnp.float32)
    y = jax.lax.conv_general_dilated(
        x, w, (1, 1), ((1, 1), (1, 1)),
        dimension_numbers=('NCHW', 'OIHW', 'NCHW'),
        precision=jax.lax.Precision.HIGHEST)
    y = y + b[None, :, None, None]          # exactly cancelled by the mean subtraction below
    mean = jnp.mean(y, axis=(0, 2, 3), keepdims=True)
    var = jnp.mean((y - mean) ** 2, axis=(0, 2, 3), keepdims=True)
    y = (y - mean) * jax.lax.rsqrt(var + EPS)
    y = y * g[None, :, None, None] + beta[None, :, None, None]
    return jnp.maximum(y, 0.0)


def ref_double_conv(params, x, *, quantize=False):
    y = ref_conv_bn_relu(x, params['w1'], params['b1'], params['g1'], params['be1'],
                         quantize=quantize)
    return ref_conv_bn_relu(y, params['w2'], params['b2'], params['g2'], params['be2'],
                            quantize=quantize)


# ----------------------------- test -----------------------------

if __name__ == "__main__":
    key = jax.random.PRNGKey(0)
    kx, kp = jax.random.split(key)

    # Small but TPU-friendly shapes: Cout = 128 keeps every NHWC store lane-dense.
    N, H, W = 2, 16, 16
    in_channels, out_channels = 64, 128

    x = jax.random.normal(kx, (N, in_channels, H, W), jnp.float32)
    params = init_params(kp, in_channels, out_channels)

    out = jax.block_until_ready(double_conv(params, x))
    assert out.shape == (N, out_channels, H, W)

    # Tight check vs a reference modeling the same bf16 operand rounding (f32 accumulation).
    ref_q = jax.block_until_ready(ref_double_conv(params, x, quantize=True))
    np.testing.assert_allclose(np.asarray(out), np.asarray(ref_q), rtol=1e-2, atol=1e-2)

    # Sanity check vs the pure-f32 PyTorch-semantics reference (bias included there; it cancels).
    ref_f = jax.block_until_ready(ref_double_conv(params, x, quantize=False))
    np.testing.assert_allclose(np.asarray(out), np.asarray(ref_f), rtol=5e-2, atol=5e-2)

    print("KERNEL_OK")
</pallas_src>

<mosaic_0001>
module attributes {stable_mosaic.version = 11 : i64} {
  func.func @kernel(%arg0: i32, %arg1: memref<2x16x16x64xf32, #tpu.memory_space<vmem>>, %arg2: memref<576x128xbf16, #tpu.memory_space<vmem>>, %arg3: memref<2x8x16x128xf32, #tpu.memory_space<vmem>>, %arg4: memref<1x128xf32, #tpu.memory_space<vmem>>, %arg5: memref<1x128xf32, #tpu.memory_space<vmem>>, %arg6: memref<2x18x18x64xbf16, #tpu.memory_space<vmem>>, %arg7: memref<256x576xbf16, #tpu.memory_space<vmem>>) attributes {dimension_semantics = [#tpu.dimension_semantics<arbitrary>], iteration_bounds = array<i64: 2>, scalar_prefetch = 0 : i64, scratch_operands = 2 : i64, tpu.core_type = #tpu.core_type<tc>, window_params = [{pipeline_mode = #tpu.pipeline_mode<synchronous>, transform_indices = @transform_0, window_bounds = array<i64: 2, 16, 16, 64>}, {pipeline_mode = #tpu.pipeline_mode<synchronous>, transform_indices = @transform_1, window_bounds = array<i64: 576, 128>}, {transform_indices = @transform_2, window_bounds = array<i64: 2, 8, 16, 128>}, {pipeline_mode = #tpu.pipeline_mode<synchronous>, transform_indices = @transform_3, window_bounds = array<i64: 1, 128>}, {pipeline_mode = #tpu.pipeline_mode<synchronous>, transform_indices = @transform_4, window_bounds = array<i64: 1, 128>}]} {
    %c0_i32 = arith.constant 0 : i32
    %0 = arith.cmpi eq, %arg0, %c0_i32 : i32
    %1 = arith.extui %0 : i1 to i32
    %c0_i32_0 = arith.constant 0 : i32
    %2 = arith.cmpi ne, %1, %c0_i32_0 : i32
    scf.if %2 {
      %cst_60 = arith.constant 0.000000e+00 : bf16
      %66 = vector.broadcast %cst_60 : bf16 to vector<2x18x18x64xbf16>
      %c0_61 = arith.constant 0 : index
      %c0_62 = arith.constant 0 : index
      %c0_63 = arith.constant 0 : index
      %c0_64 = arith.constant 0 : index
      %67 = vector.load %arg6[%c0_61, %c0_62, %c0_63, %c0_64] : memref<2x18x18x64xbf16, #tpu.memory_space<vmem>>, vector<2x18x18x64xbf16>
      tpu.vector_store %arg6[%c0_61, %c0_62, %c0_63, %c0_64], %66 {strides = array<i32>} : memref<2x18x18x64xbf16, #tpu.memory_space<vmem>>, vector<2x18x18x64xbf16>,
      %c0_65 = arith.constant 0 : index
      %c0_66 = arith.constant 0 : index
      %c0_67 = arith.constant 0 : index
      %c0_68 = arith.constant 0 : index
      %68 = vector.load %arg1[%c0_65, %c0_66, %c0_67, %c0_68] : memref<2x16x16x64xf32, #tpu.memory_space<vmem>>, vector<2x8x16x64xf32>
      %69 = arith.truncf %68 : vector<2x8x16x64xf32> to vector<2x8x16x64xbf16>
      %c0_69 = arith.constant 0 : index
      %c1_70 = arith.constant 1 : index
      %c1_71 = arith.constant 1 : index
      %c0_72 = arith.constant 0 : index
      %70 = vector.load %arg6[%c0_69, %c1_70, %c1_71, %c0_72] : memref<2x18x18x64xbf16, #tpu.memory_space<vmem>>, vector<2x8x16x64xbf16>
      tpu.vector_store %arg6[%c0_69, %c1_70, %c1_71, %c0_72], %69 {strides = array<i32>} : memref<2x18x18x64xbf16, #tpu.memory_space<vmem>>, vector<2x8x16x64xbf16>,
      %c0_73 = arith.constant 0 : index
      %c8 = arith.constant 8 : index
      %c0_74 = arith.constant 0 : index
      %c0_75 = arith.constant 0 : index
      %71 = vector.load %arg1[%c0_73, %c8, %c0_74, %c0_75] : memref<2x16x16x64xf32, #tpu.memory_space<vmem>>, vector<2x8x16x64xf32>
      %72 = arith.truncf %71 : vector<2x8x16x64xf32> to vector<2x8x16x64xbf16>
      %c0_76 = arith.constant 0 : index
      %c9 = arith.constant 9 : index
      %c1_77 = arith.constant 1 : index
      %c0_78 = arith.constant 0 : index
      %73 = vector.load %arg6[%c0_76, %c9, %c1_77, %c0_78] : memref<2x18x18x64xbf16, #tpu.memory_space<vmem>>, vector<2x8x16x64xbf16>
      tpu.vector_store %arg6[%c0_76, %c9, %c1_77, %c0_78], %72 {strides = array<i32>} : memref<2x18x18x64xbf16, #tpu.memory_space<vmem>>, vector<2x8x16x64xbf16>,
      %cst_79 = arith.constant 0.000000e+00 : f32
      %74 = vector.broadcast %cst_79 : f32 to vector<1x128xf32>
      %c0_80 = arith.constant 0 : index
      %c0_81 = arith.constant 0 : index
      %75 = vector.load %arg4[%c0_80, %c0_81] : memref<1x128xf32, #tpu.memory_space<vmem>>, vector<1x128xf32>
      tpu.vector_store %arg4[%c0_80, %c0_81], %74 {strides = array<i32>} : memref<1x128xf32, #tpu.memory_space<vmem>>, vector<1x128xf32>,
      %cst_82 = arith.constant 0.000000e+00 : f32
      %76 = vector.broadcast %cst_82 : f32 to vector<1x128xf32>
      %c0_83 = arith.constant 0 : index
      %c0_84 = arith.constant 0 : index
      %77 = vector.load %arg5[%c0_83, %c0_84] : memref<1x128xf32, #tpu.memory_space<vmem>>, vector<1x128xf32>
      tpu.vector_store %arg5[%c0_83, %c0_84], %76 {strides = array<i32>} : memref<1x128xf32, #tpu.memory_space<vmem>>, vector<1x128xf32>,
    } else {
    }
    %c8_i32 = arith.constant 8 : i32
    %3 = arith.muli %arg0, %c8_i32 : i32
    %4 = tpu.assume_multiple %3, 8 : i32
    %c0_i32_1 = arith.constant 0 : i32
    %5 = arith.addi %4, %c0_i32_1 : i32
    %c0 = arith.constant 0 : index
    %6 = arith.index_cast %5 : i32 to index
    %c0_2 = arith.constant 0 : index
    %c0_3 = arith.constant 0 : index
    %7 = vector.load %arg6[%c0, %6, %c0_2, %c0_3] : memref<2x18x18x64xbf16, #tpu.memory_space<vmem>>, vector<2x8x16x64xbf16>
    %8 = vector.shape_cast %7 : vector<2x8x16x64xbf16> to vector<256x64xbf16>
    %c0_4 = arith.constant 0 : index
    %c0_5 = arith.constant 0 : index
    %9 = vector.load %arg7[%c0_4, %c0_5] : memref<256x576xbf16, #tpu.memory_space<vmem>>, vector<256x64xbf16>
    tpu.vector_store %arg7[%c0_4, %c0_5], %8 {strides = array<i32>} : memref<256x576xbf16, #tpu.memory_space<vmem>>, vector<256x64xbf16>,
    %c0_i32_6 = arith.constant 0 : i32
    %10 = arith.addi %4, %c0_i32_6 : i32
    %c0_7 = arith.constant 0 : index
    %11 = arith.index_cast %10 : i32 to index
    %c1 = arith.constant 1 : index
    %c0_8 = arith.constant 0 : index
    %12 = vector.load %arg6[%c0_7, %11, %c1, %c0_8] : memref<2x18x18x64xbf16, #tpu.memory_space<vmem>>, vector<2x8x16x64xbf16>
    %13 = vector.shape_cast %12 : vector<2x8x16x64xbf16> to vector<256x64xbf16>
    %c0_9 = arith.constant 0 : index
    %c64 = arith.constant 64 : index
    %14 = vector.load %arg7[%c0_9, %c64] : memref<256x576xbf16, #tpu.memory_space<vmem>>, vector<256x64xbf16>
    tpu.vector_store %arg7[%c0_9, %c64], %13 {strides = array<i32>} : memref<256x576xbf16, #tpu.memory_space<vmem>>, vector<256x64xbf16>,
    %c0_i32_10 = arith.constant 0 : i32
    %15 = arith.addi %4, %c0_i32_10 : i32
    %c0_11 = arith.constant 0 : index
    %16 = arith.index_cast %15 : i32 to index
    %c2 = arith.constant 2 : index
    %c0_12 = arith.constant 0 : index
    %17 = vector.load %arg6[%c0_11, %16, %c2, %c0_12] : memref<2x18x18x64xbf16, #tpu.memory_space<vmem>>, vector<2x8x16x64xbf16>
    %18 = vector.shape_cast %17 : vector<2x8x16x64xbf16> to vector<256x64xbf16>
    %c0_13 = arith.constant 0 : index
    %c128 = arith.constant 128 : index
    %19 = vector.load %arg7[%c0_13, %c128] : memref<256x576xbf16, #tpu.memory_space<vmem>>, vector<256x64xbf16>
    tpu.vector_store %arg7[%c0_13, %c128], %18 {strides = array<i32>} : memref<256x576xbf16, #tpu.memory_space<vmem>>, vector<256x64xbf16>,
    %c1_i32 = arith.constant 1 : i32
    %20 = arith.addi %4, %c1_i32 : i32
    %c0_14 = arith.constant 0 : index
    %21 = arith.index_cast %20 : i32 to index
    %c0_15 = arith.constant 0 : index
    %c0_16 = arith.constant 0 : index
    %22 = vector.load %arg6[%c0_14, %21, %c0_15, %c0_16] : memref<2x18x18x64xbf16, #tpu.memory_space<vmem>>, vector<2x8x16x64xbf16>
    %23 = vector.shape_cast %22 : vector<2x8x16x64xbf16> to vector<256x64xbf16>
    %c0_17 = arith.constant 0 : index
    %c192 = arith.constant 192 : index
    %24 = vector.load %arg7[%c0_17, %c192] : memref<256x576xbf16, #tpu.memory_space<vmem>>, vector<256x64xbf16>
    tpu.vector_store %arg7[%c0_17, %c192], %23 {strides = array<i32>} : memref<256x576xbf16, #tpu.memory_space<vmem>>, vector<256x64xbf16>,
    %c1_i32_18 = arith.constant 1 : i32
    %25 = arith.addi %4, %c1_i32_18 : i32
    %c0_19 = arith.constant 0 : index
    %26 = arith.index_cast %25 : i32 to index
    %c1_20 = arith.constant 1 : index
    %c0_21 = arith.constant 0 : index
    %27 = vector.load %arg6[%c0_19, %26, %c1_20, %c0_21] : memref<2x18x18x64xbf16, #tpu.memory_space<vmem>>, vector<2x8x16x64xbf16>
    %28 = vector.shape_cast %27 : vector<2x8x16x64xbf16> to vector<256x64xbf16>
    %c0_22 = arith.constant 0 : index
    %c256 = arith.constant 256 : index
    %29 = vector.load %arg7[%c0_22, %c256] : memref<256x576xbf16, #tpu.memory_space<vmem>>, vector<256x64xbf16>
    tpu.vector_store %arg7[%c0_22, %c256], %28 {strides = array<i32>} : memref<256x576xbf16, #tpu.memory_space<vmem>>, vector<256x64xbf16>,
    %c1_i32_23 = arith.constant 1 : i32
    %30 = arith.addi %4, %c1_i32_23 : i32
    %c0_24 = arith.constant 0 : index
    %31 = arith.index_cast %30 : i32 to index
    %c2_25 = arith.constant 2 : index
    %c0_26 = arith.constant 0 : index
    %32 = vector.load %arg6[%c0_24, %31, %c2_25, %c0_26] : memref<2x18x18x64xbf16, #tpu.memory_space<vmem>>, vector<2x8x16x64xbf16>
    %33 = vector.shape_cast %32 : vector<2x8x16x64xbf16> to vector<256x64xbf16>
    %c0_27 = arith.constant 0 : index
    %c320 = arith.constant 320 : index
    %34 = vector.load %arg7[%c0_27, %c320] : memref<256x576xbf16, #tpu.memory_space<vmem>>, vector<256x64xbf16>
    tpu.vector_store %arg7[%c0_27, %c320], %33 {strides = array<i32>} : memref<256x576xbf16, #tpu.memory_space<vmem>>, vector<256x64xbf16>,
    %c2_i32 = arith.constant 2 : i32
    %35 = arith.addi %4, %c2_i32 : i32
    %c0_28 = arith.constant 0 : index
    %36 = arith.index_cast %35 : i32 to index
    %c0_29 = arith.constant 0 : index
    %c0_30 = arith.constant 0 : index
    %37 = vector.load %arg6[%c0_28, %36, %c0_29, %c0_30] : memref<2x18x18x64xbf16, #tpu.memory_space<vmem>>, vector<2x8x16x64xbf16>
    %38 = vector.shape_cast %37 : vector<2x8x16x64xbf16> to vector<256x64xbf16>
    %c0_31 = arith.constant 0 : index
    %c384 = arith.constant 384 : index
    %39 = vector.load %arg7[%c0_31, %c384] : memref<256x576xbf16, #tpu.memory_space<vmem>>, vector<256x64xbf16>
    tpu.vector_store %arg7[%c0_31, %c384], %38 {strides = array<i32>} : memref<256x576xbf16, #tpu.memory_space<vmem>>, vector<256x64xbf16>,
    %c2_i32_32 = arith.constant 2 : i32
    %40 = arith.addi %4, %c2_i32_32 : i32
    %c0_33 = arith.constant 0 : index
    %41 = arith.index_cast %40 : i32 to index
    %c1_34 = arith.constant 1 : index
    %c0_35 = arith.constant 0 : index
    %42 = vector.load %arg6[%c0_33, %41, %c1_34, %c0_35] : memref<2x18x18x64xbf16, #tpu.memory_space<vmem>>, vector<2x8x16x64xbf16>
    %43 = vector.shape_cast %42 : vector<2x8x16x64xbf16> to vector<256x64xbf16>
    %c0_36 = arith.constant 0 : index
    %c448 = arith.constant 448 : index
    %44 = vector.load %arg7[%c0_36, %c448] : memref<256x576xbf16, #tpu.memory_space<vmem>>, vector<256x64xbf16>
    tpu.vector_store %arg7[%c0_36, %c448], %43 {strides = array<i32>} : memref<256x576xbf16, #tpu.memory_space<vmem>>, vector<256x64xbf16>,
    %c2_i32_37 = arith.constant 2 : i32
    %45 = arith.addi %4, %c2_i32_37 : i32
    %c0_38 = arith.constant 0 : index
    %46 = arith.index_cast %45 : i32 to index
    %c2_39 = arith.constant 2 : index
    %c0_40 = arith.constant 0 : index
    %47 = vector.load %arg6[%c0_38, %46, %c2_39, %c0_40] : memref<2x18x18x64xbf16, #tpu.memory_space<vmem>>, vector<2x8x16x64xbf16>
    %48 = vector.shape_cast %47 : vector<2x8x16x64xbf16> to vector<256x64xbf16>
    %c0_41 = arith.constant 0 : index
    %c512 = arith.constant 512 : index
    %49 = vector.load %arg7[%c0_41, %c512] : memref<256x576xbf16, #tpu.memory_space<vmem>>, vector<256x64xbf16>
    tpu.vector_store %arg7[%c0_41, %c512], %48 {strides = array<i32>} : memref<256x576xbf16, #tpu.memory_space<vmem>>, vector<256x64xbf16>,
    %c0_42 = arith.constant 0 : index
    %c0_43 = arith.constant 0 : index
    %50 = vector.load %arg7[%c0_42, %c0_43] : memref<256x576xbf16, #tpu.memory_space<vmem>>, vector<256x576xbf16>
    %c0_44 = arith.constant 0 : index
    %c0_45 = arith.constant 0 : index
    %51 = vector.load %arg2[%c0_44, %c0_45] : memref<576x128xbf16, #tpu.memory_space<vmem>>, vector<576x128xbf16>
    %cst = arith.constant dense<0.000000e+00> : vector<256x128xf32>
    %52 = tpu.matmul %50, %51, %cst {dimension_numbers = #tpu.dot_dimension_numbers<[1], [0], [0], [1], [0, 0, 1, 1], [], []>} : vector<256x576xbf16>, vector<576x128xbf16>, vector<256x128xf32> -> vector<256x128xf32>
    %c0_46 = arith.constant 0 : index
    %c0_47 = arith.constant 0 : index
    %53 = vector.load %arg4[%c0_46, %c0_47] : memref<1x128xf32, #tpu.memory_space<vmem>>, vector<1x128xf32>
    %cst_48 = arith.constant dense<0.000000e+00> : vector<128xf32>
    %54 = vector.multi_reduction <add>, %52, %cst_48 [0] : vector<256x128xf32> to vector<128xf32>
    %55 = vector.shape_cast %54 : vector<128xf32> to vector<1x128xf32>
    %56 = arith.addf %53, %55 : vector<1x128xf32>
    %c0_49 = arith.constant 0 : index
    %c0_50 = arith.constant 0 : index
    %57 = vector.load %arg4[%c0_49, %c0_50] : memref<1x128xf32, #tpu.memory_space<vmem>>, vector<1x128xf32>
    tpu.vector_store %arg4[%c0_49, %c0_50], %56 {strides = array<i32>} : memref<1x128xf32, #tpu.memory_space<vmem>>, vector<1x128xf32>,
    %c0_51 = arith.constant 0 : index
    %c0_52 = arith.constant 0 : index
    %58 = vector.load %arg5[%c0_51, %c0_52] : memref<1x128xf32, #tpu.memory_space<vmem>>, vector<1x128xf32>
    %59 = arith.mulf %52, %52 : vector<256x128xf32>
    %cst_53 = arith.constant dense<0.000000e+00> : vector<128xf32>
    %60 = vector.multi_reduction <add>, %59, %cst_53 [0] : vector<256x128xf32> to vector<128xf32>
    %61 = vector.shape_cast %60 : vector<128xf32> to vector<1x128xf32>
    %62 = arith.addf %58, %61 : vector<1x128xf32>
    %c0_54 = arith.constant 0 : index
    %c0_55 = arith.constant 0 : index
    %63 = vector.load %arg5[%c0_54, %c0_55] : memref<1x128xf32, #tpu.memory_space<vmem>>, vector<1x128xf32>
    tpu.vector_store %arg5[%c0_54, %c0_55], %62 {strides = array<i32>} : memref<1x128xf32, #tpu.memory_space<vmem>>, vector<1x128xf32>,
    %64 = vector.shape_cast %52 : vector<256x128xf32> to vector<2x8x16x128xf32>
    %c0_56 = arith.constant 0 : index
    %c0_57 = arith.constant 0 : index
    %c0_58 = arith.constant 0 : index
    %c0_59 = arith.constant 0 : index
    %65 = vector.load %arg3[%c0_56, %c0_57, %c0_58, %c0_59] : memref<2x8x16x128xf32, #tpu.memory_space<vmem>>, vector<2x8x16x128xf32>
    tpu.vector_store %arg3[%c0_56, %c0_57, %c0_58, %c0_59], %64 {strides = array<i32>} : memref<2x8x16x128xf32, #tpu.memory_space<vmem>>, vector<2x8x16x128xf32>,
    return
  }
  func.func @transform_0(%arg0: i32) -> (i32, i32, i32, i32) {
    %c0_i32 = arith.constant 0 : i32
    %c0_i32_0 = arith.constant 0 : i32
    %c0_i32_1 = arith.constant 0 : i32
    %c0_i32_2 = arith.constant 0 : i32
    %c0_i32_3 = arith.constant 0 : i32
    return %c0_i32, %c0_i32_0, %c0_i32_1, %c0_i32_2 : i32, i32, i32, i32
  }
  func.func @transform_1(%arg0: i32) -> (i32, i32) {
    %c0_i32 = arith.constant 0 : i32
    %c0_i32_0 = arith.constant 0 : i32
    %c0_i32_1 = arith.constant 0 : i32
    return %c0_i32, %c0_i32_0 : i32, i32
  }
  func.func @transform_2(%arg0: i32) -> (i32, i32, i32, i32) {
    %c0_i32 = arith.constant 0 : i32
    %c0_i32_0 = arith.constant 0 : i32
    %c0_i32_1 = arith.constant 0 : i32
    %c0_i32_2 = arith.constant 0 : i32
    return %c0_i32, %arg0, %c0_i32_0, %c0_i32_1 : i32, i32, i32, i32
  }
  func.func @transform_3(%arg0: i32) -> (i32, i32) {
    %c0_i32 = arith.constant 0 : i32
    %c0_i32_0 = arith.constant 0 : i32
    %c0_i32_1 = arith.constant 0 : i32
    return %c0_i32, %c0_i32_0 : i32, i32
  }
  func.func @transform_4(%arg0: i32) -> (i32, i32) {
    %c0_i32 = arith.constant 0 : i32
    %c0_i32_0 = arith.constant 0 : i32
    %c0_i32_1 = arith.constant 0 : i32
    return %c0_i32, %c0_i32_0 : i32, i32
  }
}

</mosaic_0001>

<bundles_post_ra>
// kernel: tpu_custom_call.1
= control target key start
LH: loop header
LB: loop body
LE: loop exit
PB: predicated region body
PF: predicated region fallthrough
CT: control target
= control target key end

     0   :  { %10 = vsyncpa [#allocation5], 0  ;;  %s8905_s0 = inlined_call_operand.hbm [shape: f32[2,16,16,64], index: 0, kind: input, shape index: {}]   ;;  %s8906_s1 = inlined_call_operand.hbm [shape: bf16[576,128], index: 1, kind: input, shape index: {}]   ;;  %s8907_s2 = inlined_call_operand.hbm [shape: f32[2,16,16,128], index: 2, kind: output, shape index: {0}]   ;;  %s8908_s3 = inlined_call_operand.hbm [shape: f32[1,128], index: 3, kind: output, shape index: {1}]   ;;  %s8909_s4 = inlined_call_operand.hbm [shape: f32[1,128], index: 4, kind: output, shape index: {2}]  }
   0x1   :  { %11 = vsyncpa [#allocation8], 0 }
   0x2   :  { %12 = vsyncpa [#allocation6], 0 }
   0x3   :  { %14 = vsyncpa [#allocation6 + $0x1], 0 }
   0x4   :  { %15 = vsyncpa [#allocation11], 0  ;;  %s6977_s15 = smov 0   ;;  %s6979_s16 = smov 0  }
   0x5   :  { %s6981_s17 = smov 0   ;;  %s6983_s18 = smov 0  }
   0x6 LB: > { %s6998_s19 = sadd.s32 4294967295, %s6932_s18   ;;  %s5643_s20 = sadd.s32 4294967294, %s6932_s18   ;;  %s6932_s18 = sphi %s6983_s18, %s8947_s18   ;;  %s6928_s17 = sphi %s6981_s17, %s8946_s17   ;;  %s6924_s16 = sphi %s6979_s16, %s8945_s16   ;;  %s6920_s15 = sphi %s6977_s15, %s8944_s15  }
   0x7   : > { %s7002_s21 = sadd.s32 1, %s6932_s18   ;;  %s70_s22 = sadd.s32 1, %s6928_s17 }
   0x8   : > { %s67_s23 = ssub.s32 %s6932_s18, %s7002_s21  ;;  %p80_p0 = scmp.ne.s32.totalorder %s6928_s17, %s6924_s16 }
   0x9   : > { %p68_p1 = scmp.eq.s32.totalorder %s67_s23, 0  ;;  %p8910_p2 = scmp.eq.s32.totalorder %s6998_s19, 1 }
   0xa   : > { %p86_p3 = scmp.ne.s32.totalorder %s6924_s16, %s6920_s15  ;;  %p87_p4 = scmp.eq.s32.totalorder %s5643_s20, 1 }
   0xb   : > { %s7013_s24 = scalar_select %p68_p1, %s6928_s17, %s70_s22  }
   0xc   : > { %p7017_p5 = por %p8910_p2, %p80_p0  ;;  %p7021_p6 = por %p87_p4, %p86_p3 }
   0xd   : > { %p5644_p7 = scmp.ge.s32.totalorder %s6932_s18, 1  ;;  %p136_p8 = scmp.lt.s32.totalorder %s6932_s18, 3 }
   0xe   : > { %s8914_s25 = scalar_select %p7017_p5, 1, 0 }
   0xf   : > { %s8915_s26 = scalar_select %p7021_p6, 1, 0 }
  0x10   : > { %p8911_p10 = scmp.eq.s32.totalorder %s6998_s19, 0  ;;  %p7029_p11 = pnand %p5644_p7, %p136_p8 }
  0x11   : > { %s6934_s28 = smov [#allocation4]   ;;  %s6935_s5 = smov [#allocation7]  }
  0x12   : > { %s8916_s27 = scalar_select %p7029_p11, 1, 0 }
  0x13   : > { %s148_s29 = sshll.u32 %s6934_s28, 4  ;;  %p6624_p12 = pneg %p7029_p11  ;;  %s149_s29 = int_to_ptr.vmem [resolvable:$true] %s148_s29 }
  0x14   : > { %s161_s6 = sshll.u32 %s6935_s5, 4  ;;  %s6778_s9 = scalar_lea.hbm %s8905_s0, 8192  ;;  %s7041_s6 = int_to_ptr.vmem [resolvable:$true] %s161_s6 }
  0x15   : > { %p7037_p13 = pnand %p8911_p10, %p6624_p12  ;;  %p6779_p0 = scmp.ne.s32.totalorder %s8905_s0, %s6778_s9 }
  0x16   : > { %p6785_p7 = scmp.lt.u32.totalorder %s6778_s9, %s8905_s0 }
  0x17   : > { %p6780_p1 = pneg %p7037_p13 }
  0x19   : > { %p6781_p3 = pnand %p6780_p1, %p6779_p0 }
  0x1b   : > { %p6782_p4 = pneg %p6781_p3 }
  0x1d   : > { %p6787_p8 = pnand %p6785_p7, %p6782_p4 }
  0x1f   : > { %6790 = shalt.err (!%p6787_p8)
}
  0x20   : > { %s6791_s14 = scalar_lea.vmem %s149_s29, 8192  ;;  %p6799_p10 = scmp.lt.s32.totalorder %s149_s29, %s149_s29 }
  0x21   : > { %p6792_p12 = scmp.ne.s32.totalorder %s149_s29, %s6791_s14  ;;  %p6800_p6 = scmp.lt.s32.totalorder %s6791_s14, %s6791_s14 }
  0x23   : > { %p6794_p2 = pnand %p6792_p12, %p6780_p1  ;;  %p6801_p5 = por %p6800_p6, %p6799_p10 }
  0x25   : > { %p6795_p9 = pneg %p6794_p2 }
  0x27   : > { %p6802_p11 = pnand %p6801_p5, %p6795_p9 }
  0x29   : > { %6805 = shalt.err (!%p6802_p11)
}
  0x2a   : > { %s6936_s20 = smov 128   ;;  %s6937_s22 = smov 8  }
  0x2b   : > { %6627 = dma.hbm_to_vmem [thread:$0]  (!%p7037_p13), %s8905_s0, 8192, %s149_s29, [#allocation5], %s6936_s20, %s6936_s20, %s6937_s22  }
  0x2c   : > { %s6806_s8 = scalar_lea.hbm %s8906_s1, 4608 }
  0x2d   : > { %p6807_p2 = scmp.ne.s32.totalorder %s8906_s1, %s6806_s8  ;;  %p6813_p9 = scmp.lt.u32.totalorder %s6806_s8, %s8906_s1 }
  0x2f   : > { %p6809_p5 = pnand %p6807_p2, %p6780_p1 }
  0x31   : > { %p6810_p6 = pneg %p6809_p5 }
  0x33   : > { %p6815_p10 = pnand %p6813_p9, %p6810_p6 }
  0x35   : > { %6818 = shalt.err (!%p6815_p10)
}
  0x36   : > { %s6819_s29 = scalar_lea.vmem %s7041_s6, 4608  ;;  %p6827_p4 = scmp.lt.s32.totalorder %s7041_s6, %s7041_s6 }
  0x37   : > { %p6820_p11 = scmp.ne.s32.totalorder %s7041_s6, %s6819_s29  ;;  %p6828_p7 = scmp.lt.s32.totalorder %s6819_s29, %s6819_s29 }
  0x39   : > { %p6822_p0 = pnand %p6820_p11, %p6780_p1  ;;  %p6829_p8 = por %p6828_p7, %p6827_p4 }
  0x3b   : > { %p6823_p3 = pneg %p6822_p0 }
  0x3d   : > { %p6830_p12 = pnand %p6829_p8, %p6823_p3 }
  0x3f   : > { %6833 = shalt.err (!%p6830_p12)
}
  0x40   : > { %s6938_s13 = smov 64   ;;  %s6939_s14 = smov 4  }
  0x41   : > { %6630 = dma.hbm_to_vmem [thread:$0]  (!%p7037_p13), %s8906_s1, 4608, %s7041_s6, [#allocation8], %s6938_s13, %s6938_s13, %s6939_s14  }
  0x42   : > { %p8918_p2 = scmp.ne.s32.totalorder %s8916_s27, 0 }
  0x43   : > { %p8919_p1 = scmp.eq.s32.totalorder (!%p8918_p2), %s6998_s19, 0 }
  0x44   : > { %177 = sbr.rel (%p8918_p2) target bundleno = 882 (0x372), region = 28 }
  0x4b   : > { %6903 = dma.done.wait (%p8919_p1), [#allocation5], 8192   ;;  %p8920_p5 = pmov %p8919_p1 }
  0x4c   : > { %p8921_p6 = pmov %p8919_p1 }
  0x4d   : > { %6905 = vsyncadd (%p8920_p5), [#allocation5], 4294959104 }
  0x4e   : > { %6907 = dma.done.wait (%p8921_p6), [#allocation8], 4608   ;;  %p8922_p9 = pmov %p8919_p1 }
  0x4f   : > { %s195_s30 = sand.u32 1, %s6924_s16   ;;  %p8923_p13 = scmp.ne.s32.totalorder %s6998_s19, 0 }
  0x50   : > { %6909 = vsyncadd (%p8922_p9), [#allocation8], 4294962688  ;;  %s5650_s6 = sshll.u32 %s195_s30, 8  ;;  %vm208_vm0 = vcmask (!%p8923_p13), 519168   ;;  %vm211_vm1 = vcmask (!%p8923_p13), 516096   ;;  %v7107_v0 = vld [vmem:[#allocation4] sm:$0xff] (!%p8923_p13) }
  0x51   : > { %s7103_s23 = scalar_lea.vmem [#allocation9], %s5650_s6  ;;  %207 = sbr.rel (%p8923_p13) target bundleno = 249 (0xf9), region = 40  ;;  %v6940_v1 = vmov (!%p8923_p13), 0   ;;  %v6233_v2 = vpack.c.bf16 (!%p8923_p13), %v7107_v0, %v7107_v0  ;;  %vm771_vm2 = vsmask.f32 (!%p8923_p13), 7938  ;;  %v319_v3 = vld [vmem:[#allocation4 + $0x8] sm:$0xff] (!%p8923_p13) }
  0x52   : > { %213 = vst.msk [vmem:[#allocation2 + $0xc] sm:$0xf] (!%p8923_p13), %vm208_vm0, %v6940_v1  ;;  %209 = vst.msk [vmem:[#allocation2] sm:$0xf] (!%p8923_p13), %vm208_vm0, %v6940_v1  ;;  %vm446_vm3 = vsmask.f32 (!%p8923_p13), 256  ;;  %v6234_v5 = vpack.c.bf16 (!%p8923_p13), %v319_v3, %v319_v3 }
  0x53   : > { %210 = vst.msk [vmem:[#allocation2 + $0x4] sm:$0xf] (!%p8923_p13), %vm208_vm0, %v6940_v1  ;;  %214 = vst.msk [vmem:[#allocation2 + $0x10] sm:$0xf] (!%p8923_p13), %vm208_vm0, %v6940_v1  ;;  %v320_v4 = vld [vmem:[#allocation4 + $0x10] sm:$0xff] (!%p8923_p13)  ;;  %v321_v7 = vld [vmem:[#allocation4 + $0x18] sm:$0xff] (!%p8923_p13) }
  0x54   : > { %216 = vst.msk [vmem:[#allocation2 + $0x18] sm:$0xf] (!%p8923_p13), %vm208_vm0, %v6940_v1  ;;  %217 = vst.msk [vmem:[#allocation2 + $0x1c] sm:$0xf] (!%p8923_p13), %vm208_vm0, %v6940_v1  ;;  %vm447_vm4 = vsmask.f32 (!%p8923_p13), 4368  ;;  %v6235_v6 = vpack.c.bf16 (!%p8923_p13), %v320_v4, %v320_v4  ;;  %v6236_v11 = vpack.c.bf16 (!%p8923_p13), %v321_v7, %v321_v7 }
  0x55   : > { %219 = vst.msk [vmem:[#allocation2 + $0x24] sm:$0xf] (!%p8923_p13), %vm208_vm0, %v6940_v1  ;;  %220 = vst.msk [vmem:[#allocation2 + $0x28] sm:$0xf] (!%p8923_p13), %vm208_vm0, %v6940_v1  ;;  %v322_v8 = vld [vmem:[#allocation4 + $0x20] sm:$0xff] (!%p8923_p13)  ;;  %v450_v9 = vshrl.u32 (!%p8923_p13), %v6233_v2, 16 }
  0x56   : > { %222 = vst.msk [vmem:[#allocation2 + $0x30] sm:$0xf] (!%p8923_p13), %vm208_vm0, %v6940_v1  ;;  %223 = vst.msk [vmem:[#allocation2 + $0x34] sm:$0xf] (!%p8923_p13), %vm208_vm0, %v6940_v1  ;;  %v453_v10 = vshll.u32 (!%p8923_p13), %v6233_v2, 16  ;;  %v6237_v12 = vpack.c.bf16 (!%p8923_p13), %v322_v8, %v322_v8  ;;  %v323_v13 = vld [vmem:[#allocation4 + $0x28] sm:$0xff] (!%p8923_p13) }
  0x57   : > { %225 = vst.msk [vmem:[#allocation2 + $0x3c] sm:$0xf] (!%p8923_p13), %vm208_vm0, %v6940_v1  ;;  %226 = vst.msk [vmem:[#allocation2 + $0x40] sm:$0xf] (!%p8923_p13), %vm208_vm0, %v6940_v1  ;;  %v6941_v14 = vmov (!%p8923_p13), 0.0   ;;  %v458_v16 = vshrl.u32 (!%p8923_p13), %v6234_v5, 16  ;;  %v6238_v29 = vpack.c.bf16 (!%p8923_p13), %v323_v13, %v323_v13 }
  0x58   : > { %228 = vst.msk [vmem:[#allocation2 + $0x48] sm:$0xf] %vm208_vm0, %v6940_v1  ;;  %229 = vst.msk [vmem:[#allocation2 + $0x4c] sm:$0xf] %vm208_vm0, %v6940_v1  ;;  %v461_v17 = vshll.u32 %v6234_v5, 16  ;;  %v467_v18 = vshrl.u32 %v6235_v6, 16 }
  0x59   : > { %231 = vst.msk [vmem:[#allocation2 + $0x54] sm:$0xf] %vm208_vm0, %v6940_v1  ;;  %232 = vst.msk [vmem:[#allocation2 + $0x58] sm:$0xf] %vm208_vm0, %v6940_v1  ;;  %v470_v19 = vshll.u32 %v6235_v6, 16  ;;  %v452_v20 = vrot.slane %v450_v9, 7 }
  0x5a   : > { %234 = vst.msk [vmem:[#allocation2 + $0x60] sm:$0xf] %vm208_vm0, %v6940_v1  ;;  %235 = vst.msk [vmem:[#allocation2 + $0x64] sm:$0xf] %vm208_vm0, %v6940_v1  ;;  %v475_v22 = vshrl.u32 %v6236_v11, 16  ;;  %v478_v23 = vshll.u32 %v6236_v11, 16 }
  0x5b   : > { %237 = vst.msk [vmem:[#allocation2 + $0x6c] sm:$0xf] %vm208_vm0, %v6940_v1  ;;  %238 = vst.msk [vmem:[#allocation2 + $0x70] sm:$0xf] %vm208_vm0, %v6940_v1  ;;  %v484_v24 = vshrl.u32 %v6237_v12, 16  ;;  %v460_v25 = vrot.slane %v458_v16, 7  ;;  %v455_v30 = vor.u32 %v453_v10, %v452_v20 }
  0x5c   : > { %240 = vst.msk [vmem:[#allocation2 + $0x78] sm:$0xf] %vm208_vm0, %v6940_v1  ;;  %241 = vst.msk [vmem:[#allocation2 + $0x7c] sm:$0xf] %vm208_vm0, %v6940_v1  ;;  %v469_v27 = vrot.slane %v467_v18, 7  ;;  %v487_v28 = vshll.u32 %v6237_v12, 16 }
  0x5d   : > { %243 = vst.msk [vmem:[#allocation2 + $0x84] sm:$0xf] %vm208_vm0, %v6940_v1  ;;  %244 = vst.msk [vmem:[#allocation2 + $0x88] sm:$0xf] %vm208_vm0, %v6940_v1  ;;  %v456_v31 = vrot.slane %v452_v20, 4  ;;  %v477_v32 = vrot.slane %v475_v22, 7  ;;  %v463_v38 = vor.u32 %v461_v17, %v460_v25 }
  0x5e   : > { %246 = vst.msk [vmem:[#allocation2 + $0x90] sm:$0xf] %vm208_vm0, %v6940_v1  ;;  %247 = vst.msk [vmem:[#allocation2 + $0x94] sm:$0xf] %vm208_vm0, %v6940_v1  ;;  %v486_v33 = vrot.slane %v484_v24, 7  ;;  %v324_v34 = vld [vmem:[#allocation4 + $0x30] sm:$0xff]  ;;  %v472_v41 = vor.u32 %v470_v19, %v469_v27 }
  0x5f   : > { %249 = vst.msk [vmem:[#allocation2 + $0x9c] sm:$0xf] %vm208_vm0, %v6940_v1  ;;  %250 = vst.msk [vmem:[#allocation2 + $0xa0] sm:$0xf] %vm208_vm0, %v6940_v1  ;;  %v325_v35 = vld [vmem:[#allocation4 + $0x38] sm:$0xff]  ;;  %v326_v36 = vld [vmem:[#allocation4 + $0x40] sm:$0xff]  ;;  %v480_v45 = vor.u32 %v478_v23, %v477_v32  ;;  %v6239_v62 = vpack.c.bf16 %v324_v34, %v324_v34 }
  0x60   : > { %252 = vst.msk [vmem:[#allocation2 + $0xa8] sm:$0xf] %vm208_vm0, %v6940_v1  ;;  %253 = vst.msk [vmem:[#allocation2 + $0xac] sm:$0xf] %vm208_vm0, %v6940_v1  ;;  %v773_v37 = vld [vmem:[#allocation2 + $0xc] sm:$0xf]  ;;  %v489_v48 = vor.u32 %v487_v28, %v486_v33  ;;  %v6240_v63 = vpack.c.bf16 %v325_v35, %v325_v35  ;;  %v6241_v0 = vpack.c.bf16 %v326_v36, %v326_v36 }
  0x61   : > { %255 = vst.msk [vmem:[#allocation2 + $0xb4] sm:$0xf] %vm208_vm0, %v6940_v1  ;;  %256 = vst.msk [vmem:[#allocation2 + $0xb8] sm:$0xf] %vm208_vm0, %v6940_v1  ;;  %v465_v39 = vrot.slane %v460_v25, 4  ;;  %v473_v42 = vrot.slane %v469_v27, 4 }
  0x62   : > { %258 = vst.msk [vmem:[#allocation2 + $0xc0] sm:$0xf] %vm208_vm0, %v6940_v1  ;;  %259 = vst.msk [vmem:[#allocation2 + $0xc4] sm:$0xf] %vm208_vm0, %v6940_v1  ;;  %v782_v44 = vld [vmem:[#allocation2 + $0x18] sm:$0xf] }
  0x63   : > { %261 = vst.msk [vmem:[#allocation2 + $0xcc] sm:$0xf] %vm208_vm0, %v6940_v1  ;;  %262 = vst.msk [vmem:[#allocation2 + $0xd0] sm:$0xf] %vm208_vm0, %v6940_v1  ;;  %v482_v46 = vrot.slane %v477_v32, 4  ;;  %v327_v49 = vld [vmem:[#allocation4 + $0x48] sm:$0xff] }
  0x64   : > { %264 = vst.msk [vmem:[#allocation2 + $0xd8] sm:$0xf] %vm208_vm0, %v6940_v1  ;;  %265 = vst.msk [vmem:[#allocation2 + $0xdc] sm:$0xf] %vm208_vm0, %v6940_v1  ;;  %v789_v53 = vld [vmem:[#allocation2 + $0x24] sm:$0xf]  ;;  %v6242_v2 = vpack.c.bf16 %v327_v49, %v327_v49 }
  0x65   : > { %267 = vst.msk [vmem:[#allocation2 + $0xe4] sm:$0xf] %vm208_vm0, %v6940_v1  ;;  %268 = vst.msk [vmem:[#allocation2 + $0xe8] sm:$0xf] %vm208_vm0, %v6940_v1  ;;  %v490_v54 = vrot.slane %v486_v33, 4  ;;  %v328_v55 = vld [vmem:[#allocation4 + $0x50] sm:$0xff] }
  0x66   : > { %270 = vst.msk [vmem:[#allocation2 + $0xf0] sm:$0xf] %vm208_vm0, %v6940_v1  ;;  %271 = vst.msk [vmem:[#allocation2 + $0xf4] sm:$0xf] %vm208_vm0, %v6940_v1  ;;  %v329_v56 = vld [vmem:[#allocation4 + $0x58] sm:$0xff]  ;;  %v492_v60 = vshrl.u32 %v6238_v29, 16  ;;  %v6243_v3 = vpack.c.bf16 %v328_v55, %v328_v55 }
  0x67   : > { %273 = vst.msk [vmem:[#allocation2 + $0xfc] sm:$0xf] %vm208_vm0, %v6940_v1  ;;  %274 = vst.msk [vmem:[#allocation2 + $0x100] sm:$0xf] %vm208_vm0, %v6940_v1  ;;  %v495_v61 = vshll.u32 %v6238_v29, 16  ;;  %v7361_v4 = vpack.c.bf16 %v329_v56, %v329_v56  ;;  %v501_v6 = vshrl.u32 %v6239_v62, 16 }
  0x68   : > { %276 = vst.msk [vmem:[#allocation2 + $0x108] sm:$0xf] %vm208_vm0, %v6940_v1  ;;  %277 = vst.msk [vmem:[#allocation2 + $0x10c] sm:$0xf] %vm208_vm0, %v6940_v1  ;;  %v504_v7 = vshll.u32 %v6239_v62, 16  ;;  %v509_v8 = vshrl.u32 %v6240_v63, 16 }
  0x69   : > { %279 = vst.msk [vmem:[#allocation2 + $0x114] sm:$0xf] %vm208_vm0, %v6940_v1  ;;  %280 = vst.msk [vmem:[#allocation2 + $0x118] sm:$0xf] %vm208_vm0, %v6940_v1  ;;  %v512_v9 = vshll.u32 %v6240_v63, 16  ;;  %v518_v12 = vshrl.u32 %v6241_v0, 16 }
  0x6a   : > { %282 = vst.msk [vmem:[#allocation2 + $0x120] sm:$0xf] %vm208_vm0, %v6940_v1  ;;  %283 = vst.msk [vmem:[#allocation2 + $0x124] sm:$0xf] %vm208_vm0, %v6940_v1  ;;  %v521_v13 = vshll.u32 %v6241_v0, 16  ;;  %v511_v16 = vrot.slane %v509_v8, 7 }
  0x6b   : > { %285 = vst.msk [vmem:[#allocation2 + $0x12c] sm:$0xf] %vm208_vm0, %v6940_v1  ;;  %286 = vst.msk [vmem:[#allocation2 + $0x130] sm:$0xf] %vm208_vm0, %v6940_v1  ;;  %v526_v17 = vshrl.u32 %v6242_v2, 16  ;;  %v529_v18 = vshll.u32 %v6242_v2, 16 }
  0x6c   : > { %288 = vst.msk [vmem:[#allocation2 + $0x138] sm:$0xf] %vm208_vm0, %v6940_v1  ;;  %289 = vst.msk [vmem:[#allocation2 + $0x13c] sm:$0xf] %vm208_vm0, %v6940_v1  ;;  %v796_v22 = vld [vmem:[#allocation2 + $0x30] sm:$0xf]  ;;  %v514_v29 = vor.u32 %v512_v9, %v511_v16 }
  0x6d   : > { %291 = vst.msk [vmem:[#allocation2 + $0x144] sm:$0xf] %vm208_vm0, %v6940_v1  ;;  %292 = vst.msk [vmem:[#allocation2 + $0x148] sm:$0xf] %vm208_vm0, %v6940_v1  ;;  %v520_v24 = vrot.slane %v518_v12, 7  ;;  %v535_v25 = vshrl.u32 %v6243_v3, 16 }
  0x6e   : > { %294 = vst.msk [vmem:[#allocation2 + $0x150] sm:$0xf] %vm208_vm0, %v6940_v1  ;;  %295 = vst.msk [vmem:[#allocation2 + $0x154] sm:$0xf] %vm208_vm0, %v6940_v1  ;;  %v528_v34 = vrot.slane %v526_v17, 7  ;;  %v330_v36 = vld [vmem:[#allocation4 + $0x60] sm:$0xff] }
  0x6f   : > { %297 = vst.msk [vmem:[#allocation2 + $0x15c] sm:$0xf] %vm208_vm0, %v6940_v1  ;;  %298 = vst.msk [vmem:[#allocation2 + $0x160] sm:$0xf] %vm208_vm0, %v6940_v1  ;;  %v523_v32 = vor.u32 %v521_v13, %v520_v24  ;;  %v524_v33 = vrot.slane %v520_v24, 4  ;;  %v537_v35 = vrot.slane %v535_v25, 7 }
  0x70   : > { %300 = vst.msk [vmem:[#allocation2 + $0x168] sm:$0xf] %vm208_vm0, %v6940_v1  ;;  %301 = vst.msk [vmem:[#allocation2 + $0x16c] sm:$0xf] %vm208_vm0, %v6940_v1  ;;  %v334_v62 = vld [vmem:[#allocation4 + $0x100] sm:$0xff]  ;;  %v335_v63 = vld [vmem:[#allocation4 + $0x108] sm:$0xff] }
  0x71   : > { %303 = vst.msk [vmem:[#allocation2 + $0x174] sm:$0xf] %vm208_vm0, %v6940_v1  ;;  %304 = vst.msk [vmem:[#allocation2 + $0x178] sm:$0xf] %vm208_vm0, %v6940_v1  ;;  %v817_v9 = vld [vmem:[#allocation2 + $0x54] sm:$0xf]  ;;  %v6249_v12 = vpack.c.bf16 %v334_v62, %v334_v62  ;;  %v6250_v13 = vpack.c.bf16 %v335_v63, %v335_v63 }
  0x72   : > { %306 = vst.msk [vmem:[#allocation2 + $0x180] sm:$0xf] %vm208_vm0, %v6940_v1  ;;  %307 = vst.msk [vmem:[#allocation2 + $0x184] sm:$0xf] %vm208_vm0, %v6940_v1 }
  0x73   : > { %309 = vst.msk [vmem:[#allocation2 + $0x18c] sm:$0xf] %vm208_vm0, %v6940_v1  ;;  %310 = vst.msk [vmem:[#allocation2 + $0x190] sm:$0xf] %vm208_vm0, %v6940_v1 }
  0x74   : > { %312 = vst.msk [vmem:[#allocation2 + $0x198] sm:$0xf] %vm208_vm0, %v6940_v1  ;;  %313 = vst.msk [vmem:[#allocation2 + $0x19c] sm:$0xf] %vm208_vm0, %v6940_v1 }
  0x75   : > { %315 = vst.msk [vmem:[#allocation2 + $0x1a4] sm:$0xf] %vm208_vm0, %v6940_v1  ;;  %316 = vst.msk [vmem:[#allocation2 + $0x1a8] sm:$0xf] %vm208_vm0, %v6940_v1 }
  0x76   : > { %215 = vst.msk [vmem:[#allocation2 + $0x14] sm:$0x1] %vm211_vm1, %v6940_v1  ;;  %212 = vst.msk [vmem:[#allocation2 + $0x8] sm:$0x1] %vm211_vm1, %v6940_v1 }
  0x77   : > { %218 = vst.msk [vmem:[#allocation2 + $0x20] sm:$0x1] %vm211_vm1, %v6940_v1  ;;  %221 = vst.msk [vmem:[#allocation2 + $0x2c] sm:$0x1] %vm211_vm1, %v6940_v1 }
  0x78   : > { %224 = vst.msk [vmem:[#allocation2 + $0x38] sm:$0x1] %vm211_vm1, %v6940_v1  ;;  %227 = vst.msk [vmem:[#allocation2 + $0x44] sm:$0x1] %vm211_vm1, %v6940_v1 }
  0x79   : > { %230 = vst.msk [vmem:[#allocation2 + $0x50] sm:$0x1] %vm211_vm1, %v6940_v1  ;;  %233 = vst.msk [vmem:[#allocation2 + $0x5c] sm:$0x1] %vm211_vm1, %v6940_v1 }
  0x7a   : > { %236 = vst.msk [vmem:[#allocation2 + $0x68] sm:$0x1] %vm211_vm1, %v6940_v1  ;;  %239 = vst.msk [vmem:[#allocation2 + $0x74] sm:$0x1] %vm211_vm1, %v6940_v1 }
  0x7b   : > { %242 = vst.msk [vmem:[#allocation2 + $0x80] sm:$0x1] %vm211_vm1, %v6940_v1  ;;  %245 = vst.msk [vmem:[#allocation2 + $0x8c] sm:$0x1] %vm211_vm1, %v6940_v1 }
  0x7c   : > { %248 = vst.msk [vmem:[#allocation2 + $0x98] sm:$0x1] %vm211_vm1, %v6940_v1  ;;  %251 = vst.msk [vmem:[#allocation2 + $0xa4] sm:$0x1] %vm211_vm1, %v6940_v1 }
  0x7d   : > { %254 = vst.msk [vmem:[#allocation2 + $0xb0] sm:$0x1] %vm211_vm1, %v6940_v1  ;;  %257 = vst.msk [vmem:[#allocation2 + $0xbc] sm:$0x1] %vm211_vm1, %v6940_v1  ;;  %v779_v40 = vld [vmem:[#allocation2 + $0x14] sm:$0x1] }
  0x7e   : > { %260 = vst.msk [vmem:[#allocation2 + $0xc8] sm:$0x1] %vm211_vm1, %v6940_v1  ;;  %263 = vst.msk [vmem:[#allocation2 + $0xd4] sm:$0x1] %vm211_vm1, %v6940_v1  ;;  %v786_v47 = vld [vmem:[#allocation2 + $0x20] sm:$0x1] }
  0x7f   : > { %266 = vst.msk [vmem:[#allocation2 + $0xe0] sm:$0x1] %vm211_vm1, %v6940_v1  ;;  %269 = vst.msk [vmem:[#allocation2 + $0xec] sm:$0x1] %vm211_vm1, %v6940_v1  ;;  %v793_v5 = vld [vmem:[#allocation2 + $0x2c] sm:$0x1] }
  0x80   : > { %272 = vst.msk [vmem:[#allocation2 + $0xf8] sm:$0x1] %vm211_vm1, %v6940_v1  ;;  %275 = vst.msk [vmem:[#allocation2 + $0x104] sm:$0x1] %vm211_vm1, %v6940_v1  ;;  %v800_v23 = vld [vmem:[#allocation2 + $0x38] sm:$0x1] }
  0x81   : > { %278 = vst.msk [vmem:[#allocation2 + $0x110] sm:$0x1] %vm211_vm1, %v6940_v1  ;;  %281 = vst.msk [vmem:[#allocation2 + $0x11c] sm:$0x1] %vm211_vm1, %v6940_v1  ;;  %v814_v0 = vld [vmem:[#allocation2 + $0x50] sm:$0x1] }
  0x82   : > { %284 = vst.msk [vmem:[#allocation2 + $0x128] sm:$0x1] %vm211_vm1, %v6940_v1  ;;  %287 = vst.msk [vmem:[#allocation2 + $0x134] sm:$0x1] %vm211_vm1, %v6940_v1 }
  0x83   : > { %290 = vst.msk [vmem:[#allocation2 + $0x140] sm:$0x1] %vm211_vm1, %v6940_v1  ;;  %293 = vst.msk [vmem:[#allocation2 + $0x14c] sm:$0x1] %vm211_vm1, %v6940_v1 }
  0x84   : > { %296 = vst.msk [vmem:[#allocation2 + $0x158] sm:$0x1] %vm211_vm1, %v6940_v1  ;;  %299 = vst.msk [vmem:[#allocation2 + $0x164] sm:$0x1] %vm211_vm1, %v6940_v1 }
  0x85   : > { %302 = vst.msk [vmem:[#allocation2 + $0x170] sm:$0x1] %vm211_vm1, %v6940_v1  ;;  %305 = vst.msk [vmem:[#allocation2 + $0x17c] sm:$0x1] %vm211_vm1, %v6940_v1 }
  0x86   : > { %308 = vst.msk [vmem:[#allocation2 + $0x188] sm:$0x1] %vm211_vm1, %v6940_v1  ;;  %311 = vst.msk [vmem:[#allocation2 + $0x194] sm:$0x1] %vm211_vm1, %v6940_v1 }
  0x87   : > { %314 = vst.msk [vmem:[#allocation2 + $0x1a0] sm:$0x1] %vm211_vm1, %v6940_v1  ;;  %317 = vst.msk [vmem:[#allocation2 + $0x1ac] sm:$0x1] %vm211_vm1, %v6940_v1  ;;  %v494_v1 = vrot.slane %v492_v60, 7 }
  0x88   : > { %1449 = vst [vmem:[#allocation10] sm:$0x1] %v6941_v14  ;;  %1450 = vst [vmem:[#allocation12] sm:$0x1] %v6941_v14  ;;  %v503_v14 = vrot.slane %v501_v6, 7 }
  0x89   : > { %vm7329_vm5 = vmand %vm208_vm0, %vm771_vm2  ;;  %v497_v10 = vor.u32 %v495_v61, %v494_v1  ;;  %v499_v11 = vrot.slane %v494_v1, 4 }
  0x8a   : > { %vm7335_vm6 = vmor %vm446_vm3, %vm447_vm4  ;;  %v774_v43 = vsel %vm7329_vm5, %v455_v30, %v773_v37  ;;  %v783_v52 = vsel %vm7329_vm5, %v472_v41, %v782_v44  ;;  %v790_v59 = vsel %vm7329_vm5, %v489_v48, %v789_v53  ;;  %v506_v27 = vor.u32 %v504_v7, %v503_v14 }
  0x8b   : > { %vm7341_vm7 = vmand %vm211_vm1, %vm446_vm3  ;;  %775 = vst [vmem:[#allocation2 + $0xc] sm:$0xf] %v774_v43  ;;  %v464_v50 = vsel %vm7335_vm6, %v456_v31, %v463_v38  ;;  %v481_v57 = vsel %vm7335_vm6, %v473_v42, %v480_v45  ;;  %v498_v19 = vsel %vm7335_vm6, %v490_v54, %v497_v10  ;;  %v507_v28 = vrot.slane %v503_v14, 4  ;;  %v803_v31 = vld [vmem:[#allocation2 + $0x3c] sm:$0xf]  ;;  %v332_v43 = vld [vmem:[#allocation4 + $0x70] sm:$0xff] }
  0x8c   : > { %v780_v51 = vsel %vm7341_vm7, %v465_v39, %v779_v40  ;;  %776 = vst.msk [vmem:[#allocation2 + $0x10] sm:$0xf] %vm208_vm0, %v464_v50  ;;  %784 = vst [vmem:[#allocation2 + $0x18] sm:$0xf] %v783_v52  ;;  %v787_v58 = vsel %vm7341_vm7, %v482_v46, %v786_v47  ;;  %v794_v20 = vsel %vm7341_vm7, %v499_v11, %v793_v5  ;;  %v516_v30 = vrot.slane %v511_v16, 4  ;;  %v331_v42 = vld [vmem:[#allocation4 + $0x68] sm:$0xff] }
  0x8d   : > { %781 = vst [vmem:[#allocation2 + $0x14] sm:$0x1] %v780_v51  ;;  %785 = vst.msk [vmem:[#allocation2 + $0x1c] sm:$0xf] %vm208_vm0, %v481_v57  ;;  %v797_v37 = vsel %vm7329_vm5, %v506_v27, %v796_v22  ;;  %v515_v38 = vsel %vm7335_vm6, %v507_v28, %v514_v29  ;;  %v807_v40 = vld [vmem:[#allocation2 + $0x44] sm:$0x1]  ;;  %v804_v44 = vsel %vm7329_vm5, %v523_v32, %v803_v31 }
  0x8e   : > { %788 = vst [vmem:[#allocation2 + $0x20] sm:$0x1] %v787_v58  ;;  %791 = vst [vmem:[#allocation2 + $0x24] sm:$0xf] %v790_v59  ;;  %v801_v39 = vsel %vm7341_vm7, %v516_v30, %v800_v23  ;;  %v538_v41 = vshll.u32 %v6243_v3, 16  ;;  %v531_v45 = vor.u32 %v529_v18, %v528_v34  ;;  %v533_v46 = vrot.slane %v528_v34, 4 }
  0x8f   : > { %792 = vst.msk [vmem:[#allocation2 + $0x28] sm:$0xf] %vm208_vm0, %v498_v19  ;;  %795 = vst [vmem:[#allocation2 + $0x2c] sm:$0x1] %v794_v20  ;;  %v810_v47 = vld [vmem:[#allocation2 + $0x48] sm:$0xf]  ;;  %v6245_v52 = vpack.c.bf16 %v330_v36, %v330_v36  ;;  %v6246_v55 = vpack.c.bf16 %v331_v42, %v331_v42  ;;  %v6247_v56 = vpack.c.bf16 %v332_v43, %v332_v43 }
  0x90   : > { %798 = vst [vmem:[#allocation2 + $0x30] sm:$0xf] %v797_v37  ;;  %799 = vst.msk [vmem:[#allocation2 + $0x34] sm:$0xf] %vm208_vm0, %v515_v38  ;;  %v541_v48 = vrot.slane %v537_v35, 4  ;;  %v540_v49 = vor.u32 %v538_v41, %v537_v35  ;;  %v543_v50 = vshrl.u32 %v7361_v4, 16  ;;  %v532_v53 = vsel %vm7335_vm6, %v524_v33, %v531_v45 }
  0x91   : > { %802 = vst [vmem:[#allocation2 + $0x38] sm:$0x1] %v801_v39  ;;  %805 = vst [vmem:[#allocation2 + $0x3c] sm:$0xf] %v804_v44  ;;  %v546_v51 = vshll.u32 %v7361_v4, 16  ;;  %v808_v54 = vsel %vm7341_vm7, %v533_v46, %v807_v40  ;;  %v333_v57 = vld [vmem:[#allocation4 + $0x78] sm:$0xff] }
  0x92   : > { %806 = vst.msk [vmem:[#allocation2 + $0x40] sm:$0xf] %vm208_vm0, %v532_v53  ;;  %809 = vst [vmem:[#allocation2 + $0x44] sm:$0x1] %v808_v54  ;;  %v811_v58 = vsel %vm7329_vm5, %v540_v49, %v810_v47  ;;  %v545_v59 = vrot.slane %v543_v50, 7  ;;  %v552_v60 = vshrl.u32 %v6245_v52, 16  ;;  %v6248_v8 = vpack.c.bf16 %v333_v57, %v333_v57 }
  0x93   : > { %v555_v61 = vshll.u32 %v6245_v52, 16  ;;  %812 = vst [vmem:[#allocation2 + $0x48] sm:$0xf] %v811_v58  ;;  %v560_v1 = vshrl.u32 %v6246_v55, 16  ;;  %v563_v2 = vshll.u32 %v6246_v55, 16  ;;  %v569_v3 = vshrl.u32 %v6247_v56, 16 }
  0x94   : > { %v572_v4 = vshll.u32 %v6247_v56, 16  ;;  %v548_v5 = vor.u32 %v546_v51, %v545_v59  ;;  %v550_v6 = vrot.slane %v545_v59, 4  ;;  %v554_v7 = vrot.slane %v552_v60, 7  ;;  %v821_v19 = vld [vmem:[#allocation2 + $0x5c] sm:$0x1]  ;;  %v336_v27 = vld [vmem:[#allocation4 + $0x110] sm:$0xff] }
  0x95   : > { %v562_v10 = vrot.slane %v560_v1, 7  ;;  %v571_v11 = vrot.slane %v569_v3, 7  ;;  %v824_v20 = vld [vmem:[#allocation2 + $0x60] sm:$0xf]  ;;  %v577_v29 = vshrl.u32 %v6248_v8, 16  ;;  %v580_v30 = vshll.u32 %v6248_v8, 16 }
  0x96   : > { %v549_v14 = vsel %vm7335_vm6, %v541_v48, %v548_v5  ;;  %v815_v16 = vsel %vm7341_vm7, %v550_v6, %v814_v0  ;;  %v557_v17 = vor.u32 %v555_v61, %v554_v7  ;;  %v558_v18 = vrot.slane %v554_v7, 4  ;;  %v337_v32 = vld [vmem:[#allocation4 + $0x118] sm:$0xff]  ;;  %v338_v33 = vld [vmem:[#allocation4 + $0x120] sm:$0xff]  ;;  %v339_v34 = vld [vmem:[#allocation4 + $0x128] sm:$0xff] }
  0x97   : > { %813 = vst.msk [vmem:[#allocation2 + $0x4c] sm:$0xf] %vm208_vm0, %v549_v14  ;;  %816 = vst [vmem:[#allocation2 + $0x50] sm:$0x1] %v815_v16  ;;  %v565_v22 = vor.u32 %v563_v2, %v562_v10  ;;  %v567_v23 = vrot.slane %v562_v10, 4  ;;  %v574_v24 = vor.u32 %v572_v4, %v571_v11  ;;  %v575_v25 = vrot.slane %v571_v11, 4 }
  0x98   : > { %v818_v28 = vsel %vm7329_vm5, %v557_v17, %v817_v9  ;;  %v586_v31 = vshrl.u32 %v6249_v12, 16  ;;  %v589_v38 = vshll.u32 %v6249_v12, 16  ;;  %v579_v39 = vrot.slane %v577_v29, 7  ;;  %v828_v43 = vld [vmem:[#allocation2 + $0x68] sm:$0x1]  ;;  %v340_v3 = vld [vmem:[#allocation4 + $0x130] sm:$0xff] }
  0x99   : > { %819 = vst [vmem:[#allocation2 + $0x54] sm:$0xf] %v818_v28  ;;  %v566_v35 = vsel %vm7335_vm6, %v558_v18, %v565_v22  ;;  %v822_v36 = vsel %vm7341_vm7, %v567_v23, %v821_v19  ;;  %v825_v37 = vsel %vm7329_vm5, %v574_v24, %v824_v20  ;;  %v594_v41 = vshrl.u32 %v6250_v13, 16  ;;  %v831_v44 = vld [vmem:[#allocation2 + $0xe4] sm:$0xf]  ;;  %v341_v8 = vld [vmem:[#allocation4 + $0x138] sm:$0xff] }
  0x9a   : > { %820 = vst.msk [vmem:[#allocation2 + $0x58] sm:$0xf] %vm208_vm0, %v566_v35  ;;  %823 = vst [vmem:[#allocation2 + $0x5c] sm:$0x1] %v822_v36  ;;  %v588_v40 = vrot.slane %v586_v31, 7  ;;  %v597_v42 = vshll.u32 %v6250_v13, 16  ;;  %v6251_v45 = vpack.c.bf16 %v336_v27, %v336_v27  ;;  %v6252_v46 = vpack.c.bf16 %v337_v32, %v337_v32 }
  0x9b   : > { %826 = vst [vmem:[#allocation2 + $0x60] sm:$0xf] %v825_v37  ;;  %v6253_v47 = vpack.c.bf16 %v338_v33, %v338_v33  ;;  %v6254_v48 = vpack.c.bf16 %v339_v34, %v339_v34  ;;  %v582_v49 = vor.u32 %v580_v30, %v579_v39  ;;  %v584_v50 = vrot.slane %v579_v39, 4  ;;  %v835_v60 = vld [vmem:[#allocation2 + $0xec] sm:$0x1]  ;;  %v342_v9 = vld [vmem:[#allocation4 + $0x140] sm:$0xff] }
  0x9c   : > { %v591_v51 = vor.u32 %v589_v38, %v588_v40  ;;  %v592_v52 = vrot.slane %v588_v40, 4  ;;  %v596_v53 = vrot.slane %v594_v41, 7  ;;  %v603_v54 = vshrl.u32 %v6251_v45, 16  ;;  %v838_v1 = vld [vmem:[#allocation2 + $0xf0] sm:$0xf]  ;;  %v343_v36 = vld [vmem:[#allocation4 + $0x148] sm:$0xff] }
  0x9d   : > { %v606_v55 = vshll.u32 %v6251_v45, 16  ;;  %v611_v56 = vshrl.u32 %v6252_v46, 16  ;;  %v583_v57 = vsel %vm7335_vm6, %v575_v25, %v582_v49  ;;  %v829_v58 = vsel %vm7341_vm7, %v584_v50, %v828_v43  ;;  %v842_v14 = vld [vmem:[#allocation2 + $0xf8] sm:$0x1]  ;;  %v845_v22 = vld [vmem:[#allocation2 + $0xfc] sm:$0xf] }
  0x9e   : > { %v832_v59 = vsel %vm7329_vm5, %v591_v51, %v831_v44  ;;  %v614_v61 = vshll.u32 %v6252_v46, 16  ;;  %827 = vst.msk [vmem:[#allocation2 + $0x64] sm:$0xf] %vm208_vm0, %v583_v57  ;;  %830 = vst [vmem:[#allocation2 + $0x68] sm:$0x1] %v829_v58  ;;  %v599_v62 = vor.u32 %v597_v42, %v596_v53  ;;  %v601_v63 = vrot.slane %v596_v53, 4 }
  0x9f   : > { %833 = vst [vmem:[#allocation2 + $0xe4] sm:$0xf] %v832_v59  ;;  %v605_v0 = vrot.slane %v603_v54, 7  ;;  %v613_v2 = vrot.slane %v611_v56, 7  ;;  %v620_v4 = vshrl.u32 %v6253_v47, 16  ;;  %v623_v5 = vshll.u32 %v6253_v47, 16 }
  0xa0   : > { %v628_v6 = vshrl.u32 %v6254_v48, 16  ;;  %v631_v7 = vshll.u32 %v6254_v48, 16  ;;  %v600_v10 = vsel %vm7335_vm6, %v592_v52, %v599_v62  ;;  %v836_v11 = vsel %vm7341_vm7, %v601_v63, %v835_v60  ;;  %v849_v31 = vld [vmem:[#allocation2 + $0x104] sm:$0x1]  ;;  %v345_v42 = vld [vmem:[#allocation4 + $0x158] sm:$0xff]  ;;  %v346_v43 = vld [vmem:[#allocation4 + $0x160] sm:$0xff] }
  0xa1   : > { %v608_v12 = vor.u32 %v606_v55, %v605_v0  ;;  %v609_v13 = vrot.slane %v605_v0, 4  ;;  %834 = vst.msk [vmem:[#allocation2 + $0xe8] sm:$0xf] %vm208_vm0, %v600_v10  ;;  %837 = vst [vmem:[#allocation2 + $0xec] sm:$0x1] %v836_v11  ;;  %v616_v16 = vor.u32 %v614_v61, %v613_v2  ;;  %v618_v17 = vrot.slane %v613_v2, 4 }
  0xa2   : > { %v622_v18 = vrot.slane %v620_v4, 7  ;;  %v630_v19 = vrot.slane %v628_v6, 7  ;;  %v6255_v23 = vpack.c.bf16 %v340_v3, %v340_v3  ;;  %v6256_v24 = vpack.c.bf16 %v341_v8, %v341_v8  ;;  %v344_v37 = vld [vmem:[#allocation4 + $0x150] sm:$0xff]  ;;  %v852_v48 = vld [vmem:[#allocation2 + $0x108] sm:$0xf]  ;;  %v347_v3 = vld [vmem:[#allocation4 + $0x168] sm:$0xff] }
  0xa3   : > { %v839_v20 = vsel %vm7329_vm5, %v608_v12, %v838_v1  ;;  %v6257_v25 = vpack.c.bf16 %v342_v9, %v342_v9  ;;  %v617_v27 = vsel %vm7335_vm6, %v609_v13, %v616_v16  ;;  %v843_v28 = vsel %vm7341_vm7, %v618_v17, %v842_v14  ;;  %v856_v55 = vld [vmem:[#allocation2 + $0x110] sm:$0x1]  ;;  %v859_v56 = vld [vmem:[#allocation2 + $0x114] sm:$0xf]  ;;  %v348_v4 = vld [vmem:[#allocation4 + $0x170] sm:$0xff] }
  0xa4   : > { %840 = vst [vmem:[#allocation2 + $0xf0] sm:$0xf] %v839_v20  ;;  %v625_v29 = vor.u32 %v623_v5, %v622_v18  ;;  %v626_v30 = vrot.slane %v622_v18, 4  ;;  %841 = vst.msk [vmem:[#allocation2 + $0xf4] sm:$0xf] %vm208_vm0, %v617_v27  ;;  %v633_v32 = vor.u32 %v631_v7, %v630_v19  ;;  %v635_v33 = vrot.slane %v630_v19, 4 }
  0xa5   : > { %844 = vst [vmem:[#allocation2 + $0xf8] sm:$0x1] %v843_v28  ;;  %v637_v34 = vshrl.u32 %v6255_v23, 16  ;;  %v640_v35 = vshll.u32 %v6255_v23, 16  ;;  %v645_v39 = vshrl.u32 %v6256_v24, 16  ;;  %v648_v40 = vshll.u32 %v6256_v24, 16 }
  0xa6   : > { %v846_v38 = vsel %vm7329_vm5, %v625_v29, %v845_v22  ;;  %v654_v41 = vshrl.u32 %v6257_v25, 16  ;;  %v634_v44 = vsel %vm7335_vm6, %v626_v30, %v633_v32  ;;  %v850_v45 = vsel %vm7341_vm7, %v635_v33, %v849_v31  ;;  %v863_v13 = vld [vmem:[#allocation2 + $0x11c] sm:$0x1]  ;;  %v866_v14 = vld [vmem:[#allocation2 + $0x120] sm:$0xf]  ;;  %v349_v30 = vld [vmem:[#allocation4 + $0x178] sm:$0xff] }
  0xa7   : > { %847 = vst [vmem:[#allocation2 + $0xfc] sm:$0xf] %v846_v38  ;;  %v639_v46 = vrot.slane %v637_v34, 7  ;;  %v657_v47 = vshll.u32 %v6257_v25, 16  ;;  %848 = vst.msk [vmem:[#allocation2 + $0x100] sm:$0xf] %vm208_vm0, %v634_v44  ;;  %v6258_v51 = vpack.c.bf16 %v343_v36, %v343_v36  ;;  %v6259_v52 = vpack.c.bf16 %v344_v37, %v344_v37 }
  0xa8   : > { %851 = vst [vmem:[#allocation2 + $0x104] sm:$0x1] %v850_v45  ;;  %v647_v49 = vrot.slane %v645_v39, 7  ;;  %v656_v50 = vrot.slane %v654_v41, 7  ;;  %v6260_v57 = vpack.c.bf16 %v345_v42, %v345_v42  ;;  %v6261_v58 = vpack.c.bf16 %v346_v43, %v346_v43  ;;  %v870_v34 = vld [vmem:[#allocation2 + $0x128] sm:$0x1] }
  0xa9   : > { %v642_v53 = vor.u32 %v640_v35, %v639_v46  ;;  %v643_v54 = vrot.slane %v639_v46, 4  ;;  %v662_v0 = vshrl.u32 %v6258_v51, 16  ;;  %v665_v1 = vshll.u32 %v6258_v51, 16  ;;  %v873_v35 = vld [vmem:[#allocation2 + $0x12c] sm:$0xf]  ;;  %v888_v37 = vld [vmem:[#allocation4 + $0x80] sm:$0xff] }
  0xaa   : > { %v650_v59 = vor.u32 %v648_v40, %v647_v49  ;;  %v652_v60 = vrot.slane %v647_v49, 4  ;;  %v659_v61 = vor.u32 %v657_v47, %v656_v50  ;;  %v660_v62 = vrot.slane %v656_v50, 4  ;;  %v877_v49 = vld [vmem:[#allocation2 + $0x134] sm:$0x1]  ;;  %v880_v50 = vld [vmem:[#allocation2 + $0x138] sm:$0xf] }
  0xab   : > { %v853_v63 = vsel %vm7329_vm5, %v642_v53, %v852_v48  ;;  %v671_v2 = vshrl.u32 %v6259_v52, 16  ;;  %v674_v8 = vshll.u32 %v6259_v52, 16  ;;  %v664_v9 = vrot.slane %v662_v0, 7  ;;  %v889_v52 = vld [vmem:[#allocation4 + $0x88] sm:$0xff] }
  0xac   : > { %854 = vst [vmem:[#allocation2 + $0x108] sm:$0xf] %v853_v63  ;;  %v651_v5 = vsel %vm7335_vm6, %v643_v54, %v650_v59  ;;  %v857_v6 = vsel %vm7341_vm7, %v652_v60, %v856_v55  ;;  %v860_v7 = vsel %vm7329_vm5, %v659_v61, %v859_v56  ;;  %v679_v11 = vshrl.u32 %v6260_v57, 16  ;;  %v892_v63 = vld [vmem:[#allocation4 + $0xa0] sm:$0xff]  ;;  %v893_v0 = vld [vmem:[#allocation4 + $0xa8] sm:$0xff] }
  0xad   : > { %855 = vst.msk [vmem:[#allocation2 + $0x10c] sm:$0xf] %vm208_vm0, %v651_v5  ;;  %858 = vst [vmem:[#allocation2 + $0x110] sm:$0x1] %v857_v6  ;;  %v673_v10 = vrot.slane %v671_v2, 7  ;;  %v682_v12 = vshll.u32 %v6260_v57, 16  ;;  %v6262_v18 = vpack.c.bf16 %v347_v3, %v347_v3  ;;  %v6263_v19 = vpack.c.bf16 %v348_v4, %v348_v4 }
  0xae   : > { %861 = vst [vmem:[#allocation2 + $0x114] sm:$0xf] %v860_v7  ;;  %v688_v16 = vshrl.u32 %v6261_v58, 16  ;;  %v691_v17 = vshll.u32 %v6261_v58, 16  ;;  %v667_v20 = vor.u32 %v665_v1, %v664_v9  ;;  %v669_v22 = vrot.slane %v664_v9, 4  ;;  %v890_v57 = vld [vmem:[#allocation4 + $0x90] sm:$0xff] }
  0xaf   : > { %v676_v23 = vor.u32 %v674_v8, %v673_v10  ;;  %v677_v24 = vrot.slane %v673_v10, 4  ;;  %v681_v25 = vrot.slane %v679_v11, 7  ;;  %v696_v28 = vshrl.u32 %v6262_v18, 16  ;;  %v891_v58 = vld [vmem:[#allocation4 + $0x98] sm:$0xff]  ;;  %v884_v9 = vld [vmem:[#allocation2 + $0x140] sm:$0x1] }
  0xb0   : > { %v690_v27 = vrot.slane %v688_v16, 7  ;;  %v699_v29 = vshll.u32 %v6262_v18, 16  ;;  %v668_v31 = vsel %vm7335_vm6, %v660_v62, %v667_v20  ;;  %v864_v32 = vsel %vm7341_vm7, %v669_v22, %v863_v13  ;;  %v1337_v10 = vld [vmem:[#allocation2 + $0x6c] sm:$0xf] }
  0xb1   : > { %v867_v33 = vsel %vm7329_vm5, %v676_v23, %v866_v14  ;;  %v705_v36 = vshrl.u32 %v6263_v19, 16  ;;  %862 = vst.msk [vmem:[#allocation2 + $0x118] sm:$0xf] %vm208_vm0, %v668_v31  ;;  %865 = vst [vmem:[#allocation2 + $0x11c] sm:$0x1] %v864_v32  ;;  %v684_v38 = vor.u32 %v682_v12, %v681_v25  ;;  %v686_v39 = vrot.slane %v681_v25, 4 }
  0xb2   : > { %868 = vst [vmem:[#allocation2 + $0x120] sm:$0xf] %v867_v33  ;;  %v693_v40 = vor.u32 %v691_v17, %v690_v27  ;;  %v694_v41 = vrot.slane %v690_v27, 4  ;;  %v698_v42 = vrot.slane %v696_v28, 7  ;;  %v708_v44 = vshll.u32 %v6263_v19, 16 }
  0xb3   : > { %v707_v43 = vrot.slane %v705_v36, 7  ;;  %v6264_v45 = vpack.c.bf16 %v349_v30, %v349_v30  ;;  %v685_v46 = vsel %vm7335_vm6, %v677_v24, %v684_v38  ;;  %v871_v47 = vsel %vm7341_vm7, %v686_v39, %v870_v34  ;;  %v1344_v34 = vld [vmem:[#allocation2 + $0x78] sm:$0xf]  ;;  %v894_v36 = vld [vmem:[#allocation4 + $0xb0] sm:$0xff] }
  0xb4   : > { %v874_v48 = vsel %vm7329_vm5, %v693_v40, %v873_v35  ;;  %v6265_v51 = vpack.c.bf16 %v888_v37, %v888_v37  ;;  %869 = vst.msk [vmem:[#allocation2 + $0x124] sm:$0xf] %vm208_vm0, %v685_v46  ;;  %872 = vst [vmem:[#allocation2 + $0x128] sm:$0x1] %v871_v47  ;;  %v701_v53 = vor.u32 %v699_v29, %v698_v42  ;;  %v703_v54 = vrot.slane %v698_v42, 4  ;;  %v896_v42 = vld [vmem:[#allocation4 + $0xc0] sm:$0xff] }
  0xb5   : > { %875 = vst [vmem:[#allocation2 + $0x12c] sm:$0xf] %v874_v48  ;;  %v710_v55 = vor.u32 %v708_v44, %v707_v43  ;;  %v711_v56 = vrot.slane %v707_v43, 4  ;;  %v713_v59 = vshrl.u32 %v6264_v45, 16  ;;  %v716_v60 = vshll.u32 %v6264_v45, 16 }
  0xb6   : > { %v1017_v61 = vshrl.u32 %v6265_v51, 16  ;;  %v1020_v62 = vshll.u32 %v6265_v51, 16  ;;  %v702_v1 = vsel %vm7335_vm6, %v694_v41, %v701_v53  ;;  %v878_v2 = vsel %vm7341_vm7, %v703_v54, %v877_v49  ;;  %v1341_v29 = vld [vmem:[#allocation2 + $0x74] sm:$0x1]  ;;  %v895_v41 = vld [vmem:[#allocation4 + $0xb8] sm:$0xff] }
  0xb7   : > { %v881_v3 = vsel %vm7329_vm5, %v710_v55, %v880_v50  ;;  %v6266_v4 = vpack.c.bf16 %v889_v52, %v889_v52  ;;  %876 = vst.msk [vmem:[#allocation2 + $0x130] sm:$0xf] %vm208_vm0, %v702_v1  ;;  %879 = vst [vmem:[#allocation2 + $0x134] sm:$0x1] %v878_v2  ;;  %v715_v5 = vrot.slane %v713_v59, 7  ;;  %v6267_v7 = vpack.c.bf16 %v890_v57, %v890_v57  ;;  %v897_v2 = vld [vmem:[#allocation4 + $0xc8] sm:$0xff] }
  0xb8   : > { %882 = vst [vmem:[#allocation2 + $0x138] sm:$0xf] %v881_v3  ;;  %v1019_v6 = vrot.slane %v1017_v61, 7  ;;  %v6268_v8 = vpack.c.bf16 %v891_v58, %v891_v58  ;;  %v6269_v13 = vpack.c.bf16 %v892_v63, %v892_v63  ;;  %v6270_v14 = vpack.c.bf16 %v893_v0, %v893_v0  ;;  %v1348_v47 = vld [vmem:[#allocation2 + $0x80] sm:$0x1] }
  0xb9   : > { %v1025_v11 = vshrl.u32 %v6266_v4, 16  ;;  %v1028_v12 = vshll.u32 %v6266_v4, 16  ;;  %v718_v16 = vor.u32 %v716_v60, %v715_v5  ;;  %v720_v17 = vrot.slane %v715_v5, 4  ;;  %v1351_v53 = vld [vmem:[#allocation2 + $0x84] sm:$0xf] }
  0xba   : > { %v1022_v18 = vor.u32 %v1020_v62, %v1019_v6  ;;  %v1023_v19 = vrot.slane %v1019_v6, 4  ;;  %v1034_v22 = vshrl.u32 %v6267_v7, 16  ;;  %v1037_v23 = vshll.u32 %v6267_v7, 16  ;;  %v1355_v61 = vld [vmem:[#allocation2 + $0x8c] sm:$0x1]  ;;  %v898_v3 = vld [vmem:[#allocation4 + $0xd0] sm:$0xff] }
  0xbb   : > { %v1027_v20 = vrot.slane %v1025_v11, 7  ;;  %v1042_v24 = vshrl.u32 %v6268_v8, 16  ;;  %v719_v25 = vsel %vm7335_vm6, %v711_v56, %v718_v16  ;;  %v885_v27 = vsel %vm7341_vm7, %v720_v17, %v884_v9  ;;  %v900_v9 = vld [vmem:[#allocation4 + $0xe0] sm:$0xff] }
  0xbc   : > { %v1338_v28 = vsel %vm7329_vm5, %v1022_v18, %v1337_v10  ;;  %v1045_v30 = vshll.u32 %v6268_v8, 16  ;;  %883 = vst.msk [vmem:[#allocation2 + $0x13c] sm:$0xf] %vm208_vm0, %v719_v25  ;;  %886 = vst [vmem:[#allocation2 + $0x140] sm:$0x1] %v885_v27  ;;  %v1036_v33 = vrot.slane %v1034_v22, 7  ;;  %v6271_v54 = vpack.c.bf16 %v894_v36, %v894_v36 }
  0xbd   : > { %1339 = vst [vmem:[#allocation2 + $0x6c] sm:$0xf] %v1338_v28  ;;  %v1030_v31 = vor.u32 %v1028_v12, %v1027_v20  ;;  %v1032_v32 = vrot.slane %v1027_v20, 4  ;;  %v1044_v35 = vrot.slane %v1042_v24, 7  ;;  %v1051_v37 = vshrl.u32 %v6269_v13, 16  ;;  %v899_v8 = vld [vmem:[#allocation4 + $0xd8] sm:$0xff] }
  0xbe   : > { %v1054_v38 = vshll.u32 %v6269_v13, 16  ;;  %v1059_v39 = vshrl.u32 %v6270_v14, 16  ;;  %v1062_v40 = vshll.u32 %v6270_v14, 16  ;;  %v1039_v45 = vor.u32 %v1037_v23, %v1036_v33  ;;  %v1358_v14 = vld [vmem:[#allocation2 + $0x90] sm:$0xf]  ;;  %v901_v36 = vld [vmem:[#allocation4 + $0xe8] sm:$0xff] }
  0xbf   : > { %v1031_v43 = vsel %vm7335_vm6, %v1023_v19, %v1030_v31  ;;  %v1342_v44 = vsel %vm7341_vm7, %v1032_v32, %v1341_v29  ;;  %v1040_v46 = vrot.slane %v1036_v33, 4  ;;  %v1047_v48 = vor.u32 %v1045_v30, %v1044_v35  ;;  %v1362_v23 = vld [vmem:[#allocation2 + $0x98] sm:$0x1]  ;;  %v1365_v24 = vld [vmem:[#allocation2 + $0x9c] sm:$0xf] }
  0xc0   : > { %1340 = vst.msk [vmem:[#allocation2 + $0x70] sm:$0xf] %vm208_vm0, %v1031_v43  ;;  %1343 = vst [vmem:[#allocation2 + $0x74] sm:$0x1] %v1342_v44  ;;  %v1049_v49 = vrot.slane %v1044_v35, 4  ;;  %v1053_v50 = vrot.slane %v1051_v37, 7  ;;  %v1345_v52 = vsel %vm7329_vm5, %v1039_v45, %v1344_v34  ;;  %v6272_v55 = vpack.c.bf16 %v895_v41, %v895_v41 }
  0xc1   : > { %v1061_v51 = vrot.slane %v1059_v39, 7  ;;  %v6273_v56 = vpack.c.bf16 %v896_v42, %v896_v42  ;;  %1346 = vst [vmem:[#allocation2 + $0x78] sm:$0xf] %v1345_v52  ;;  %v1048_v57 = vsel %vm7335_vm6, %v1040_v46, %v1047_v48  ;;  %v1068_v0 = vshrl.u32 %v6271_v54, 16  ;;  %v902_v37 = vld [vmem:[#allocation4 + $0xf0] sm:$0xff] }
  0xc2   : > { %v1349_v58 = vsel %vm7341_vm7, %v1049_v49, %v1348_v47  ;;  %v1056_v59 = vor.u32 %v1054_v38, %v1053_v50  ;;  %v1057_v60 = vrot.slane %v1053_v50, 4  ;;  %1347 = vst.msk [vmem:[#allocation2 + $0x7c] sm:$0xf] %vm208_vm0, %v1048_v57  ;;  %v1071_v1 = vshll.u32 %v6271_v54, 16  ;;  %v1369_v46 = vld [vmem:[#allocation2 + $0xa4] sm:$0x1] }
  0xc3   : > { %1350 = vst [vmem:[#allocation2 + $0x80] sm:$0x1] %v1349_v58  ;;  %v1064_v62 = vor.u32 %v1062_v40, %v1061_v51  ;;  %v1066_v63 = vrot.slane %v1061_v51, 4  ;;  %v1076_v5 = vshrl.u32 %v6272_v55, 16  ;;  %v1079_v6 = vshll.u32 %v6272_v55, 16 }
  0xc4   : > { %v1352_v4 = vsel %vm7329_vm5, %v1056_v59, %v1351_v53  ;;  %v1085_v7 = vshrl.u32 %v6273_v56, 16  ;;  %v1070_v12 = vrot.slane %v1068_v0, 7  ;;  %v1088_v13 = vshll.u32 %v6273_v56, 16  ;;  %v1372_v47 = vld [vmem:[#allocation2 + $0xa8] sm:$0xf] }
  0xc5   : > { %1353 = vst [vmem:[#allocation2 + $0x84] sm:$0xf] %v1352_v4  ;;  %v1065_v10 = vsel %vm7335_vm6, %v1057_v60, %v1064_v62  ;;  %v1356_v11 = vsel %vm7341_vm7, %v1066_v63, %v1355_v61  ;;  %v1078_v16 = vrot.slane %v1076_v5, 7  ;;  %v6274_v18 = vpack.c.bf16 %v897_v2, %v897_v2  ;;  %v903_v60 = vld [vmem:[#allocation4 + $0xf8] sm:$0xff]  ;;  %v1376_v0 = vld [vmem:[#allocation2 + $0xb0] sm:$0x1] }
  0xc6   : > { %1354 = vst.msk [vmem:[#allocation2 + $0x88] sm:$0xf] %vm208_vm0, %v1065_v10  ;;  %1357 = vst [vmem:[#allocation2 + $0x8c] sm:$0x1] %v1356_v11  ;;  %v1087_v17 = vrot.slane %v1085_v7, 7  ;;  %v6275_v19 = vpack.c.bf16 %v898_v3, %v898_v3  ;;  %v1073_v20 = vor.u32 %v1071_v1, %v1070_v12  ;;  %v1074_v22 = vrot.slane %v1070_v12, 4 }
  0xc7   : > { %v6276_v25 = vpack.c.bf16 %v899_v8, %v899_v8  ;;  %v6277_v27 = vpack.c.bf16 %v900_v9, %v900_v9  ;;  %v1081_v28 = vor.u32 %v1079_v6, %v1078_v16  ;;  %v1083_v29 = vrot.slane %v1078_v16, 4  ;;  %v1379_v1 = vld [vmem:[#allocation2 + $0xb4] sm:$0xf]  ;;  %v1383_v16 = vld [vmem:[#allocation2 + $0xbc] sm:$0x1] }
  0xc8   : > { %v1090_v30 = vor.u32 %v1088_v13, %v1087_v17  ;;  %v1091_v31 = vrot.slane %v1087_v17, 4  ;;  %v1359_v32 = vsel %vm7329_vm5, %v1073_v20, %v1358_v14  ;;  %v1093_v33 = vshrl.u32 %v6274_v18, 16  ;;  %v904_v3 = vld [vmem:[#allocation4 + $0x180] sm:$0xff]  ;;  %v1386_v17 = vld [vmem:[#allocation2 + $0xc0] sm:$0xf] }
  0xc9   : > { %v1096_v34 = vshll.u32 %v6274_v18, 16  ;;  %v1102_v35 = vshrl.u32 %v6275_v19, 16  ;;  %1360 = vst [vmem:[#allocation2 + $0x90] sm:$0xf] %v1359_v32  ;;  %v1082_v38 = vsel %vm7335_vm6, %v1074_v22, %v1081_v28  ;;  %v1363_v39 = vsel %vm7341_vm7, %v1083_v29, %v1362_v23  ;;  %v908_v32 = vld [vmem:[#allocation4 + $0x1a0] sm:$0xff] }
  0xca   : > { %v1366_v40 = vsel %vm7329_vm5, %v1090_v30, %v1365_v24  ;;  %v1105_v41 = vshll.u32 %v6275_v19, 16  ;;  %1361 = vst.msk [vmem:[#allocation2 + $0x94] sm:$0xf] %vm208_vm0, %v1082_v38  ;;  %1364 = vst [vmem:[#allocation2 + $0x98] sm:$0x1] %v1363_v39  ;;  %v1095_v42 = vrot.slane %v1093_v33, 7  ;;  %v6278_v50 = vpack.c.bf16 %v901_v36, %v901_v36 }
  0xcb   : > { %1367 = vst [vmem:[#allocation2 + $0x9c] sm:$0xf] %v1366_v40  ;;  %v1104_v43 = vrot.slane %v1102_v35, 7  ;;  %v1110_v44 = vshrl.u32 %v6276_v25, 16  ;;  %v1113_v45 = vshll.u32 %v6276_v25, 16  ;;  %v1119_v48 = vshrl.u32 %v6277_v27, 16 }
  0xcc   : > { %v1122_v49 = vshll.u32 %v6277_v27, 16  ;;  %v6279_v51 = vpack.c.bf16 %v902_v37, %v902_v37  ;;  %v1098_v52 = vor.u32 %v1096_v34, %v1095_v42  ;;  %v1100_v53 = vrot.slane %v1095_v42, 4  ;;  %v905_v19 = vld [vmem:[#allocation4 + $0x188] sm:$0xff]  ;;  %v906_v25 = vld [vmem:[#allocation4 + $0x190] sm:$0xff]  ;;  %v907_v27 = vld [vmem:[#allocation4 + $0x198] sm:$0xff] }
  0xcd   : > { %v1107_v54 = vor.u32 %v1105_v41, %v1104_v43  ;;  %v1108_v55 = vrot.slane %v1104_v43, 4  ;;  %v1112_v56 = vrot.slane %v1110_v44, 7  ;;  %v1121_v57 = vrot.slane %v1119_v48, 7  ;;  %v909_v33 = vld [vmem:[#allocation4 + $0x1a8] sm:$0xff]  ;;  %v1390_v42 = vld [vmem:[#allocation2 + $0xc8] sm:$0x1] }
  0xce   : > { %v1127_v58 = vshrl.u32 %v6278_v50, 16  ;;  %v1130_v59 = vshll.u32 %v6278_v50, 16  ;;  %v1099_v61 = vsel %vm7335_vm6, %v1091_v31, %v1098_v52  ;;  %v1370_v62 = vsel %vm7341_vm7, %v1100_v53, %v1369_v46  ;;  %v1393_v43 = vld [vmem:[#allocation2 + $0x144] sm:$0xf] }
  0xcf   : > { %v1373_v63 = vsel %vm7329_vm5, %v1107_v54, %v1372_v47  ;;  %v1136_v2 = vshrl.u32 %v6279_v51, 16  ;;  %1368 = vst.msk [vmem:[#allocation2 + $0xa0] sm:$0xf] %vm208_vm0, %v1099_v61  ;;  %1371 = vst [vmem:[#allocation2 + $0xa4] sm:$0x1] %v1370_v62  ;;  %v1115_v4 = vor.u32 %v1113_v45, %v1112_v56  ;;  %v1117_v5 = vrot.slane %v1112_v56, 4 }
  0xd0   : > { %1374 = vst [vmem:[#allocation2 + $0xa8] sm:$0xf] %v1373_v63  ;;  %v1124_v6 = vor.u32 %v1122_v49, %v1121_v57  ;;  %v1125_v7 = vrot.slane %v1121_v57, 4  ;;  %v1129_v8 = vrot.slane %v1127_v58, 7  ;;  %v1139_v10 = vshll.u32 %v6279_v51, 16 }
  0xd1   : > { %v1138_v9 = vrot.slane %v1136_v2, 7  ;;  %v6280_v11 = vpack.c.bf16 %v903_v60, %v903_v60  ;;  %v1116_v12 = vsel %vm7335_vm6, %v1108_v55, %v1115_v4  ;;  %v1377_v13 = vsel %vm7341_vm7, %v1117_v5, %v1376_v0  ;;  %v1400_v0 = vld [vmem:[#allocation2 + $0x150] sm:$0xf]  ;;  %v910_v2 = vld [vmem:[#allocation4 + $0x1b0] sm:$0xff] }
  0xd2   : > { %v1380_v14 = vsel %vm7329_vm5, %v1124_v6, %v1379_v1  ;;  %v6281_v18 = vpack.c.bf16 %v904_v3, %v904_v3  ;;  %1375 = vst.msk [vmem:[#allocation2 + $0xac] sm:$0xf] %vm208_vm0, %v1116_v12  ;;  %1378 = vst [vmem:[#allocation2 + $0xb0] sm:$0x1] %v1377_v13  ;;  %v1132_v20 = vor.u32 %v1130_v59, %v1129_v8  ;;  %v1134_v22 = vrot.slane %v1129_v8, 4  ;;  %v912_v8 = vld [vmem:[#allocation4 + $0x1c0] sm:$0xff] }
  0xd3   : > { %1381 = vst [vmem:[#allocation2 + $0xb4] sm:$0xf] %v1380_v14  ;;  %v1141_v23 = vor.u32 %v1139_v10, %v1138_v9  ;;  %v1142_v24 = vrot.slane %v1138_v9, 4  ;;  %v1144_v28 = vshrl.u32 %v6280_v11, 16  ;;  %v1147_v29 = vshll.u32 %v6280_v11, 16 }
  0xd4   : > { %v1153_v30 = vshrl.u32 %v6281_v18, 16  ;;  %v1156_v31 = vshll.u32 %v6281_v18, 16  ;;  %v1133_v34 = vsel %vm7335_vm6, %v1125_v7, %v1132_v20  ;;  %v1384_v35 = vsel %vm7341_vm7, %v1134_v22, %v1383_v16  ;;  %v1397_v59 = vld [vmem:[#allocation2 + $0x14c] sm:$0x1]  ;;  %v1404_v13 = vld [vmem:[#allocation2 + $0x158] sm:$0x1] }
  0xd5   : > { %v1387_v36 = vsel %vm7329_vm5, %v1141_v23, %v1386_v17  ;;  %v6282_v37 = vpack.c.bf16 %v905_v19, %v905_v19  ;;  %1382 = vst.msk [vmem:[#allocation2 + $0xb8] sm:$0xf] %vm208_vm0, %v1133_v34  ;;  %1385 = vst [vmem:[#allocation2 + $0xbc] sm:$0x1] %v1384_v35  ;;  %v1146_v38 = vrot.slane %v1144_v28, 7  ;;  %v6283_v40 = vpack.c.bf16 %v906_v25, %v906_v25  ;;  %v911_v7 = vld [vmem:[#allocation4 + $0x1b8] sm:$0xff] }
  0xd6   : > { %1388 = vst [vmem:[#allocation2 + $0xc0] sm:$0xf] %v1387_v36  ;;  %v1155_v39 = vrot.slane %v1153_v30, 7  ;;  %v6284_v41 = vpack.c.bf16 %v907_v27, %v907_v27  ;;  %v6285_v46 = vpack.c.bf16 %v908_v32, %v908_v32  ;;  %v6286_v47 = vpack.c.bf16 %v909_v33, %v909_v33  ;;  %v1407_v20 = vld [vmem:[#allocation2 + $0x15c] sm:$0xf]  ;;  %v914_v36 = vld [vmem:[#allocation4 + $0x1d0] sm:$0xff] }
  0xd7   : > { %v1161_v44 = vshrl.u32 %v6282_v37, 16  ;;  %v1164_v45 = vshll.u32 %v6282_v37, 16  ;;  %v1149_v48 = vor.u32 %v1147_v29, %v1146_v38  ;;  %v1151_v49 = vrot.slane %v1146_v38, 4  ;;  %v1411_v30 = vld [vmem:[#allocation2 + $0x164] sm:$0x1]  ;;  %v913_v35 = vld [vmem:[#allocation4 + $0x1c8] sm:$0xff] }
  0xd8   : > { %v1158_v50 = vor.u32 %v1156_v31, %v1155_v39  ;;  %v1159_v51 = vrot.slane %v1155_v39, 4  ;;  %v1170_v53 = vshrl.u32 %v6283_v40, 16  ;;  %v1173_v54 = vshll.u32 %v6283_v40, 16 }
  0xd9   : > { %v1163_v52 = vrot.slane %v1161_v44, 7  ;;  %v1178_v55 = vshrl.u32 %v6284_v41, 16  ;;  %v1150_v56 = vsel %vm7335_vm6, %v1142_v24, %v1149_v48  ;;  %v1391_v57 = vsel %vm7341_vm7, %v1151_v49, %v1390_v42  ;;  %v916_v42 = vld [vmem:[#allocation4 + $0x1e0] sm:$0xff] }
  0xda   : > { %v1394_v58 = vsel %vm7329_vm5, %v1158_v50, %v1393_v43  ;;  %v1181_v60 = vshll.u32 %v6284_v41, 16  ;;  %1389 = vst.msk [vmem:[#allocation2 + $0xc4] sm:$0xf] %vm208_vm0, %v1150_v56  ;;  %1392 = vst [vmem:[#allocation2 + $0xc8] sm:$0x1] %v1391_v57  ;;  %v1172_v63 = vrot.slane %v1170_v53, 7  ;;  %v6287_v22 = vpack.c.bf16 %v910_v2, %v910_v2 }
  0xdb   : > { %1395 = vst [vmem:[#allocation2 + $0x144] sm:$0xf] %v1394_v58  ;;  %v1166_v61 = vor.u32 %v1164_v45, %v1163_v52  ;;  %v1168_v62 = vrot.slane %v1163_v52, 4  ;;  %v1180_v1 = vrot.slane %v1178_v55, 7  ;;  %v1187_v3 = vshrl.u32 %v6285_v46, 16  ;;  %v915_v41 = vld [vmem:[#allocation4 + $0x1d8] sm:$0xff] }
  0xdc   : > { %v1190_v4 = vshll.u32 %v6285_v46, 16  ;;  %v1195_v5 = vshrl.u32 %v6286_v47, 16  ;;  %v1198_v6 = vshll.u32 %v6286_v47, 16  ;;  %v1175_v11 = vor.u32 %v1173_v54, %v1172_v63  ;;  %v1414_v47 = vld [vmem:[#allocation2 + $0x168] sm:$0xf]  ;;  %v917_v2 = vld [vmem:[#allocation4 + $0x1e8] sm:$0xff] }
  0xdd   : > { %v1167_v9 = vsel %vm7335_vm6, %v1159_v51, %v1166_v61  ;;  %v1398_v10 = vsel %vm7341_vm7, %v1168_v62, %v1397_v59  ;;  %v1176_v12 = vrot.slane %v1172_v63, 4  ;;  %v1183_v14 = vor.u32 %v1181_v60, %v1180_v1  ;;  %v1418_v54 = vld [vmem:[#allocation2 + $0x170] sm:$0x1]  ;;  %v1421_v55 = vld [vmem:[#allocation2 + $0x174] sm:$0xf] }
  0xde   : > { %1396 = vst.msk [vmem:[#allocation2 + $0x148] sm:$0xf] %vm208_vm0, %v1167_v9  ;;  %1399 = vst [vmem:[#allocation2 + $0x14c] sm:$0x1] %v1398_v10  ;;  %v1185_v16 = vrot.slane %v1180_v1, 4  ;;  %v1189_v17 = vrot.slane %v1187_v3, 7  ;;  %v1401_v19 = vsel %vm7329_vm5, %v1175_v11, %v1400_v0  ;;  %v6288_v23 = vpack.c.bf16 %v911_v7, %v911_v7 }
  0xdf   : > { %v1197_v18 = vrot.slane %v1195_v5, 7  ;;  %v6289_v24 = vpack.c.bf16 %v912_v8, %v912_v8  ;;  %1402 = vst [vmem:[#allocation2 + $0x150] sm:$0xf] %v1401_v19  ;;  %v1184_v25 = vsel %vm7335_vm6, %v1176_v12, %v1183_v14  ;;  %v1204_v33 = vshrl.u32 %v6287_v22, 16  ;;  %v918_v3 = vld [vmem:[#allocation4 + $0x1f0] sm:$0xff] }
  0xe0   : > { %v1405_v27 = vsel %vm7341_vm7, %v1185_v16, %v1404_v13  ;;  %v1192_v28 = vor.u32 %v1190_v4, %v1189_v17  ;;  %v1193_v29 = vrot.slane %v1189_v17, 4  ;;  %1403 = vst.msk [vmem:[#allocation2 + $0x154] sm:$0xf] %vm208_vm0, %v1184_v25  ;;  %v1207_v34 = vshll.u32 %v6287_v22, 16  ;;  %v1425_v12 = vld [vmem:[#allocation2 + $0x17c] sm:$0x1] }
  0xe1   : > { %1406 = vst [vmem:[#allocation2 + $0x158] sm:$0x1] %v1405_v27  ;;  %v1200_v31 = vor.u32 %v1198_v6, %v1197_v18  ;;  %v1202_v32 = vrot.slane %v1197_v18, 4  ;;  %v1212_v38 = vshrl.u32 %v6288_v23, 16  ;;  %v1215_v39 = vshll.u32 %v6288_v23, 16 }
  0xe2   : > { %v1408_v37 = vsel %vm7329_vm5, %v1192_v28, %v1407_v20  ;;  %v1221_v40 = vshrl.u32 %v6289_v24, 16  ;;  %v1206_v45 = vrot.slane %v1204_v33, 7  ;;  %v1224_v46 = vshll.u32 %v6289_v24, 16  ;;  %v1428_v13 = vld [vmem:[#allocation2 + $0x180] sm:$0xf] }
  0xe3   : > { %1409 = vst [vmem:[#allocation2 + $0x15c] sm:$0xf] %v1408_v37  ;;  %v1201_v43 = vsel %vm7335_vm6, %v1193_v29, %v1200_v31  ;;  %v1412_v44 = vsel %vm7341_vm7, %v1202_v32, %v1411_v30  ;;  %v1214_v48 = vrot.slane %v1212_v38, 7  ;;  %v6290_v50 = vpack.c.bf16 %v913_v35, %v913_v35  ;;  %v919_v29 = vld [vmem:[#allocation4 + $0x1f8] sm:$0xff] }
  0xe4   : > { %1410 = vst.msk [vmem:[#allocation2 + $0x160] sm:$0xf] %vm208_vm0, %v1201_v43  ;;  %1413 = vst [vmem:[#allocation2 + $0x164] sm:$0x1] %v1412_v44  ;;  %v1223_v49 = vrot.slane %v1221_v40, 7  ;;  %v6291_v51 = vpack.c.bf16 %v914_v36, %v914_v36  ;;  %v1209_v52 = vor.u32 %v1207_v34, %v1206_v45  ;;  %v1210_v53 = vrot.slane %v1206_v45, 4 }
  0xe5   : > { %v6292_v56 = vpack.c.bf16 %v915_v41, %v915_v41  ;;  %v6293_v57 = vpack.c.bf16 %v916_v42, %v916_v42  ;;  %v1217_v58 = vor.u32 %v1215_v39, %v1214_v48  ;;  %v1219_v59 = vrot.slane %v1214_v48, 4  ;;  %v1432_v33 = vld [vmem:[#allocation2 + $0x188] sm:$0x1]  ;;  %v1435_v34 = vld [vmem:[#allocation2 + $0x18c] sm:$0xf] }
  0xe6   : > { %v1226_v60 = vor.u32 %v1224_v46, %v1223_v49  ;;  %v1227_v61 = vrot.slane %v1223_v49, 4  ;;  %v1415_v62 = vsel %vm7329_vm5, %v1209_v52, %v1414_v47  ;;  %v1229_v63 = vshrl.u32 %v6290_v50, 16  ;;  %v1439_v47 = vld [vmem:[#allocation2 + $0x194] sm:$0x1]  ;;  %v1442_v48 = vld [vmem:[#allocation2 + $0x198] sm:$0xf] }
  0xe7   : > { %v1232_v0 = vshll.u32 %v6290_v50, 16  ;;  %v1238_v1 = vshrl.u32 %v6291_v51, 16  ;;  %1416 = vst [vmem:[#allocation2 + $0x168] sm:$0xf] %v1415_v62  ;;  %v1218_v4 = vsel %vm7335_vm6, %v1210_v53, %v1217_v58  ;;  %v1419_v5 = vsel %vm7341_vm7, %v1219_v59, %v1418_v54  ;;  %v1446_v59 = vld [vmem:[#allocation2 + $0x1a0] sm:$0x1] }
  0xe8   : > { %v1422_v6 = vsel %vm7329_vm5, %v1226_v60, %v1421_v55  ;;  %v1241_v7 = vshll.u32 %v6291_v51, 16  ;;  %1417 = vst.msk [vmem:[#allocation2 + $0x16c] sm:$0xf] %vm208_vm0, %v1218_v4  ;;  %1420 = vst [vmem:[#allocation2 + $0x170] sm:$0x1] %v1419_v5  ;;  %v1231_v8 = vrot.slane %v1229_v63, 7  ;;  %v6294_v17 = vpack.c.bf16 %v917_v2, %v917_v2 }
  0xe9   : > { %1423 = vst [vmem:[#allocation2 + $0x174] sm:$0xf] %v1422_v6  ;;  %v1240_v9 = vrot.slane %v1238_v1, 7  ;;  %v1246_v10 = vshrl.u32 %v6292_v56, 16  ;;  %v1249_v11 = vshll.u32 %v6292_v56, 16  ;;  %v1255_v14 = vshrl.u32 %v6293_v57, 16 }
  0xea   : > { %v1258_v16 = vshll.u32 %v6293_v57, 16  ;;  %v6295_v18 = vpack.c.bf16 %v918_v3, %v918_v3  ;;  %v1234_v19 = vor.u32 %v1232_v0, %v1231_v8  ;;  %v1236_v20 = vrot.slane %v1231_v8, 4 }
  0xeb   : > { %v1243_v22 = vor.u32 %v1241_v7, %v1240_v9  ;;  %v1244_v23 = vrot.slane %v1240_v9, 4  ;;  %v1248_v24 = vrot.slane %v1246_v10, 7  ;;  %v1257_v25 = vrot.slane %v1255_v14, 7 }
  0xec   : > { %v1263_v27 = vshrl.u32 %v6294_v17, 16  ;;  %v1266_v28 = vshll.u32 %v6294_v17, 16  ;;  %v1235_v30 = vsel %vm7335_vm6, %v1227_v61, %v1234_v19  ;;  %v1426_v31 = vsel %vm7341_vm7, %v1236_v20, %v1425_v12 }
  0xed   : > { %v1429_v32 = vsel %vm7329_vm5, %v1243_v22, %v1428_v13  ;;  %v1272_v35 = vshrl.u32 %v6295_v18, 16  ;;  %1424 = vst.msk [vmem:[#allocation2 + $0x178] sm:$0xf] %vm208_vm0, %v1235_v30  ;;  %1427 = vst [vmem:[#allocation2 + $0x17c] sm:$0x1] %v1426_v31  ;;  %v1251_v36 = vor.u32 %v1249_v11, %v1248_v24  ;;  %v1253_v37 = vrot.slane %v1248_v24, 4 }
  0xee   : > { %1430 = vst [vmem:[#allocation2 + $0x180] sm:$0xf] %v1429_v32  ;;  %v1260_v38 = vor.u32 %v1258_v16, %v1257_v25  ;;  %v1261_v39 = vrot.slane %v1257_v25, 4  ;;  %v1265_v40 = vrot.slane %v1263_v27, 7  ;;  %v1275_v42 = vshll.u32 %v6295_v18, 16 }
  0xef   : > { %v1274_v41 = vrot.slane %v1272_v35, 7  ;;  %v6296_v43 = vpack.c.bf16 %v919_v29, %v919_v29  ;;  %v1252_v44 = vsel %vm7335_vm6, %v1244_v23, %v1251_v36  ;;  %v1433_v45 = vsel %vm7341_vm7, %v1253_v37, %v1432_v33 }
  0xf0   : > { %v1436_v46 = vsel %vm7329_vm5, %v1260_v38, %v1435_v34  ;;  %1431 = vst.msk [vmem:[#allocation2 + $0x184] sm:$0xf] %vm208_vm0, %v1252_v44  ;;  %1434 = vst [vmem:[#allocation2 + $0x188] sm:$0x1] %v1433_v45  ;;  %v1268_v49 = vor.u32 %v1266_v28, %v1265_v40  ;;  %v1270_v50 = vrot.slane %v1265_v40, 4 }
  0xf1   : > { %1437 = vst [vmem:[#allocation2 + $0x18c] sm:$0xf] %v1436_v46  ;;  %v1277_v51 = vor.u32 %v1275_v42, %v1274_v41  ;;  %v1280_v52 = vshrl.u32 %v6296_v43, 16  ;;  %v1283_v53 = vshll.u32 %v6296_v43, 16  ;;  %v1278_v57 = vrot.slane %v1274_v41, 4 }
  0xf2   : > { %v1269_v54 = vsel %vm7335_vm6, %v1261_v39, %v1268_v49  ;;  %v1440_v55 = vsel %vm7341_vm7, %v1270_v50, %v1439_v47 }
  0xf3   : > { %v1443_v56 = vsel %vm7329_vm5, %v1277_v51, %v1442_v48  ;;  %1438 = vst.msk [vmem:[#allocation2 + $0x190] sm:$0xf] %vm208_vm0, %v1269_v54  ;;  %1441 = vst [vmem:[#allocation2 + $0x194] sm:$0x1] %v1440_v55  ;;  %v1282_v58 = vrot.slane %v1280_v52, 7 }
  0xf4   : > { %1444 = vst [vmem:[#allocation2 + $0x198] sm:$0xf] %v1443_v56 }
  0xf5   : > { %v1285_v60 = vor.u32 %v1283_v53, %v1282_v58  ;;  %v1287_v61 = vrot.slane %v1282_v58, 4 }
  0xf7   : > { %v1286_v62 = vsel %vm7335_vm6, %v1278_v57, %v1285_v60  ;;  %v1447_v63 = vsel %vm7341_vm7, %v1287_v61, %v1446_v59 }
  0xf8   : > { %1445 = vst.msk [vmem:[#allocation2 + $0x19c] sm:$0xf] %vm208_vm0, %v1286_v62  ;;  %1448 = vst [vmem:[#allocation2 + $0x1a0] sm:$0x1] %v1447_v63 }
  0xf9 PF: > { %s6297_s27 = smul.u32 96, %s6998_s19  ;;  %vm1648_vm8 = vsmask.f32 3328  ;;  %vm1649_vm9 = vsmask.f32 7440  ;;  %v6710_v15 = vld [vmem:[#allocation7 + $0x40] sm:$0xff]  }
  0xfa   : > { %6300 = vmatprep.subr.bf16.mxu0 %v6710_v15  ;;  %6584 = vmatprep.subr.bf16.mxu1 %v6710_v15  ;;  %s6942_s5 = smov 64   ;;  %vm7591_vm10 = vmor %vm1648_vm8, %vm1649_vm9  ;;  %vm2244_vm11 = vcmask 1042432   ;;  %vm2245_vm12 = vcmask 1046532   ;;  %vm1583_vm14 = vcmask 523264   ;;  %vm2131_vm15 = vcmask 1048064   ;;  %s5475_s7 = scalar_lea.sflag [#allocation6], %s195_s30 }
  0xfb   : > { %s7574_s28 = scalar_lea.vmem [#allocation2], %s6297_s27  ;;  %vm7674_vm13 = vmor %vm2244_vm11, %vm2245_vm12 }
  0xff   : > { %v6694_v21 = vld [vmem:[%s7574_s28 + $0xc] sm:$0xff]   ;;  %v6695_v26 = vld [vmem:[%s7574_s28 + $0x114] sm:$0xff]   ;;  %v1600_v0 = vld [vmem:[%s7574_s28] sm:$0xf] }
 0x100   : > { %2555 = vrot.lane.b32.xlu0 %v6694_v21, %s6942_s5  ;;  %v1601_v1 = vld [vmem:[%s7574_s28 + $0x4] sm:$0xf]  ;;  %v1602_v2 = vld [vmem:[%s7574_s28 + $0x8] sm:$0x1]  ;;  %v1652_v3 = vshrl.u32 %v1600_v0, 16  ;;  %v1655_v4 = vshll.u32 %v1600_v0, 16 }
 0x101   : > { %v1661_v5 = vshll.u32 %v1601_v1, 16  ;;  %v1665_v6 = vshrl.u32 %v1601_v1, 16  ;;  %v1671_v7 = vshll.u32 %v1602_v2, 16  ;;  %v6696_v8 = vld [vmem:[%s7574_s28 + $0x18] sm:$0xff]   ;;  %v1636_v9 = vld [vmem:[%s7574_s28 + $0x108] sm:$0xf] }
 0x102   : > { %v1654_v10 = vrot.slane %v1652_v3, 4  ;;  %v1657_v11 = vrot.slane %v1655_v4, 5  ;;  %v1637_v14 = vld [vmem:[%s7574_s28 + $0x10c] sm:$0xf]  ;;  %v1638_v17 = vld [vmem:[%s7574_s28 + $0x110] sm:$0x1] }
 0x103   : > { %v1663_v12 = vrot.slane %v1661_v5, 5  ;;  %v1667_v13 = vrot.slane %v1665_v6, 4  ;;  %v1673_v16 = vrot.slane %v1671_v7, 5  ;;  %v1940_v18 = vshrl.u32 %v1636_v9, 16  ;;  %v1603_v27 = vld [vmem:[%s7574_s28 + $0xc] sm:$0xf] }
 0x104   : > { %2579 = vrot.lane.b32.xlu0 %v6695_v26, %s6942_s5  ;;  %v1943_v19 = vshll.u32 %v1636_v9, 16  ;;  %v1949_v20 = vshll.u32 %v1637_v14, 16  ;;  %v1658_v22 = vor.u32 %v1657_v11, %v1654_v10  ;;  %v1953_v24 = vshrl.u32 %v1637_v14, 16  ;;  %v1604_v28 = vld [vmem:[%s7574_s28 + $0x10] sm:$0xf]  ;;  %v6697_v3 = vld [vmem:[%s7574_s28 + $0x120] sm:$0xff]  }
 0x105   : > { %v1668_v23 = vor.u32 %v1667_v13, %v1663_v12  ;;  %v1959_v25 = vshll.u32 %v1638_v17, 16  ;;  %v1942_v30 = vrot.slane %v1940_v18, 4  ;;  %v1605_v33 = vld [vmem:[%s7574_s28 + $0x14] sm:$0x1]  ;;  %v1676_v34 = vshrl.u32 %v1603_v27, 16 }
 0x106   : > { %v1945_v31 = vrot.slane %v1943_v19, 5  ;;  %v1951_v32 = vrot.slane %v1949_v20, 5  ;;  %v1659_v35 = vrot.slane %v1658_v22, 4  ;;  %v1955_v37 = vrot.slane %v1953_v24, 4  ;;  %v1639_v51 = vld [vmem:[%s7574_s28 + $0x114] sm:$0xf] }
 0x107   : > { %v1669_v36 = vrot.slane %v1668_v23, 4  ;;  %v1961_v38 = vrot.slane %v1959_v25, 5  ;;  %v1678_v40 = vrot.slane %v1676_v34, 4  ;;  %v1679_v41 = vshll.u32 %v1603_v27, 16  ;;  %v1640_v55 = vld [vmem:[%s7574_s28 + $0x118] sm:$0xf] }
 0x108   : > { %2557 = vrot.lane.b32.xlu0 %v6696_v8, %s6942_s5  ;;  %v1946_v39 = vor.u32 %v1945_v31, %v1942_v30  ;;  %v1685_v42 = vshll.u32 %v1604_v28, 16  ;;  %v1664_v43 = vsel %vm7591_vm10, %v1659_v35, %v1663_v12  ;;  %v1956_v45 = vor.u32 %v1955_v37, %v1951_v32  ;;  %v1641_v59 = vld [vmem:[%s7574_s28 + $0x11c] sm:$0x1]  ;;  %v1606_v62 = vld [vmem:[%s7574_s28 + $0x18] sm:$0xf] }
 0x109   : > { %v1674_v44 = vsel %vm7591_vm10, %v1669_v36, %v1673_v16  ;;  %v1689_v46 = vshrl.u32 %v1604_v28, 16  ;;  %v1681_v49 = vrot.slane %v1679_v41, 5  ;;  %v1695_v54 = vshll.u32 %v1605_v33, 16  ;;  %v1607_v0 = vld [vmem:[%s7574_s28 + $0x1c] sm:$0xf]  ;;  %v6698_v28 = vld [vmem:[%s7574_s28 + $0x24] sm:$0xff]  }
 0x10a   : > { %v5735_v47 = vcombine.low %v1664_v43, %v1674_v44  ;;  %v1947_v48 = vrot.slane %v1946_v39, 4  ;;  %v1687_v50 = vrot.slane %v1685_v42, 5  ;;  %v1957_v52 = vrot.slane %v1956_v45, 4  ;;  %v1608_v6 = vld [vmem:[%s7574_s28 + $0x20] sm:$0x1] }
 0x10b   : > { %v1691_v53 = vrot.slane %v1689_v46, 4  ;;  %v1964_v56 = vshrl.u32 %v1639_v51, 16  ;;  %v1682_v58 = vor.u32 %v1681_v49, %v1678_v40  ;;  %v1967_v60 = vshll.u32 %v1639_v51, 16  ;;  %v1642_v20 = vld [vmem:[%s7574_s28 + $0x120] sm:$0xf] }
 0x10c   : > { %2083 = vrot.lane.b32.xlu1 %v5735_v47, %s6942_s5  ;;  %v1952_v57 = vsel %vm7591_vm10, %v1947_v48, %v1951_v32  ;;  %v1973_v61 = vshll.u32 %v1640_v55, 16  ;;  %v1962_v63 = vsel %vm7591_vm10, %v1957_v52, %v1961_v38  ;;  %v1697_v21 = vrot.slane %v1695_v54, 5  ;;  %v1643_v27 = vld [vmem:[%s7574_s28 + $0x124] sm:$0xf]  ;;  %v1644_v36 = vld [vmem:[%s7574_s28 + $0x128] sm:$0x1] }
 0x10d   : > { %v1692_v15 = vor.u32 %v1691_v53, %v1687_v50  ;;  %v1966_v26 = vrot.slane %v1964_v56, 4  ;;  %v5747_v1 = vcombine.low %v1952_v57, %v1962_v63  ;;  %v1683_v2 = vrot.slane %v1682_v58, 4  ;;  %v1609_v39 = vld [vmem:[%s7574_s28 + $0x24] sm:$0xf]  ;;  %v1610_v44 = vld [vmem:[%s7574_s28 + $0x28] sm:$0xf] }
 0x10e   : > { %v1969_v4 = vrot.slane %v1967_v60, 5  ;;  %v1975_v5 = vrot.slane %v1973_v61, 5  ;;  %v1977_v8 = vshrl.u32 %v1640_v55, 16  ;;  %v1983_v9 = vshll.u32 %v1641_v59, 16  ;;  %v1611_v49 = vld [vmem:[%s7574_s28 + $0x2c] sm:$0x1] }
 0x10f   : > { %v1693_v7 = vrot.slane %v1692_v15, 4  ;;  %v1700_v10 = vshrl.u32 %v1606_v62, 16  ;;  %v1688_v11 = vsel %vm7591_vm10, %v1683_v2, %v1687_v50  ;;  %v1703_v13 = vshll.u32 %v1606_v62, 16  ;;  %v1645_v58 = vld [vmem:[%s7574_s28 + $0x12c] sm:$0xf] }
 0x110   : > { %2107 = vrot.lane.b32.xlu1 %v5747_v1, %s6942_s5  ;;  %v1970_v12 = vor.u32 %v1969_v4, %v1966_v26  ;;  %v1709_v14 = vshll.u32 %v1607_v0, 16  ;;  %v1979_v17 = vrot.slane %v1977_v8, 4  ;;  %v1985_v18 = vrot.slane %v1983_v9, 5  ;;  %v6699_v63 = vld [vmem:[%s7574_s28 + $0x12c] sm:$0xff]  }
 0x111   : > { %v1698_v16 = vsel %vm7591_vm10, %v1693_v7, %v1697_v21  ;;  %v1702_v19 = vrot.slane %v1700_v10, 4  ;;  %v1705_v24 = vrot.slane %v1703_v13, 5  ;;  %v1713_v31 = vshrl.u32 %v1607_v0, 16  ;;  %v1646_v4 = vld [vmem:[%s7574_s28 + $0x130] sm:$0xf] }
 0x112   : > { %v5736_v22 = vcombine.low %v1688_v11, %v1698_v16  ;;  %v1971_v23 = vrot.slane %v1970_v12, 4  ;;  %v1711_v25 = vrot.slane %v1709_v14, 5  ;;  %v1980_v30 = vor.u32 %v1979_v17, %v1975_v5  ;;  %v1647_v10 = vld [vmem:[%s7574_s28 + $0x134] sm:$0x1]  ;;  %v1612_v16 = vld [vmem:[%s7574_s28 + $0x30] sm:$0xf] }
 0x113   : > { %v1719_v32 = vshll.u32 %v1608_v6, 16  ;;  %v1988_v33 = vshrl.u32 %v1642_v20, 16  ;;  %v1706_v35 = vor.u32 %v1705_v24, %v1702_v19  ;;  %v1991_v37 = vshll.u32 %v1642_v20, 16  ;;  %v6700_v17 = vld [vmem:[%s7574_s28 + $0x30] sm:$0xff]  }
 0x114   : > { %2085 = vrot.lane.b32.xlu0 %v5736_v22, %s6942_s5  ;;  %2581 = vrot.lane.b32.xlu1 %v6697_v3, %s6942_s5  ;;  %v1976_v34 = vsel %vm7591_vm10, %v1971_v23, %v1975_v5  ;;  %v1997_v38 = vshll.u32 %v1643_v27, 16  ;;  %v1981_v40 = vrot.slane %v1980_v30, 4  ;;  %v1715_v41 = vrot.slane %v1713_v31, 4  ;;  %v1613_v23 = vld [vmem:[%s7574_s28 + $0x34] sm:$0xf] }
 0x115   : > { %v1721_v42 = vrot.slane %v1719_v32, 5  ;;  %v1990_v43 = vrot.slane %v1988_v33, 4  ;;  %v1707_v45 = vrot.slane %v1706_v35, 4  ;;  %v1993_v46 = vrot.slane %v1991_v37, 5  ;;  %v1614_v30 = vld [vmem:[%s7574_s28 + $0x38] sm:$0x1] }
 0x116   : > { %v1999_v47 = vrot.slane %v1997_v38, 5  ;;  %v2001_v48 = vshrl.u32 %v1643_v27, 16  ;;  %v1986_v50 = vsel %vm7591_vm10, %v1981_v40, %v1985_v18  ;;  %v1716_v51 = vor.u32 %v1715_v41, %v1711_v25 }
 0x117   : > { %v2007_v52 = vshll.u32 %v1644_v36, 16  ;;  %v1724_v53 = vshrl.u32 %v1609_v39, 16  ;;  %v5748_v54 = vcombine.low %v1976_v34, %v1986_v50  ;;  %v1712_v55 = vsel %vm7591_vm10, %v1707_v45, %v1711_v25  ;;  %v6711_v50 = vld [vmem:[#allocation7] sm:$0xff]  }
 0x118   : > { %2559 = vrot.lane.b32.xlu0 %v6698_v28, %s6942_s5  ;;  %v1994_v56 = vor.u32 %v1993_v46, %v1990_v43  ;;  %v2003_v57 = vrot.slane %v2001_v48, 4  ;;  %v1717_v59 = vrot.slane %v1716_v51, 4  ;;  %v1727_v62 = vshll.u32 %v1609_v39, 16  ;;  %v6701_v39 = vld [vmem:[%s7574_s28 + $0x138] sm:$0xff]   ;;  %6301 = vmatpush3.bf16.msra.mxu0 %v6711_v50 }
 0x119   : > { %v2009_v60 = vrot.slane %v2007_v52, 5  ;;  %v1726_v61 = vrot.slane %v1724_v53, 4  ;;  %2109 = vrot.lane.b32.xlu1 %v5748_v54, %s6942_s5  ;;  %v1733_v26 = vshll.u32 %v1610_v44, 16  ;;  %v1737_v0 = vshrl.u32 %v1610_v44, 16  ;;  %v6027_v44 = vld [vmem:[%s7574_s28 + $0x18] sm:$0xf]  ;;  %6592 = vmatpush3.bf16.msra.mxu1 %v6711_v50 }
 0x11a   : > { %v1995_v15 = vrot.slane %v1994_v56, 4  ;;  %v2004_v21 = vor.u32 %v2003_v57, %v1999_v47  ;;  %v1722_v1 = vsel %vm7591_vm10, %v1717_v59, %v1721_v42  ;;  %v1729_v2 = vrot.slane %v1727_v62, 5  ;;  %v6702_v52 = vld [vmem:[%s7574_s28 + $0x3c] sm:$0xff]   ;;  %v5897_v62 = vld [vmem:[%s7574_s28 + $0xc] sm:$0xe] }
 0x11b   : > { %v1743_v3 = vshll.u32 %v1611_v49, 16  ;;  %v2012_v5 = vshrl.u32 %v1645_v58, 16  ;;  %v5737_v6 = vcombine.low %v1712_v55, %v1722_v1  ;;  %v1735_v9 = vrot.slane %v1733_v26, 5  ;;  %v6028_v49 = vld [vmem:[%s7574_s28 + $0x1c] sm:$0xf] }
 0x11c   : > { %v2000_v7 = vsel %vm7591_vm10, %v1995_v15, %v1999_v47  ;;  %v2005_v8 = vrot.slane %v2004_v21, 4  ;;  %v1730_v11 = vor.u32 %v1729_v2, %v1726_v61  ;;  %v1739_v12 = vrot.slane %v1737_v0, 4  ;;  %v6029_v56 = vld [vmem:[%s7574_s28 + $0x20] sm:$0x1]  ;;  %v6712_v57 = vld [vmem:[#allocation7 + $0x48] sm:$0xff]  }
 0x11d   : > { %v1745_v13 = vrot.slane %v1743_v3, 5  ;;  %v2014_v14 = vrot.slane %v2012_v5, 4  ;;  %2087 = vrot.lane.b32.xlu0 %v5737_v6, %s6942_s5  ;;  %2583 = vrot.lane.b32.xlu1 %v6699_v63, %s6942_s5  ;;  %v2015_v19 = vshll.u32 %v1645_v58, 16  ;;  %v2021_v20 = vshll.u32 %v1646_v4, 16  ;;  %v6713_v63 = vld [vmem:[#allocation7 + $0x8] sm:$0xff]  }
 0x11e   : > { %v2010_v18 = vsel %vm7591_vm10, %v2005_v8, %v2009_v60  ;;  %v2025_v22 = vshrl.u32 %v1646_v4, 16  ;;  %v1731_v25 = vrot.slane %v1730_v11, 4  ;;  %v1740_v27 = vor.u32 %v1739_v12, %v1735_v9  ;;  %v5898_v1 = vld [vmem:[%s7574_s28 + $0x10] sm:$0xf]  ;;  %v5899_v2 = vld [vmem:[%s7574_s28 + $0x14] sm:$0x1]  ;;  %6302 = vmatprep.subr.bf16.mxu0 %v6712_v57  ;;  %6585 = vmatprep.subr.bf16.mxu1 %v6712_v57 }
 0x11f   : > { %v5749_v24 = vcombine.low %v2000_v7, %v2010_v18  ;;  %v2031_v28 = vshll.u32 %v1647_v10, 16  ;;  %v2017_v31 = vrot.slane %v2015_v19, 5  ;;  %v2023_v32 = vrot.slane %v2021_v20, 5  ;;  %v1615_v7 = vld [vmem:[%s7574_s28 + $0x3c] sm:$0xf]  ;;  %6303 = vmatpush3.bf16.msra.mxu0 %v6713_v63  ;;  %6593 = vmatpush3.bf16.msra.mxu1 %v6713_v63  ;;  %v6714_v18 = vld [vmem:[#allocation7 + $0x50] sm:$0xff]  }
 0x120   : > { %v2027_v33 = vrot.slane %v2025_v22, 4  ;;  %v1748_v34 = vshrl.u32 %v1612_v16, 16  ;;  %v1736_v35 = vsel %vm7591_vm10, %v1731_v25, %v1735_v9  ;;  %v1741_v36 = vrot.slane %v1740_v27, 4  ;;  %v6715_v25 = vld [vmem:[#allocation7 + $0x10] sm:$0xff]   ;;  %6304 = vmatprep.subr.bf16.mxu0 %v6714_v18  ;;  %6586 = vmatprep.subr.bf16.mxu1 %v6714_v18  ;;  %v5900_v50 = vld [vmem:[%s7574_s28 + $0x18] sm:$0xe] }
 0x121   : > { %v2033_v37 = vrot.slane %v2031_v28, 5  ;;  %v1751_v38 = vshll.u32 %v1612_v16, 16  ;;  %2561 = vrot.lane.b32.xlu0 %v6700_v17, %s6942_s5  ;;  %2111 = vrot.lane.b32.xlu1 %v5749_v24, %s6942_s5  ;;  %v2018_v40 = vor.u32 %v2017_v31, %v2014_v14  ;;  %v1757_v43 = vshll.u32 %v1613_v23, 16  ;;  %v1616_v24 = vld [vmem:[%s7574_s28 + $0x40] sm:$0xf] }
 0x122   : > { %v2028_v41 = vor.u32 %v2027_v33, %v2023_v32  ;;  %v1750_v42 = vrot.slane %v1748_v34, 4  ;;  %v1746_v45 = vsel %vm7591_vm10, %v1741_v36, %v1745_v13  ;;  %v1761_v47 = vshrl.u32 %v1613_v23, 16  ;;  %v1617_v36 = vld [vmem:[%s7574_s28 + $0x44] sm:$0x1]  ;;  %v1620_v18 = vld [vmem:[%s7574_s28 + $0x50] sm:$0x1] }
 0x123   : > { %v1753_v46 = vrot.slane %v1751_v38, 5  ;;  %v1767_v48 = vshll.u32 %v1614_v30, 16  ;;  %v5738_v51 = vcombine.low %v1736_v35, %v1746_v45  ;;  %v2019_v53 = vrot.slane %v2018_v40, 4  ;;  %v6703_v35 = vld [vmem:[%s7574_s28 + $0x48] sm:$0xff]   ;;  %v6030_v38 = vld [vmem:[%s7574_s28 + $0x24] sm:$0xf]  ;;  %6305 = vmatpush3.bf16.msra.mxu0 %v6715_v25  ;;  %6594 = vmatpush3.bf16.msra.mxu1 %v6715_v25 }
 0x124   : > { %v2029_v54 = vrot.slane %v2028_v41, 4  ;;  %v1759_v55 = vrot.slane %v1757_v43, 5  ;;  %v1763_v59 = vrot.slane %v1761_v47, 4  ;;  %v3648_v61 = vshrl.u32 %v6027_v44, 16  ;;  %v6031_v43 = vld [vmem:[%s7574_s28 + $0x28] sm:$0xf] }
 0x125   : > { %v1754_v58 = vor.u32 %v1753_v46, %v1750_v42  ;;  %v1769_v60 = vrot.slane %v1767_v48, 5  ;;  %2089 = vrot.lane.b32.xlu0 %v5738_v51, %s6942_s5  ;;  %2585 = vrot.lane.b32.xlu1 %v6701_v39, %s6942_s5  ;;  %v2024_v15 = vsel %vm7591_vm10, %v2019_v53, %v2023_v32  ;;  %v3651_v26 = vshll.u32 %v6027_v44, 16  ;;  %v6716_v44 = vld [vmem:[#allocation7 + $0x58] sm:$0xff]  }
 0x126   : > { %v2034_v21 = vsel %vm7591_vm10, %v2029_v54, %v2033_v37  ;;  %v3657_v0 = vshll.u32 %v6028_v49, 16  ;;  %v1764_v5 = vor.u32 %v1763_v59, %v1759_v55  ;;  %v3650_v6 = vrot.slane %v3648_v61, 4  ;;  %6306 = vmatprep.subr.bf16.mxu0 %v6716_v44  ;;  %6587 = vmatprep.subr.bf16.mxu1 %v6716_v44  ;;  %v5901_v59 = vld [vmem:[%s7574_s28 + $0x1c] sm:$0xf] }
 0x127   : > { %v5750_v3 = vcombine.low %v2024_v15, %v2034_v21  ;;  %v1755_v4 = vrot.slane %v1754_v58, 4  ;;  %v3653_v8 = vrot.slane %v3651_v26, 5  ;;  %v3661_v10 = vshrl.u32 %v6028_v49, 16  ;;  %v6032_v49 = vld [vmem:[%s7574_s28 + $0x2c] sm:$0x1] }
 0x128   : > { %v3659_v9 = vrot.slane %v3657_v0, 5  ;;  %v3667_v11 = vshll.u32 %v6029_v56, 16  ;;  %v1765_v14 = vrot.slane %v1764_v5, 4  ;;  %v5945_v16 = vrot.slane %v5897_v62, 9  ;;  %v5902_v15 = vld [vmem:[%s7574_s28 + $0x20] sm:$0x1] }
 0x129   : > { %v1760_v13 = vsel %vm7591_vm10, %v1755_v4, %v1759_v55  ;;  %v3229_v17 = vrot.slane %v5898_v1, 5  ;;  %2563 = vrot.lane.b32.xlu0 %v6702_v52, %s6942_s5  ;;  %2113 = vrot.lane.b32.xlu1 %v5750_v3, %s6942_s5  ;;  %v3654_v19 = vor.u32 %v3653_v8, %v3650_v6  ;;  %v3663_v20 = vrot.slane %v3661_v10, 4  ;;  %v1618_v6 = vld [vmem:[%s7574_s28 + $0x48] sm:$0xf] }
 0x12a   : > { %v3669_v22 = vrot.slane %v3667_v11, 5  ;;  %v3232_v23 = vrot.slane %v5899_v2, 5  ;;  %v1770_v27 = vsel %vm7591_vm10, %v1765_v14, %v1769_v60  ;;  %v1772_v31 = vshrl.u32 %v1615_v7, 16  ;;  %v1619_v11 = vld [vmem:[%s7574_s28 + $0x4c] sm:$0xf] }
 0x12b   : > { %v7687_v28 = vsel %vm7674_vm13, %v5945_v16, %v3229_v17  ;;  %v3231_v30 = vrot.slane %v3229_v17, 4  ;;  %v5739_v32 = vcombine.low %v1760_v13, %v1770_v27  ;;  %v3655_v33 = vrot.slane %v3654_v19, 4  ;;  %v6033_v19 = vld [vmem:[%s7574_s28 + $0x30] sm:$0xf] }
 0x12c   : > { %v3664_v34 = vor.u32 %v3663_v20, %v3659_v9  ;;  %v1775_v37 = vshll.u32 %v1615_v7, 16  ;;  %v1774_v40 = vrot.slane %v1772_v31, 4  ;;  %v1781_v41 = vshll.u32 %v1616_v24, 16  ;;  %v6034_v31 = vld [vmem:[%s7574_s28 + $0x34] sm:$0xf] }
 0x12d   : > { %v3233_v39 = vsel %vm7674_vm13, %v3231_v30, %v3232_v23  ;;  %v1785_v42 = vshrl.u32 %v1616_v24, 16  ;;  %2091 = vrot.lane.b32.xlu0 %v5739_v32, %s6942_s5  ;;  %v3660_v45 = vsel %vm7591_vm10, %v3655_v33, %v3659_v9  ;;  %v1791_v53 = vshll.u32 %v1617_v36, 16  ;;  %v6717_v32 = vld [vmem:[#allocation7 + $0x18] sm:$0xff]  }
 0x12e   : > { %v3665_v46 = vrot.slane %v3664_v34, 4  ;;  %v5961_v47 = vcombine.low %v7687_v28, %v3233_v39  ;;  %v1777_v48 = vrot.slane %v1775_v37, 5  ;;  %v1783_v51 = vrot.slane %v1781_v41, 5  ;;  %6307 = vmatpush3.bf16.msra.mxu0 %v6717_v32  ;;  %6595 = vmatpush3.bf16.msra.mxu1 %v6717_v32 }
 0x12f   : > { %v1787_v52 = vrot.slane %v1785_v42, 4  ;;  %v3672_v54 = vshrl.u32 %v6030_v38, 16  ;;  %v3675_v57 = vshll.u32 %v6030_v38, 16  ;;  %v3681_v58 = vshll.u32 %v6031_v43, 16  ;;  %v6035_v42 = vld [vmem:[%s7574_s28 + $0x38] sm:$0x1] }
 0x130   : > { %v3670_v55 = vsel %vm7591_vm10, %v3665_v46, %v3669_v22  ;;  %v1778_v56 = vor.u32 %v1777_v48, %v1774_v40  ;;  %v1793_v62 = vrot.slane %v1791_v53, 5  ;;  %v3685_v1 = vshrl.u32 %v6031_v43, 16  ;;  %v6718_v48 = vld [vmem:[#allocation7 + $0x60] sm:$0xff]   ;;  %v5904_v53 = vld [vmem:[%s7574_s28 + $0x28] sm:$0xf] }
 0x131   : > { %v6075_v60 = vcombine.low %v3660_v45, %v3670_v55  ;;  %v1788_v61 = vor.u32 %v1787_v52, %v1783_v51  ;;  %v3674_v63 = vrot.slane %v3672_v54, 4  ;;  %2565 = vrot.lane.b32.xlu0 %v6703_v35, %s6942_s5  ;;  %v3677_v26 = vrot.slane %v3675_v57, 5  ;;  %v6704_v35 = vld [vmem:[%s7574_s28 + $0x54] sm:$0xff]   ;;  %v5905_v54 = vld [vmem:[%s7574_s28 + $0x2c] sm:$0x1]  ;;  %6308 = vmatprep.subr.bf16.mxu0 %v6718_v48 }
 0x132   : > { %v1779_v21 = vrot.slane %v1778_v56, 4  ;;  %v3683_v0 = vrot.slane %v3681_v58, 5  ;;  %v3691_v3 = vshll.u32 %v6032_v49, 16  ;;  %v5946_v4 = vrot.slane %v5900_v50, 9  ;;  %v6719_v55 = vld [vmem:[#allocation7 + $0x20] sm:$0xff]   ;;  %6588 = vmatprep.subr.bf16.mxu1 %v6718_v48 }
 0x133   : > { %4079 = vrot.lane.b32.xlu1 %v6075_v60, %s6942_s5  ;;  %v1789_v2 = vrot.slane %v1788_v61, 4  ;;  %v3236_v5 = vrot.slane %v5901_v59, 5  ;;  %v3678_v8 = vor.u32 %v3677_v26, %v3674_v63  ;;  %v3687_v9 = vrot.slane %v3685_v1, 4  ;;  %v1621_v60 = vld [vmem:[%s7574_s28 + $0x54] sm:$0xf]  ;;  %6309 = vmatpush3.bf16.msra.mxu0 %v6719_v55 }
 0x134   : > { %v1784_v7 = vsel %vm7591_vm10, %v1779_v21, %v1783_v51  ;;  %v3239_v10 = vrot.slane %v5902_v15, 5  ;;  %v3693_v14 = vrot.slane %v3691_v3, 5  ;;  %v1796_v24 = vshrl.u32 %v1618_v6, 16  ;;  %v1622_v21 = vld [vmem:[%s7574_s28 + $0x58] sm:$0xf]  ;;  %6596 = vmatpush3.bf16.msra.mxu1 %v6719_v55 }
 0x135   : > { %v1794_v13 = vsel %vm7591_vm10, %v1789_v2, %v1793_v62  ;;  %v7715_v16 = vsel %vm7674_vm13, %v5946_v4, %v3236_v5  ;;  %v3238_v17 = vrot.slane %v3236_v5, 4  ;;  %v3679_v22 = vrot.slane %v3678_v8, 4  ;;  %v6720_v3 = vld [vmem:[#allocation7 + $0x68] sm:$0xff]  }
 0x136   : > { %v5740_v20 = vcombine.low %v1784_v7, %v1794_v13  ;;  %v3688_v23 = vor.u32 %v3687_v9, %v3683_v0  ;;  %v1799_v27 = vshll.u32 %v1618_v6, 16  ;;  %v1805_v28 = vshll.u32 %v1619_v11, 16  ;;  %v1623_v7 = vld [vmem:[%s7574_s28 + $0x5c] sm:$0x1]  ;;  %6310 = vmatprep.subr.bf16.mxu0 %v6720_v3  ;;  %6589 = vmatprep.subr.bf16.mxu1 %v6720_v3 }
 0x137   : > { %3387 = vrot.lane.b32.xlu1 %v5961_v47, %s6942_s5  ;;  %v7722_v25 = vsel %vm7674_vm13, %v3238_v17, %v3239_v10  ;;  %v1809_v30 = vshrl.u32 %v1619_v11, 16  ;;  %v3684_v33 = vsel %vm7591_vm10, %v3679_v22, %v3683_v0  ;;  %v1798_v37 = vrot.slane %v1796_v24, 4  ;;  %v5903_v47 = vld [vmem:[%s7574_s28 + $0x24] sm:$0xe] }
 0x138   : > { %2093 = vrot.lane.b32.xlu0 %v5740_v20, %s6942_s5  ;;  %v3689_v34 = vrot.slane %v3688_v23, 4  ;;  %v5962_v36 = vcombine.low %v7715_v16, %v7722_v25  ;;  %v1801_v38 = vrot.slane %v1799_v27, 5  ;;  %v1807_v39 = vrot.slane %v1805_v28, 5  ;;  %v6721_v16 = vld [vmem:[#allocation7 + $0x28] sm:$0xff]   ;;  %v6705_v24 = vld [vmem:[%s7574_s28 + $0x60] sm:$0xff]  }
 0x139   : > { %v1811_v40 = vrot.slane %v1809_v30, 4  ;;  %v1815_v41 = vshll.u32 %v1620_v18, 16  ;;  %v3696_v44 = vshrl.u32 %v6033_v19, 16  ;;  %v3699_v45 = vshll.u32 %v6033_v19, 16  ;;  %v6037_v28 = vld [vmem:[%s7574_s28 + $0x40] sm:$0xf]  ;;  %6311 = vmatpush3.bf16.msra.mxu0 %v6721_v16  ;;  %6597 = vmatpush3.bf16.msra.mxu1 %v6721_v16 }
 0x13a   : > { %v3694_v43 = vsel %vm7591_vm10, %v3689_v34, %v3693_v14  ;;  %v3705_v46 = vshll.u32 %v6034_v31, 16  ;;  %v1802_v50 = vor.u32 %v1801_v38, %v1798_v37  ;;  %v3709_v59 = vshrl.u32 %v6034_v31, 16  ;;  %v6036_v14 = vld [vmem:[%s7574_s28 + $0x3c] sm:$0xf] }
 0x13b   : > { %v6076_v49 = vcombine.low %v3684_v33, %v3694_v43  ;;  %v1812_v51 = vor.u32 %v1811_v40, %v1807_v39  ;;  %v1817_v52 = vrot.slane %v1815_v41, 5  ;;  %v3698_v56 = vrot.slane %v3696_v44, 4  ;;  %v6038_v33 = vld [vmem:[%s7574_s28 + $0x44] sm:$0x1]  ;;  %v5906_v40 = vld [vmem:[%s7574_s28 + $0x30] sm:$0xe] }
 0x13c   : > { %2567 = vrot.lane.b32.xlu0 %v6704_v35, %s6942_s5  ;;  %v3701_v57 = vrot.slane %v3699_v45, 5  ;;  %v3707_v58 = vrot.slane %v3705_v46, 5  ;;  %v1803_v61 = vrot.slane %v1802_v50, 4  ;;  %v3715_v63 = vshll.u32 %v6035_v42, 16  ;;  %v6723_v35 = vld [vmem:[#allocation7 + $0x70] sm:$0xff]  }
 0x13d   : > { %4081 = vrot.lane.b32.xlu1 %v6076_v49, %s6942_s5  ;;  %v1813_v62 = vrot.slane %v1812_v51, 4  ;;  %v5947_v15 = vrot.slane %v5903_v47, 9  ;;  %v3711_v0 = vrot.slane %v3709_v59, 4  ;;  %v3243_v1 = vrot.slane %v5904_v53, 5  ;;  %v5907_v41 = vld [vmem:[%s7574_s28 + $0x34] sm:$0xf]  ;;  %6312 = vmatprep.subr.bf16.mxu0 %v6723_v35 }
 0x13e   : > { %v3702_v26 = vor.u32 %v3701_v57, %v3698_v56  ;;  %v3246_v2 = vrot.slane %v5905_v54, 5  ;;  %v1808_v4 = vsel %vm7591_vm10, %v1803_v61, %v1807_v39  ;;  %v3717_v6 = vrot.slane %v3715_v63, 5  ;;  %v5908_v46 = vld [vmem:[%s7574_s28 + $0x38] sm:$0x1]  ;;  %6590 = vmatprep.subr.bf16.mxu1 %v6723_v35  ;;  %v6724_v51 = vld [vmem:[#allocation7 + $0x30] sm:$0xff]  }
 0x13f   : > { %v1818_v5 = vsel %vm7591_vm10, %v1813_v62, %v1817_v52  ;;  %v1820_v8 = vshrl.u32 %v1621_v60, 16  ;;  %v3712_v11 = vor.u32 %v3711_v0, %v3707_v58  ;;  %v7748_v13 = vsel %vm7674_vm13, %v5947_v15, %v3243_v1  ;;  %v1624_v56 = vld [vmem:[%s7574_s28 + $0xd8] sm:$0xf]  ;;  %v1625_v61 = vld [vmem:[%s7574_s28 + $0xdc] sm:$0xf]  ;;  %6313 = vmatpush3.bf16.msra.mxu0 %v6724_v51  ;;  %6598 = vmatpush3.bf16.msra.mxu1 %v6724_v51 }
 0x140   : > { %v5741_v9 = vcombine.low %v1808_v4, %v1818_v5  ;;  %v3703_v10 = vrot.slane %v3702_v26, 4  ;;  %v3245_v17 = vrot.slane %v3243_v1, 4  ;;  %v1823_v19 = vshll.u32 %v1621_v60, 16  ;;  %v5909_v35 = vld [vmem:[%s7574_s28 + $0x3c] sm:$0xe] }
 0x141   : > { %3389 = vrot.lane.b32.xlu1 %v5962_v36, %s6942_s5  ;;  %v1822_v18 = vrot.slane %v1820_v8, 4  ;;  %v1829_v20 = vshll.u32 %v1622_v21, 16  ;;  %v3713_v23 = vrot.slane %v3712_v11, 4  ;;  %v1833_v25 = vshrl.u32 %v1622_v21, 16  ;;  %v1627_v51 = vld [vmem:[%s7574_s28 + $0xe4] sm:$0xf] }
 0x142   : > { %2095 = vrot.lane.b32.xlu0 %v5741_v9, %s6942_s5  ;;  %v3708_v22 = vsel %vm7591_vm10, %v3703_v10, %v3707_v58  ;;  %v1839_v27 = vshll.u32 %v1623_v7, 16  ;;  %v3247_v30 = vsel %vm7674_vm13, %v3245_v17, %v3246_v2  ;;  %v1825_v31 = vrot.slane %v1823_v19, 5  ;;  %v1626_v2 = vld [vmem:[%s7574_s28 + $0xe0] sm:$0x1]  ;;  %v6039_v9 = vld [vmem:[%s7574_s28 + $0x48] sm:$0xf] }
 0x143   : > { %v1831_v32 = vrot.slane %v1829_v20, 5  ;;  %v3720_v34 = vshrl.u32 %v6036_v14, 16  ;;  %v3718_v36 = vsel %vm7591_vm10, %v3713_v23, %v3717_v6  ;;  %v5963_v37 = vcombine.low %v7748_v13, %v3247_v30  ;;  %v6706_v6 = vld [vmem:[%s7574_s28 + $0xe4] sm:$0xff]   ;;  %v6040_v17 = vld [vmem:[%s7574_s28 + $0x4c] sm:$0xf] }
 0x144   : > { %v1835_v38 = vrot.slane %v1833_v25, 4  ;;  %v1841_v39 = vrot.slane %v1839_v27, 5  ;;  %v6077_v42 = vcombine.low %v3708_v22, %v3718_v36  ;;  %v1826_v43 = vor.u32 %v1825_v31, %v1822_v18  ;;  %v6726_v10 = vld [vmem:[#allocation7 + $0x78] sm:$0xff]   ;;  %v5910_v36 = vld [vmem:[%s7574_s28 + $0x40] sm:$0xf] }
 0x145   : > { %v3722_v44 = vrot.slane %v3720_v34, 4  ;;  %v3723_v45 = vshll.u32 %v6036_v14, 16  ;;  %v3729_v48 = vshll.u32 %v6037_v28, 16  ;;  %v3733_v49 = vshrl.u32 %v6037_v28, 16  ;;  %v6727_v18 = vld [vmem:[#allocation7 + $0x38] sm:$0xff]   ;;  %6314 = vmatprep.subr.bf16.mxu0 %v6726_v10  ;;  %6591 = vmatprep.subr.bf16.mxu1 %v6726_v10 }
 0x146   : > { %2569 = vrot.lane.b32.xlu0 %v6705_v24, %s6942_s5  ;;  %v1836_v47 = vor.u32 %v1835_v38, %v1831_v32  ;;  %v3739_v50 = vshll.u32 %v6038_v33, 16  ;;  %4083 = vrot.lane.b32.xlu1 %v6077_v42, %s6942_s5  ;;  %v1827_v52 = vrot.slane %v1826_v43, 4  ;;  %v5948_v54 = vrot.slane %v5906_v40, 9  ;;  %v6041_v24 = vld [vmem:[%s7574_s28 + $0x50] sm:$0x1] }
 0x147   : > { %v3725_v53 = vrot.slane %v3723_v45, 5  ;;  %v3250_v55 = vrot.slane %v5907_v41, 5  ;;  %v3731_v58 = vrot.slane %v3729_v48, 5  ;;  %v3735_v59 = vrot.slane %v3733_v49, 4  ;;  %6315 = vmatpush3.bf16.msra.mxu0 %v6727_v18  ;;  %6599 = vmatpush3.bf16.msra.mxu1 %v6727_v18  ;;  %v5911_v41 = vld [vmem:[%s7574_s28 + $0x44] sm:$0x1] }
 0x148   : > { %v1837_v57 = vrot.slane %v1836_v47, 4  ;;  %v3741_v60 = vrot.slane %v3739_v50, 5  ;;  %v1832_v62 = vsel %vm7591_vm10, %v1827_v52, %v1831_v32  ;;  %v3253_v1 = vrot.slane %v5908_v46, 5  ;;  %v6729_v42 = vld [vmem:[#allocation7 + $0xc0] sm:$0xff]  }
 0x149   : > { %v3726_v63 = vor.u32 %v3725_v53, %v3722_v44  ;;  %v7774_v15 = vsel %vm7674_vm13, %v5948_v54, %v3250_v55  ;;  %v3252_v21 = vrot.slane %v3250_v55, 4  ;;  %v3736_v0 = vor.u32 %v3735_v59, %v3731_v58  ;;  %6412 = vmatprep.subr.bf16.mxu1 %v6729_v42 }
 0x14a   : > { %v1842_v26 = vsel %vm7591_vm10, %v1837_v57, %v1841_v39  ;;  %v1844_v3 = vshrl.u32 %v1624_v56, 16  ;;  %3391 = vrot.lane.b32.xlu1 %v5963_v37, %s6942_s5  ;;  %v1847_v7 = vshll.u32 %v1624_v56, 16  ;;  %v1853_v8 = vshll.u32 %v1625_v61, 16  ;;  %v1628_v56 = vld [vmem:[%s7574_s28 + $0xe8] sm:$0xf] }
 0x14b   : > { %v5742_v4 = vcombine.low %v1832_v62, %v1842_v26  ;;  %v3727_v5 = vrot.slane %v3726_v63, 4  ;;  %v3737_v11 = vrot.slane %v3736_v0, 4  ;;  %v3254_v13 = vsel %vm7674_vm13, %v3252_v21, %v3253_v1  ;;  %v6042_v62 = vld [vmem:[%s7574_s28 + $0x54] sm:$0xf] }
 0x14c   : > { %v1846_v14 = vrot.slane %v1844_v3, 4  ;;  %v1857_v16 = vshrl.u32 %v1625_v61, 16  ;;  %v5964_v20 = vcombine.low %v7774_v15, %v3254_v13  ;;  %v1849_v22 = vrot.slane %v1847_v7, 5  ;;  %v1629_v61 = vld [vmem:[%s7574_s28 + $0xec] sm:$0x1]  ;;  %v7807_v63 = vld [vmem:[#allocation7 + $0x100] sm:$0xff]  }
 0x14d   : > { %2097 = vrot.lane.b32.xlu0 %v5742_v4, %s6942_s5  ;;  %v3732_v19 = vsel %vm7591_vm10, %v3727_v5, %v3731_v58  ;;  %v1855_v23 = vrot.slane %v1853_v8, 5  ;;  %v3742_v25 = vsel %vm7591_vm10, %v3737_v11, %v3741_v60  ;;  %v1863_v28 = vshll.u32 %v1626_v2, 16  ;;  %v6707_v2 = vld [vmem:[%s7574_s28 + $0xf0] sm:$0xff]   ;;  %6544 = vmatprep.subr.bf16.mxu0 %v7807_v63  ;;  %v6044_v11 = vld [vmem:[%s7574_s28 + $0x5c] sm:$0x1] }
 0x14e   : > { %v1859_v27 = vrot.slane %v1857_v16, 4  ;;  %v3744_v30 = vshrl.u32 %v6039_v9, 16  ;;  %v6078_v31 = vcombine.low %v3732_v19, %v3742_v25  ;;  %v1850_v32 = vor.u32 %v1849_v22, %v1846_v14  ;;  %v5912_v13 = vld [vmem:[%s7574_s28 + $0x48] sm:$0xe]  ;;  %v5913_v19 = vld [vmem:[%s7574_s28 + $0x4c] sm:$0xf] }
 0x14f   : > { %v3747_v33 = vshll.u32 %v6039_v9, 16  ;;  %v3753_v34 = vshll.u32 %v6040_v17, 16  ;;  %v1865_v38 = vrot.slane %v1863_v28, 5  ;;  %v3757_v40 = vshrl.u32 %v6040_v17, 16  ;;  %v5914_v25 = vld [vmem:[%s7574_s28 + $0x50] sm:$0x1] }
 0x150   : > { %v1860_v37 = vor.u32 %v1859_v27, %v1855_v23  ;;  %v3746_v39 = vrot.slane %v3744_v30, 4  ;;  %4085 = vrot.lane.b32.xlu1 %v6078_v31, %s6942_s5  ;;  %v1851_v43 = vrot.slane %v1850_v32, 4  ;;  %v3763_v46 = vshll.u32 %v6041_v24, 16  ;;  %v1630_v27 = vld [vmem:[%s7574_s28 + $0xf0] sm:$0xf] }
 0x151   : > { %2571 = vrot.lane.b32.xlu0 %v6706_v6, %s6942_s5  ;;  %v3749_v44 = vrot.slane %v3747_v33, 5  ;;  %v3755_v45 = vrot.slane %v3753_v34, 5  ;;  %v3759_v48 = vrot.slane %v3757_v40, 4  ;;  %v5949_v49 = vrot.slane %v5909_v35, 9  ;;  %v6043_v6 = vld [vmem:[%s7574_s28 + $0x58] sm:$0xf] }
 0x152   : > { %v1861_v47 = vrot.slane %v1860_v37, 4  ;;  %v3257_v50 = vrot.slane %v5910_v36, 5  ;;  %v1856_v52 = vsel %vm7591_vm10, %v1851_v43, %v1855_v23  ;;  %v3765_v54 = vrot.slane %v3763_v46, 5  ;;  %v1632_v46 = vld [vmem:[%s7574_s28 + $0xf8] sm:$0x1] }
 0x153   : > { %v3750_v53 = vor.u32 %v3749_v44, %v3746_v39  ;;  %v3260_v55 = vrot.slane %v5911_v41, 5  ;;  %v3760_v58 = vor.u32 %v3759_v48, %v3755_v45  ;;  %v1868_v26 = vshrl.u32 %v1627_v51, 16 }
 0x154   : > { %v1866_v57 = vsel %vm7591_vm10, %v1861_v47, %v1865_v38  ;;  %v3258_v59 = vsel %vm7674_vm13, %v5949_v49, %v3257_v50  ;;  %v3259_v60 = vrot.slane %v3257_v50, 4  ;;  %3393 = vrot.lane.b32.xlu1 %v5964_v20, %s6942_s5  ;;  %v1871_v0 = vshll.u32 %v1627_v51, 16  ;;  %v6045_v51 = vld [vmem:[%s7574_s28 + $0x60] sm:$0xf] }
 0x155   : > { %v5743_v15 = vcombine.low %v1856_v52, %v1866_v57  ;;  %v3751_v21 = vrot.slane %v3750_v53, 4  ;;  %v3761_v1 = vrot.slane %v3760_v58, 4  ;;  %v1877_v4 = vshll.u32 %v1628_v56, 16  ;;  %v6046_v57 = vld [vmem:[%s7574_s28 + $0x64] sm:$0xf] }
 0x156   : > { %v3261_v3 = vsel %vm7674_vm13, %v3259_v60, %v3260_v55  ;;  %v1881_v5 = vshrl.u32 %v1628_v56, 16  ;;  %v1870_v9 = vrot.slane %v1868_v26, 4  ;;  %v1873_v10 = vrot.slane %v1871_v0, 5 }
 0x157   : > { %2099 = vrot.lane.b32.xlu0 %v5743_v15, %s6942_s5  ;;  %v3756_v7 = vsel %vm7591_vm10, %v3751_v21, %v3755_v45  ;;  %v5965_v8 = vcombine.low %v3258_v59, %v3261_v3  ;;  %v3766_v14 = vsel %vm7591_vm10, %v3761_v1, %v3765_v54  ;;  %v1879_v16 = vrot.slane %v1877_v4, 5  ;;  %v1631_v45 = vld [vmem:[%s7574_s28 + $0xf4] sm:$0xf]  ;;  %v6708_v54 = vld [vmem:[%s7574_s28 + $0xfc] sm:$0xff]  }
 0x158   : > { %v1883_v17 = vrot.slane %v1881_v5, 4  ;;  %v1887_v18 = vshll.u32 %v1629_v61, 16  ;;  %v6079_v20 = vcombine.low %v3756_v7, %v3766_v14  ;;  %v1874_v22 = vor.u32 %v1873_v10, %v1870_v9  ;;  %v5915_v1 = vld [vmem:[%s7574_s28 + $0x54] sm:$0xe]  ;;  %v5917_v7 = vld [vmem:[%s7574_s28 + $0x5c] sm:$0x1] }
 0x159   : > { %v3768_v23 = vshrl.u32 %v6042_v62, 16  ;;  %v3771_v24 = vshll.u32 %v6042_v62, 16  ;;  %v3777_v31 = vshll.u32 %v6043_v6, 16  ;;  %v3781_v32 = vshrl.u32 %v6043_v6, 16  ;;  %v6047_v62 = vld [vmem:[%s7574_s28 + $0x68] sm:$0x1] }
 0x15a   : > { %v1884_v28 = vor.u32 %v1883_v17, %v1879_v16  ;;  %v1889_v30 = vrot.slane %v1887_v18, 5  ;;  %4087 = vrot.lane.b32.xlu1 %v6079_v20, %s6942_s5  ;;  %v1875_v33 = vrot.slane %v1874_v22, 4  ;;  %v3787_v36 = vshll.u32 %v6044_v11, 16  ;;  %v5916_v6 = vld [vmem:[%s7574_s28 + $0x58] sm:$0xf] }
 0x15b   : > { %2573 = vrot.lane.b32.xlu0 %v6707_v2, %s6942_s5  ;;  %v3770_v34 = vrot.slane %v3768_v23, 4  ;;  %v3773_v35 = vrot.slane %v3771_v24, 5  ;;  %v3779_v38 = vrot.slane %v3777_v31, 5  ;;  %v3783_v39 = vrot.slane %v3781_v32, 4 }
 0x15c   : > { %v1885_v37 = vrot.slane %v1884_v28, 4  ;;  %v5950_v40 = vrot.slane %v5912_v13, 9  ;;  %v1880_v41 = vsel %vm7591_vm10, %v1875_v33, %v1879_v16  ;;  %v3789_v43 = vrot.slane %v3787_v36, 5  ;;  %v1633_v13 = vld [vmem:[%s7574_s28 + $0xfc] sm:$0xf] }
 0x15d   : > { %v3774_v42 = vor.u32 %v3773_v35, %v3770_v34  ;;  %v3264_v44 = vrot.slane %v5913_v19, 5  ;;  %v3784_v48 = vor.u32 %v3783_v39, %v3779_v38  ;;  %v3267_v49 = vrot.slane %v5914_v25, 5 }
 0x15e   : > { %v1890_v47 = vsel %vm7591_vm10, %v1885_v37, %v1889_v30  ;;  %v1892_v50 = vshrl.u32 %v1630_v27, 16  ;;  %3395 = vrot.lane.b32.xlu1 %v5965_v8, %s6942_s5  ;;  %v1895_v60 = vshll.u32 %v1630_v27, 16  ;;  %v1901_v61 = vshll.u32 %v1631_v45, 16  ;;  %v1634_v37 = vld [vmem:[%s7574_s28 + $0x100] sm:$0xf] }
 0x15f   : > { %v5744_v52 = vcombine.low %v1880_v41, %v1890_v47  ;;  %v3775_v53 = vrot.slane %v3774_v42, 4  ;;  %v3265_v55 = vsel %vm7674_vm13, %v5950_v40, %v3264_v44  ;;  %v3266_v56 = vrot.slane %v3264_v44, 4  ;;  %v1635_v42 = vld [vmem:[%s7574_s28 + $0x104] sm:$0x1] }
 0x160   : > { %v3785_v58 = vrot.slane %v3784_v48, 4  ;;  %v1894_v59 = vrot.slane %v1892_v50, 4  ;;  %v1905_v26 = vshrl.u32 %v1631_v45, 16  ;;  %v1911_v0 = vshll.u32 %v1632_v46, 16  ;;  %v6048_v48 = vld [vmem:[%s7574_s28 + $0x6c] sm:$0xf] }
 0x161   : > { %2101 = vrot.lane.b32.xlu0 %v5744_v52, %s6942_s5  ;;  %v3780_v15 = vsel %vm7591_vm10, %v3775_v53, %v3779_v38  ;;  %v3268_v21 = vsel %vm7674_vm13, %v3266_v56, %v3267_v49  ;;  %v1897_v4 = vrot.slane %v1895_v60, 5  ;;  %v1903_v5 = vrot.slane %v1901_v61, 5  ;;  %v6049_v53 = vld [vmem:[%s7574_s28 + $0x70] sm:$0xf]  ;;  %v6709_v56 = vld [vmem:[%s7574_s28 + $0x108] sm:$0xff]  }
 0x162   : > { %v3790_v2 = vsel %vm7591_vm10, %v3785_v58, %v3789_v43  ;;  %v5966_v3 = vcombine.low %v3265_v55, %v3268_v21  ;;  %v1907_v9 = vrot.slane %v1905_v26, 4  ;;  %v1913_v10 = vrot.slane %v1911_v0, 5  ;;  %v5918_v60 = vld [vmem:[%s7574_s28 + $0x60] sm:$0xe]  ;;  %v5919_v26 = vld [vmem:[%s7574_s28 + $0x64] sm:$0xf] }
 0x163   : > { %v6080_v8 = vcombine.low %v3780_v15, %v3790_v2  ;;  %v3792_v11 = vshrl.u32 %v6045_v51, 16  ;;  %v1898_v14 = vor.u32 %v1897_v4, %v1894_v59  ;;  %v3795_v16 = vshll.u32 %v6045_v51, 16  ;;  %v6050_v59 = vld [vmem:[%s7574_s28 + $0x74] sm:$0x1]  ;;  %v5920_v0 = vld [vmem:[%s7574_s28 + $0x68] sm:$0x1] }
 0x164   : > { %v3801_v17 = vshll.u32 %v6046_v57, 16  ;;  %v3805_v18 = vshrl.u32 %v6046_v57, 16  ;;  %v1908_v19 = vor.u32 %v1907_v9, %v1903_v5  ;;  %v3811_v22 = vshll.u32 %v6047_v62, 16 }
 0x165   : > { %4089 = vrot.lane.b32.xlu1 %v6080_v8, %s6942_s5  ;;  %2575 = vrot.lane.b32.xlu0 %v6708_v54, %s6942_s5  ;;  %v3794_v20 = vrot.slane %v3792_v11, 4  ;;  %v5951_v23 = vrot.slane %v5915_v1, 9  ;;  %v1899_v24 = vrot.slane %v1898_v14, 4  ;;  %v3797_v25 = vrot.slane %v3795_v16, 5  ;;  %v6051_v1 = vld [vmem:[%s7574_s28 + $0xf0] sm:$0xf] }
 0x166   : > { %v3803_v27 = vrot.slane %v3801_v17, 5  ;;  %v3807_v28 = vrot.slane %v3805_v18, 4  ;;  %v1909_v30 = vrot.slane %v1908_v19, 4  ;;  %v3813_v31 = vrot.slane %v3811_v22, 5  ;;  %v6053_v22 = vld [vmem:[%s7574_s28 + $0xf8] sm:$0x1] }
 0x167   : > { %v3271_v32 = vrot.slane %v5916_v6, 5  ;;  %v3274_v33 = vrot.slane %v5917_v7, 5  ;;  %v1904_v34 = vsel %vm7591_vm10, %v1899_v24, %v1903_v5  ;;  %v3798_v35 = vor.u32 %v3797_v25, %v3794_v20  ;;  %v6052_v6 = vld [vmem:[%s7574_s28 + $0xf4] sm:$0xf] }
 0x168   : > { %v3808_v36 = vor.u32 %v3807_v28, %v3803_v27  ;;  %v1916_v38 = vshrl.u32 %v1633_v13, 16  ;;  %v1914_v39 = vsel %vm7591_vm10, %v1909_v30, %v1913_v10  ;;  %v1919_v43 = vshll.u32 %v1633_v13, 16  ;;  %v5921_v28 = vld [vmem:[%s7574_s28 + $0xe4] sm:$0xe] }
 0x169   : > { %3397 = vrot.lane.b32.xlu1 %v5966_v3, %s6942_s5  ;;  %v3272_v40 = vsel %vm7674_vm13, %v5951_v23, %v3271_v32  ;;  %v3273_v41 = vrot.slane %v3271_v32, 4  ;;  %v5745_v44 = vcombine.low %v1904_v34, %v1914_v39  ;;  %v3799_v45 = vrot.slane %v3798_v35, 4  ;;  %v5922_v34 = vld [vmem:[%s7574_s28 + $0xe8] sm:$0xf]  ;;  %v5923_v39 = vld [vmem:[%s7574_s28 + $0xec] sm:$0x1] }
 0x16a   : > { %v3809_v46 = vrot.slane %v3808_v36, 4  ;;  %v1918_v47 = vrot.slane %v1916_v38, 4  ;;  %v1921_v50 = vrot.slane %v1919_v43, 5  ;;  %v1925_v51 = vshll.u32 %v1634_v37, 16 }
 0x16b   : > { %v3275_v49 = vsel %vm7674_vm13, %v3273_v41, %v3274_v33  ;;  %v1929_v52 = vshrl.u32 %v1634_v37, 16  ;;  %2103 = vrot.lane.b32.xlu0 %v5745_v44, %s6942_s5  ;;  %v3804_v54 = vsel %vm7591_vm10, %v3799_v45, %v3803_v27  ;;  %v1935_v58 = vshll.u32 %v1635_v42, 16 }
 0x16c   : > { %v3814_v55 = vsel %vm7591_vm10, %v3809_v46, %v3813_v31  ;;  %v5967_v57 = vcombine.low %v3272_v40, %v3275_v49  ;;  %v1922_v62 = vor.u32 %v1921_v50, %v1918_v47  ;;  %v1927_v15 = vrot.slane %v1925_v51, 5  ;;  %v6054_v49 = vld [vmem:[%s7574_s28 + $0xfc] sm:$0xf]  ;;  %v6055_v50 = vld [vmem:[%s7574_s28 + $0x100] sm:$0xf] }
 0x16d   : > { %v6081_v61 = vcombine.low %v3804_v54, %v3814_v55  ;;  %v1931_v21 = vrot.slane %v1929_v52, 4  ;;  %v1937_v2 = vrot.slane %v1935_v58, 5  ;;  %v3816_v3 = vshrl.u32 %v6048_v48, 16  ;;  %v6056_v55 = vld [vmem:[%s7574_s28 + $0x104] sm:$0x1] }
 0x16e   : > { %v3819_v4 = vshll.u32 %v6048_v48, 16  ;;  %v3825_v5 = vshll.u32 %v6049_v53, 16  ;;  %v1923_v7 = vrot.slane %v1922_v62, 4  ;;  %v3829_v9 = vshrl.u32 %v6049_v53, 16 }
 0x16f   : > { %4091 = vrot.lane.b32.xlu1 %v6081_v61, %s6942_s5  ;;  %v1932_v8 = vor.u32 %v1931_v21, %v1927_v15  ;;  %v3835_v10 = vshll.u32 %v6050_v59, 16  ;;  %2577 = vrot.lane.b32.xlu0 %v6709_v56, %s6942_s5  ;;  %v3818_v11 = vrot.slane %v3816_v3, 4  ;;  %v5952_v16 = vrot.slane %v5918_v60, 9  ;;  %v5924_v21 = vld [vmem:[%s7574_s28 + $0xf0] sm:$0xe] }
 0x170   : > { %v3821_v13 = vrot.slane %v3819_v4, 5  ;;  %v3827_v14 = vrot.slane %v3825_v5, 5  ;;  %v1928_v17 = vsel %vm7591_vm10, %v1923_v7, %v1927_v15  ;;  %v3831_v19 = vrot.slane %v3829_v9, 4  ;;  %v5925_v3 = vld [vmem:[%s7574_s28 + $0xf4] sm:$0xf]  ;;  %v6725_v7 = vld [vmem:[%s7574_s28 + $0x108] sm:$0xff]  }
 0x171   : > { %v1933_v18 = vrot.slane %v1932_v8, 4  ;;  %v3837_v20 = vrot.slane %v3835_v10, 5  ;;  %v3278_v24 = vrot.slane %v5919_v26, 5  ;;  %v3281_v25 = vrot.slane %v5920_v0, 5  ;;  %v7917_v4 = vld [vmem:[%s7574_s28 + $0xf8] sm:$0x1] }
 0x172   : > { %v3822_v23 = vor.u32 %v3821_v13, %v3818_v11  ;;  %v3840_v27 = vshrl.u32 %v6051_v1, 16  ;;  %v3832_v31 = vor.u32 %v3831_v19, %v3827_v14  ;;  %v3843_v32 = vshll.u32 %v6051_v1, 16  ;;  %v7893_v40 = vpop.permute.xlu0 %2555  ;;  %v6728_v8 = vld [vmem:[%s7574_s28 + $0xc] sm:$0xff]   ;;  %v6731_v9 = vld [vmem:[%s7574_s28 + $0x114] sm:$0xff]   ;;  %v6736_v11 = vld [vmem:[%s7574_s28 + $0x120] sm:$0xff]   ;;  %1596 = vst.msk [vmem:[#allocation3 + $0x1e0] sm:$0xff] %vm1583_vm14, %v6725_v7 }
 0x173   : > { %3399 = vrot.lane.b32.xlu1 %v5967_v57, %s6942_s5  ;;  %v1938_v30 = vsel %vm7591_vm10, %v1933_v18, %v1937_v2  ;;  %v3849_v33 = vshll.u32 %v6052_v6, 16  ;;  %v7890_v37 = vsel %vm7674_vm13, %v5952_v16, %v3278_v24  ;;  %v3280_v38 = vrot.slane %v3278_v24, 4  ;;  %v6733_v10 = vld [vmem:[%s7574_s28 + $0x18] sm:$0xff]   ;;  %v7931_v18 = vld [vmem:[%s7574_s28] sm:$0xe]  ;;  %v6739_v19 = vld [vmem:[%s7574_s28 + $0x24] sm:$0xff]  }
 0x174   : > { %v5746_v35 = vcombine.low %v1928_v17, %v1938_v30  ;;  %v3823_v36 = vrot.slane %v3822_v23, 4  ;;  %v3833_v41 = vrot.slane %v3832_v31, 4  ;;  %v3842_v42 = vrot.slane %v3840_v27, 4  ;;  %v7940_v27 = vld [vmem:[%s7574_s28 + $0x8] sm:$0x1]  ;;  %v6745_v30 = vld [vmem:[%s7574_s28 + $0x30] sm:$0xff]  }
 0x175   : > { %v3845_v43 = vrot.slane %v3843_v32, 5  ;;  %v7895_v44 = vrot.slane %v3849_v33, 5  ;;  %v3282_v46 = vsel %vm7674_vm13, %v3280_v38, %v3281_v25  ;;  %v3853_v47 = vshrl.u32 %v6052_v6, 16  ;;  %v6722_v6 = vld [vmem:[%s7574_s28] sm:$0xff]   ;;  %v6746_v31 = vld [vmem:[%s7574_s28 + $0x18] sm:$0xff]   ;;  %1585 = vst.msk [vmem:[#allocation3 + $0x28] sm:$0xff] %vm1583_vm14, %v6728_v8 }
 0x176   : > { %2105 = vrot.lane.b32.xlu0 %v5746_v35, %s6942_s5  ;;  %v3828_v45 = vsel %vm7591_vm10, %v3823_v36, %v3827_v14  ;;  %v3859_v48 = vshll.u32 %v6053_v22, 16  ;;  %v3838_v51 = vsel %vm7591_vm10, %v3833_v41, %v3837_v20  ;;  %v5968_v52 = vcombine.low %v7890_v37, %v3282_v46  ;;  %v7919_v5 = vpop.permute.xlu0 %2579  ;;  %v2149_v25 = vld [vmem:[%s7574_s28 + $0x4] sm:$0xf]  ;;  %v2184_v36 = vld [vmem:[%s7574_s28 + $0x108] sm:$0xe]  ;;  %1584 = vst.msk [vmem:[#allocation3] sm:$0xff] %vm1583_vm14, %v6722_v6 }
 0x177   : > { %v3846_v53 = vor.u32 %v3845_v43, %v3842_v42  ;;  %v5953_v54 = vrot.slane %v5921_v28, 9  ;;  %v6082_v56 = vcombine.low %v3828_v45, %v3838_v51  ;;  %v3855_v57 = vrot.slane %v3853_v47, 4  ;;  %v6742_v28 = vld [vmem:[%s7574_s28 + $0x12c] sm:$0xff]   ;;  %1597 = vst.msk [vmem:[#allocation3 + $0x208] sm:$0xff] %vm1583_vm14, %v6731_v9  ;;  %1586 = vst.msk [vmem:[#allocation3 + $0x50] sm:$0xff] %vm1583_vm14, %v6733_v10  ;;  %v6753_v6 = vld [vmem:[%s7574_s28 + $0x24] sm:$0xff]  }
 0x178   : > { %v3861_v58 = vrot.slane %v3859_v48, 5  ;;  %v3285_v59 = vrot.slane %v5922_v34, 5  ;;  %v3288_v61 = vrot.slane %v5923_v39, 5  ;;  %v3864_v62 = vshrl.u32 %v6054_v49, 16  ;;  %v2185_v37 = vld [vmem:[%s7574_s28 + $0x10c] sm:$0xf] }
 0x179   : > { %v3847_v60 = vrot.slane %v3846_v53, 4  ;;  %v3867_v15 = vshll.u32 %v6054_v49, 16  ;;  %4093 = vrot.lane.b32.xlu1 %v6082_v56, %s6942_s5  ;;  %v3856_v26 = vor.u32 %v3855_v57, %v7895_v44  ;;  %v3873_v2 = vshll.u32 %v6055_v50, 16  ;;  %v7949_v38 = vld [vmem:[%s7574_s28 + $0x110] sm:$0x1]  ;;  %1598 = vst.msk [vmem:[#allocation3 + $0x230] sm:$0xff] %vm1583_vm14, %v6736_v11 }
 0x17a   : > { %v7913_v0 = vsel %vm7674_vm13, %v5953_v54, %v3285_v59  ;;  %v3287_v1 = vrot.slane %v3285_v59, 4  ;;  %v3866_v14 = vrot.slane %v3864_v62, 4  ;;  %v3877_v17 = vshrl.u32 %v6055_v50, 16  ;;  %v7957_v48 = vld [vmem:[%s7574_s28 + $0x108] sm:$0xf]  ;;  %v7964_v53 = vpop.permute.xlu0 %2557  ;;  %1587 = vst.msk [vmem:[#allocation3 + $0x78] sm:$0xff] %vm1583_vm14, %v6739_v19 }
 0x17b   : > { %v3852_v13 = vsel %vm7591_vm10, %v3847_v60, %v7895_v44  ;;  %v3869_v16 = vrot.slane %v3867_v15, 5  ;;  %v3857_v20 = vrot.slane %v3856_v26, 4  ;;  %v7936_v23 = vrot.slane %v3873_v2, 5  ;;  %1599 = vst.msk [vmem:[#allocation3 + $0x258] sm:$0xff] %vm1583_vm14, %v6742_v28  ;;  %1588 = vst.msk [vmem:[#allocation3 + $0xa0] sm:$0xff] %vm1583_vm14, %v6745_v30 }
 0x17c   : > { %v3289_v22 = vsel %vm7674_vm13, %v3287_v1, %v3288_v61  ;;  %v3883_v24 = vshll.u32 %v6056_v55, 16  ;;  %v3879_v34 = vrot.slane %v3877_v17, 4  ;;  %v5954_v35 = vrot.slane %v5924_v21, 9  ;;  %3583 = vst.msk [vmem:[#allocation3 + $0x18] sm:$0xff] %vm1583_vm14, %v6746_v31  ;;  %v6752_v21 = vld [vmem:[%s7574_s28 + $0x3c] sm:$0xff]   ;;  %3584 = vst.msk [vmem:[#allocation3 + $0x40] sm:$0xff] %vm1583_vm14, %v6753_v6 }
 0x17d   : > { %v5969_v32 = vcombine.low %v7913_v0, %v3289_v22  ;;  %v3870_v33 = vor.u32 %v3869_v16, %v3866_v14  ;;  %3401 = vrot.lane.b32.xlu1 %v5968_v52, %s6942_s5  ;;  %v3862_v39 = vsel %vm7591_vm10, %v3857_v20, %v3861_v58  ;;  %v3292_v42 = vrot.slane %v5925_v3, 5  ;;  %v6058_v52 = vld [vmem:[%s7574_s28 + $0x10c] sm:$0xf]  ;;  %v6059_v58 = vld [vmem:[%s7574_s28 + $0x110] sm:$0x1]  ;;  %1589 = vst.msk [vmem:[#allocation3 + $0xc8] sm:$0xff] %vm1583_vm14, %v6752_v21 }
 0x17e   : > { %v3885_v41 = vrot.slane %v3883_v24, 5  ;;  %v3295_v43 = vrot.slane %v7917_v4, 5  ;;  %v2084_v44 = vpop.permute.xlu1 %2083  ;;  %v6083_v45 = vcombine.low %v3852_v13, %v3862_v39  ;;  %v3880_v47 = vor.u32 %v3879_v34, %v7936_v23  ;;  %v5927_v3 = vld [vmem:[%s7574_s28 + $0xfc] sm:$0xe]  ;;  %v5928_v4 = vld [vmem:[%s7574_s28 + $0x100] sm:$0xf] }
 0x17f   : > { %v3871_v46 = vrot.slane %v3870_v33, 4  ;;  %v3293_v49 = vsel %vm7674_vm13, %v5954_v35, %v3292_v42  ;;  %v3294_v50 = vrot.slane %v3292_v42, 4  ;;  %v5751_v51 = vrot.slane %v7931_v18, 9  ;;  %2132 = vst.msk [vmem:[#allocation3] sm:$0xff] %vm2131_vm15, %v2084_v44  ;;  %v5929_v11 = vld [vmem:[%s7574_s28 + $0x104] sm:$0x1] }
 0x180   : > { %4095 = vrot.lane.b32.xlu0 %v6083_v45, %s6942_s5  ;;  %v3881_v55 = vrot.slane %v3880_v47, 4  ;;  %v2249_v56 = vrot.slane %v2149_v25, 5  ;;  %v2252_v57 = vrot.slane %v7940_v27, 5  ;;  %v5763_v60 = vrot.slane %v2184_v36, 9  ;;  %v2151_v13 = vld [vmem:[%s7574_s28 + $0xc] sm:$0xe] }
 0x181   : > { %v3876_v54 = vsel %vm7591_vm10, %v3871_v46, %v7936_v23  ;;  %3403 = vrot.lane.b32.xlu1 %v5969_v32, %s6942_s5  ;;  %v3296_v59 = vsel %vm7674_vm13, %v3294_v50, %v3295_v43  ;;  %v2333_v61 = vrot.slane %v2185_v37, 5  ;;  %v2336_v62 = vrot.slane %v7949_v38, 5  ;;  %v2152_v19 = vld [vmem:[%s7574_s28 + $0x10] sm:$0xf]  ;;  %v2153_v25 = vld [vmem:[%s7574_s28 + $0x14] sm:$0x1] }
 0x182   : > { %v2108_v15 = vpop.permute.xlu1 %2107  ;;  %v3886_v26 = vsel %vm7591_vm10, %v3881_v55, %v3885_v41  ;;  %v5970_v0 = vcombine.low %v3293_v49, %v3296_v59  ;;  %v2250_v1 = vsel %vm7674_vm13, %v5751_v51, %v2249_v56  ;;  %v2251_v2 = vrot.slane %v2249_v56, 4  ;;  %v2187_v28 = vld [vmem:[%s7574_s28 + $0x114] sm:$0xe]  ;;  %v2188_v35 = vld [vmem:[%s7574_s28 + $0x118] sm:$0xf]  ;;  %v6756_v41 = vld [vmem:[%s7574_s28 + $0x48] sm:$0xff]  }
 0x183   : > { %2144 = vst.msk [vmem:[#allocation3 + $0x1e0] sm:$0xff] %vm2131_vm15, %v2108_v15  ;;  %v6084_v7 = vcombine.low %v3876_v54, %v3886_v26  ;;  %v2334_v8 = vsel %vm7674_vm13, %v5763_v60, %v2333_v61  ;;  %v2335_v9 = vrot.slane %v2333_v61, 4  ;;  %v3888_v10 = vshrl.u32 %v7957_v48, 16  ;;  %v2189_v46 = vld [vmem:[%s7574_s28 + $0x11c] sm:$0x1]  ;;  %v6757_v59 = vld [vmem:[%s7574_s28 + $0x30] sm:$0xff]  }
 0x184   : > { %v2253_v14 = vsel %vm7674_vm13, %v2251_v2, %v2252_v57  ;;  %v3891_v16 = vshll.u32 %v7957_v48, 16  ;;  %v3897_v17 = vshll.u32 %v6058_v52, 16  ;;  %v3901_v18 = vshrl.u32 %v6058_v52, 16  ;;  %v6060_v47 = vld [vmem:[%s7574_s28 + $0x114] sm:$0xf]  ;;  %1590 = vst.msk [vmem:[#allocation3 + $0xf0] sm:$0xff] %vm1583_vm14, %v6756_v41 }
 0x185   : > { %4097 = vrot.lane.b32.xlu0 %v6084_v7, %s6942_s5  ;;  %3405 = vrot.lane.b32.xlu1 %v5970_v0, %s6942_s5  ;;  %v5767_v20 = vcombine.low %v2250_v1, %v2253_v14  ;;  %v2337_v22 = vsel %vm7674_vm13, %v2335_v9, %v2336_v62  ;;  %v3890_v23 = vrot.slane %v3888_v10, 4  ;;  %v3907_v24 = vshll.u32 %v6059_v58, 16  ;;  %v6061_v51 = vld [vmem:[%s7574_s28 + $0x118] sm:$0xf]  ;;  %v5930_v58 = vld [vmem:[%s7574_s28 + $0x108] sm:$0xe] }
 0x186   : > { %v2086_v27 = vpop.permute.xlu0 %2085  ;;  %v8012_v30 = vpop.permute.xlu1 %2581  ;;  %v5779_v31 = vcombine.low %v2334_v8, %v2337_v22  ;;  %v3893_v32 = vrot.slane %v3891_v16, 5  ;;  %v3899_v33 = vrot.slane %v3897_v17, 5  ;;  %v3903_v34 = vrot.slane %v3901_v18, 4  ;;  %v6758_v26 = vld [vmem:[%s7574_s28 + $0x54] sm:$0xff]   ;;  %v5931_v6 = vld [vmem:[%s7574_s28 + $0x10c] sm:$0xf] }
 0x187   : > { %2133 = vst.msk [vmem:[#allocation3 + $0x28] sm:$0xff] %vm2131_vm15, %v2086_v27  ;;  %v3909_v36 = vrot.slane %v3907_v24, 5  ;;  %v5955_v37 = vrot.slane %v5927_v3, 9  ;;  %v3299_v38 = vrot.slane %v5928_v4, 5  ;;  %v3302_v39 = vrot.slane %v5929_v11, 5  ;;  %v4431_v4 = vld [vmem:[#allocation3] sm:$0xff] }
 0x188   : > { %2423 = vst.msk [vmem:[#allocation3 + $0x8] sm:$0xff] %vm1583_vm14, %v5767_v20  ;;  %2435 = vst.msk [vmem:[#allocation3 + $0x1e8] sm:$0xff] %vm1583_vm14, %v5779_v31  ;;  %v3894_v42 = vor.u32 %v3893_v32, %v3890_v23  ;;  %v3904_v43 = vor.u32 %v3903_v34, %v3899_v33  ;;  %v5752_v44 = vrot.slane %v2151_v13, 9  ;;  %v2256_v45 = vrot.slane %v2152_v19, 5  ;;  %v5932_v7 = vld [vmem:[%s7574_s28 + $0x110] sm:$0x1] }
 0x189   : > { %2603 = vst.msk [vmem:[#allocation3 + $0x8] sm:$0xff] %vm2131_vm15, %v7893_v40  ;;  %2615 = vst.msk [vmem:[#allocation3 + $0x1e8] sm:$0xff] %vm2131_vm15, %v7919_v5  ;;  %v3300_v48 = vsel %vm7674_vm13, %v5955_v37, %v3299_v38  ;;  %v3301_v49 = vrot.slane %v3299_v38, 4  ;;  %v2259_v50 = vrot.slane %v2153_v25, 5  ;;  %v5764_v40 = vrot.slane %v2187_v28, 9  ;;  %v6732_v17 = vld [vmem:[#allocation7 + $0x80] sm:$0xff]  }
 0x18a   : > { %v8028_v52 = vpop.permute.xlu0 %2559  ;;  %v3895_v54 = vrot.slane %v3894_v42, 4  ;;  %v3905_v55 = vrot.slane %v3904_v43, 4  ;;  %v2257_v56 = vsel %vm7674_vm13, %v5752_v44, %v2256_v45  ;;  %v2258_v57 = vrot.slane %v2256_v45, 4  ;;  %v6062_v5 = vld [vmem:[%s7574_s28 + $0x11c] sm:$0x1]  ;;  %3585 = vst.msk [vmem:[#allocation3 + $0x68] sm:$0xff] %vm1583_vm14, %v6757_v59 }
 0x18b   : > { %v3303_v60 = vsel %vm7674_vm13, %v3301_v49, %v3302_v39  ;;  %v2340_v61 = vrot.slane %v2188_v35, 5  ;;  %v2343_v62 = vrot.slane %v2189_v46, 5  ;;  %v3912_v15 = vshrl.u32 %v6060_v47, 16  ;;  %v2110_v21 = vpop.permute.xlu1 %2109  ;;  %v8052_v13 = vld [vmem:[%s7574_s28 + $0x18] sm:$0xe]  ;;  %v4491_v16 = vld [vmem:[#allocation3 + $0x1e0] sm:$0xff] }
 0x18c   : > { %v3900_v0 = vsel %vm7591_vm10, %v3895_v54, %v3899_v33  ;;  %v3910_v1 = vsel %vm7591_vm10, %v3905_v55, %v3909_v36  ;;  %v5971_v2 = vcombine.low %v3300_v48, %v3303_v60  ;;  %v2260_v3 = vsel %vm7674_vm13, %v2258_v57, %v2259_v50  ;;  %2145 = vst.msk [vmem:[#allocation3 + $0x208] sm:$0xff] %vm2131_vm15, %v2110_v21  ;;  %v8055_v14 = vld [vmem:[%s7574_s28 + $0x1c] sm:$0xf]  ;;  %v8062_v24 = vld [vmem:[%s7574_s28 + $0x20] sm:$0x1] }
 0x18d   : > { %v6085_v8 = vcombine.low %v3900_v0, %v3910_v1  ;;  %v5768_v9 = vcombine.low %v2257_v56, %v2260_v3  ;;  %v2341_v10 = vsel %vm7674_vm13, %v5764_v40, %v2340_v61  ;;  %v2342_v11 = vrot.slane %v2340_v61, 4  ;;  %v8057_v18 = vld [vmem:[#allocation7 + $0x108] sm:$0xff]   ;;  %1591 = vst.msk [vmem:[#allocation3 + $0x118] sm:$0xff] %vm1583_vm14, %v6758_v26  ;;  %v2190_v40 = vld [vmem:[%s7574_s28 + $0x120] sm:$0xe] }
 0x18e   : > { %3407 = vrot.lane.b32.xlu1 %v5971_v2, %s6942_s5  ;;  %v3914_v19 = vrot.slane %v3912_v15, 4  ;;  %v3915_v20 = vshll.u32 %v6060_v47, 16  ;;  %v3921_v22 = vshll.u32 %v6061_v51, 16  ;;  %v3925_v23 = vshrl.u32 %v6061_v51, 16  ;;  %v6734_v25 = vld [vmem:[#allocation7 + $0xc8] sm:$0xff]   ;;  %v6737_v51 = vld [vmem:[#allocation7 + $0xd0] sm:$0xff]  }
 0x18f   : > { %4099 = vrot.lane.b32.xlu0 %v6085_v8, %s6942_s5  ;;  %2424 = vst.msk [vmem:[#allocation3 + $0x30] sm:$0xff] %vm1583_vm14, %v5768_v9  ;;  %v2344_v28 = vsel %vm7674_vm13, %v2342_v11, %v2343_v62  ;;  %v3931_v31 = vshll.u32 %v6062_v5, 16  ;;  %v5956_v32 = vrot.slane %v5930_v58, 9  ;;  %v3306_v33 = vrot.slane %v5931_v6, 5  ;;  %v2088_v34 = vpop.permute.xlu0 %2087  ;;  %v8068_v35 = vpop.permute.xlu1 %2583  ;;  %v6735_v46 = vld [vmem:[#allocation7 + $0x88] sm:$0xff]   ;;  %v6738_v1 = vld [vmem:[#allocation7 + $0x90] sm:$0xff]  }
 0x190   : > { %v4432_v27 = vld [vmem:[#allocation3 + $0x8] sm:$0xff]  ;;  %2604 = vst.msk [vmem:[#allocation3 + $0x30] sm:$0xff] %vm2131_vm15, %v7964_v53  ;;  %v5780_v36 = vcombine.low %v2341_v10, %v2344_v28  ;;  %v3917_v37 = vrot.slane %v3915_v20, 5  ;;  %v3923_v38 = vrot.slane %v3921_v22, 5  ;;  %v3927_v39 = vrot.slane %v3925_v23, 4  ;;  %2134 = vst.msk [vmem:[#allocation3 + $0x50] sm:$0xff] %vm2131_vm15, %v2088_v34 }
 0x191   : > { %4879 = vmatprep.mubr.bf16.mxu0 %v4432_v27  ;;  %v4492_v41 = vld [vmem:[#allocation3 + $0x1e8] sm:$0xff]  ;;  %v3933_v42 = vrot.slane %v3931_v31, 5  ;;  %v3307_v43 = vsel %vm7674_vm13, %v5956_v32, %v3306_v33  ;;  %v3308_v44 = vrot.slane %v3306_v33, 4  ;;  %v3309_v45 = vrot.slane %v5932_v7, 5  ;;  %v2191_v56 = vld [vmem:[%s7574_s28 + $0x124] sm:$0xf] }
 0x192   : > { %4880 = vmatmul.mubr.bf16.vlgmr.msra.gmra.mrb[0].mxu0 %v4431_v4  ;;  %4975 = vmatprep.mubr.bf16.mxu1 %v4492_v41  ;;  %v6759_v53 = vld [vmem:[%s7574_s28 + $0x3c] sm:$0xff]   ;;  %2436 = vst.msk [vmem:[#allocation3 + $0x210] sm:$0xff] %vm1583_vm14, %v5780_v36  ;;  %v3918_v47 = vor.u32 %v3917_v37, %v3914_v19  ;;  %v3928_v48 = vor.u32 %v3927_v39, %v3923_v38  ;;  %v5753_v49 = vrot.slane %v8052_v13, 9  ;;  %v2263_v50 = vrot.slane %v8055_v14, 5  ;;  %v2192_v57 = vld [vmem:[%s7574_s28 + $0x128] sm:$0x1] }
 0x193   : > { %4976 = vmatmul.mubr.bf16.vlgmr.msra.gmra.mrb[0].mxu1 %v4491_v16  ;;  %6545 = vmatpush3.bf16.msra.mxu0 %v7807_v63  ;;  %2616 = vst.msk [vmem:[#allocation3 + $0x210] sm:$0xff] %vm2131_vm15, %v8012_v30  ;;  %v3310_v54 = vsel %vm7674_vm13, %v3308_v44, %v3309_v45  ;;  %v2266_v55 = vrot.slane %v8062_v24, 5  ;;  %v5765_v5 = vrot.slane %v2190_v40, 9  ;;  %v8088_v58 = vpop.permute.xlu0 %2561  ;;  %v2112_v59 = vpop.permute.xlu1 %2111  ;;  %v2347_v15 = vrot.slane %v2191_v56, 5  ;;  %v6063_v26 = vld [vmem:[%s7574_s28 + $0x120] sm:$0xf] }
 0x194   : > { %6413 = vmatpush3.bf16.msra.mxu1 %v6732_v17  ;;  %6546 = vmatprep.subr.bf16.mxu0 %v8057_v18  ;;  %3586 = vst.msk [vmem:[#allocation3 + $0x90] sm:$0xff] %vm1583_vm14, %v6759_v53  ;;  %v3919_v63 = vrot.slane %v3918_v47, 4  ;;  %v3929_v30 = vrot.slane %v3928_v48, 4  ;;  %v5972_v60 = vcombine.low %v3307_v43, %v3310_v54  ;;  %v2264_v61 = vsel %vm7674_vm13, %v5753_v49, %v2263_v50  ;;  %v4436_v0 = vld [vmem:[#allocation3 + $0x28] sm:$0xff]  ;;  %v6064_v4 = vld [vmem:[%s7574_s28 + $0x124] sm:$0xf] }
 0x195   : > { %6414 = vmatprep.subr.bf16.mxu1 %v6734_v25  ;;  %2146 = vst.msk [vmem:[#allocation3 + $0x230] sm:$0xff] %vm2131_vm15, %v2112_v59  ;;  %v2265_v62 = vrot.slane %v2263_v50, 4  ;;  %v2350_v21 = vrot.slane %v2192_v57, 5  ;;  %v6065_v6 = vld [vmem:[%s7574_s28 + $0x128] sm:$0x1]  ;;  %v3936_v7 = vshrl.u32 %v6063_v26, 16  ;;  %v2348_v13 = vsel %vm7674_vm13, %v5765_v5, %v2347_v15 }
 0x196   : > { %v3924_v2 = vsel %vm7591_vm10, %v3919_v63, %v3923_v38  ;;  %v3934_v3 = vsel %vm7591_vm10, %v3929_v30, %v3933_v42  ;;  %3409 = vrot.lane.b32.xlu1 %v5972_v60, %s6942_s5  ;;  %v3939_v8 = vshll.u32 %v6063_v26, 16  ;;  %v6740_v9 = vld [vmem:[#allocation7 + $0xd8] sm:$0xff]   ;;  %v2349_v14 = vrot.slane %v2347_v15, 4  ;;  %v5933_v24 = vld [vmem:[%s7574_s28 + $0x114] sm:$0xe]  ;;  %v4496_v25 = vld [vmem:[#allocation3 + $0x208] sm:$0xff] }
 0x197   : > { %6547 = vmatpush3.bf16.msra.mxu0 %v8057_v18  ;;  %v6086_v10 = vcombine.low %v3924_v2, %v3934_v3  ;;  %v2267_v11 = vsel %vm7674_vm13, %v2265_v62, %v2266_v55  ;;  %v4437_v16 = vld [vmem:[#allocation3 + $0x30] sm:$0xff]  ;;  %v2090_v17 = vpop.permute.xlu0 %2089  ;;  %v8108_v19 = vpop.permute.xlu1 %2585  ;;  %v3938_v22 = vrot.slane %v3936_v7, 4  ;;  %v3945_v18 = vshll.u32 %v6064_v4, 16  ;;  %v5934_v32 = vld [vmem:[%s7574_s28 + $0x118] sm:$0xf]  ;;  %v6741_v34 = vld [vmem:[#allocation7 + $0x98] sm:$0xff]  }
 0x198   : > { %6415 = vmatpush3.bf16.msra.mxu1 %v6735_v46  ;;  %v5769_v20 = vcombine.low %v2264_v61, %v2267_v11  ;;  %4887 = vmatprep.mubr.bf16.mxu0 %v4437_v16  ;;  %v3941_v23 = vrot.slane %v3939_v8, 5  ;;  %2135 = vst.msk [vmem:[#allocation3 + $0x78] sm:$0xff] %vm2131_vm15, %v2090_v17  ;;  %v2351_v27 = vsel %vm7674_vm13, %v2349_v14, %v2350_v21  ;;  %v3949_v28 = vshrl.u32 %v6064_v4, 16  ;;  %v5935_v33 = vld [vmem:[%s7574_s28 + $0x11c] sm:$0x1]  ;;  %v6760_v43 = vld [vmem:[#allocation7 + $0x110] sm:$0xff]  }
 0x199   : > { %6416 = vmatprep.subr.bf16.mxu1 %v6737_v51  ;;  %4101 = vrot.lane.b32.xlu0 %v6086_v10, %s6942_s5  ;;  %v3955_v31 = vshll.u32 %v6065_v6, 16  ;;  %v5781_v36 = vcombine.low %v2348_v13, %v2351_v27  ;;  %v3947_v38 = vrot.slane %v3945_v18, 5  ;;  %v5957_v41 = vrot.slane %v5933_v24, 9  ;;  %v2157_v42 = vld [vmem:[%s7574_s28 + $0x24] sm:$0xe]  ;;  %v6743_v49 = vld [vmem:[#allocation7 + $0xe0] sm:$0xff]  }
 0x19a   : > { %4888 = vmatmul.mubr.bf16.gmra.mrb[4].mxu0 %v4436_v0  ;;  %2425 = vst.msk [vmem:[#allocation3 + $0x58] sm:$0xff] %vm1583_vm14, %v5769_v20  ;;  %v3942_v37 = vor.u32 %v3941_v23, %v3938_v22  ;;  %v4497_v39 = vld [vmem:[#allocation3 + $0x210] sm:$0xff]  ;;  %v3951_v44 = vrot.slane %v3949_v28, 4  ;;  %v3313_v45 = vrot.slane %v5934_v32, 5  ;;  %v3316_v46 = vrot.slane %v5935_v33, 5  ;;  %v6744_v59 = vld [vmem:[#allocation7 + $0xa0] sm:$0xff]   ;;  %6548 = vmatprep.subr.bf16.mxu0 %v6760_v43 }
 0x19b   : > { %2605 = vst.msk [vmem:[#allocation3 + $0x58] sm:$0xff] %vm2131_vm15, %v8028_v52  ;;  %4983 = vmatprep.mubr.bf16.mxu1 %v4497_v39  ;;  %v2158_v53 = vld [vmem:[%s7574_s28 + $0x28] sm:$0xf]  ;;  %v8122_v47 = vpop.permute.xlu0 %2563  ;;  %v2114_v48 = vpop.permute.xlu1 %2113  ;;  %v3957_v40 = vrot.slane %v3955_v31, 5  ;;  %v2159_v51 = vld [vmem:[%s7574_s28 + $0x2c] sm:$0x1]  ;;  %6549 = vmatpush3.bf16.msra.mxu0 %v6760_v43 }
 0x19c   : > { %6417 = vmatpush3.bf16.msra.mxu1 %v6738_v1  ;;  %2437 = vst.msk [vmem:[#allocation3 + $0x238] sm:$0xff] %vm1583_vm14, %v5781_v36  ;;  %v3943_v50 = vrot.slane %v3942_v37, 4  ;;  %v5754_v54 = vrot.slane %v2157_v42, 9  ;;  %v2270_v55 = vrot.slane %v2158_v53, 5  ;;  %v3952_v52 = vor.u32 %v3951_v44, %v3947_v38  ;;  %v6761_v60 = vld [vmem:[%s7574_s28 + $0xd8] sm:$0xff]   ;;  %v4441_v15 = vld [vmem:[#allocation3 + $0x50] sm:$0xff] }
 0x19d   : > { %4984 = vmatmul.mubr.bf16.gmra.mrb[4].mxu1 %v4496_v25  ;;  %6418 = vmatprep.subr.bf16.mxu1 %v6740_v9  ;;  %2147 = vst.msk [vmem:[#allocation3 + $0x258] sm:$0xff] %vm2131_vm15, %v2114_v48  ;;  %2617 = vst.msk [vmem:[#allocation3 + $0x238] sm:$0xff] %vm2131_vm15, %v8068_v35  ;;  %v3314_v56 = vsel %vm7674_vm13, %v5957_v41, %v3313_v45  ;;  %v3315_v57 = vrot.slane %v3313_v45, 4  ;;  %v2273_v5 = vrot.slane %v2159_v51, 5  ;;  %v6747_v26 = vld [vmem:[#allocation7 + $0xe8] sm:$0xff]   ;;  %v4501_v9 = vld [vmem:[#allocation3 + $0x230] sm:$0xff] }
 0x19e   : > { %v2271_v63 = vsel %vm7674_vm13, %v5754_v54, %v2270_v55  ;;  %v2272_v30 = vrot.slane %v2270_v55, 4  ;;  %v3948_v61 = vsel %vm7591_vm10, %v3943_v50, %v3947_v38  ;;  %v3953_v35 = vrot.slane %v3952_v52, 4  ;;  %v2193_v2 = vld [vmem:[%s7574_s28 + $0x12c] sm:$0xe]  ;;  %1592 = vst.msk [vmem:[#allocation3 + $0x140] sm:$0xff] %vm1583_vm14, %v6761_v60  ;;  %v6748_v10 = vld [vmem:[#allocation7 + $0xa8] sm:$0xff]  }
 0x19f   : > { %v3317_v62 = vsel %vm7674_vm13, %v3315_v57, %v3316_v46  ;;  %v2092_v21 = vpop.permute.xlu0 %2091  ;;  %v2194_v6 = vld [vmem:[%s7574_s28 + $0x130] sm:$0xf]  ;;  %v2195_v7 = vld [vmem:[%s7574_s28 + $0x134] sm:$0x1]  ;;  %v5766_v8 = vrot.slane %v2193_v2, 9  ;;  %v6762_v11 = vld [vmem:[%s7574_s28 + $0x48] sm:$0xff]  }
 0x1a0   : > { %6419 = vmatpush3.bf16.msra.mxu1 %v6741_v34  ;;  %v5973_v0 = vcombine.low %v3314_v56, %v3317_v62  ;;  %v2274_v1 = vsel %vm7674_vm13, %v2272_v30, %v2273_v5  ;;  %2136 = vst.msk [vmem:[#allocation3 + $0xa0] sm:$0xff] %vm2131_vm15, %v2092_v21  ;;  %v3958_v3 = vsel %vm7591_vm10, %v3953_v35, %v3957_v40  ;;  %v2354_v14 = vrot.slane %v2194_v6, 5  ;;  %v6749_v20 = vld [vmem:[#allocation7 + $0xf0] sm:$0xff]   ;;  %v6066_v23 = vld [vmem:[%s7574_s28 + $0x12c] sm:$0xf] }
 0x1a1   : > { %6420 = vmatprep.subr.bf16.mxu1 %v6743_v49  ;;  %v5770_v4 = vcombine.low %v2271_v63, %v2274_v1  ;;  %v6087_v13 = vcombine.low %v3948_v61, %v3958_v3  ;;  %v2357_v16 = vrot.slane %v2195_v7, 5  ;;  %v6763_v22 = vld [vmem:[%s7574_s28 + $0xe4] sm:$0xff]   ;;  %v6067_v18 = vld [vmem:[%s7574_s28 + $0x130] sm:$0xf]  ;;  %3587 = vst.msk [vmem:[#allocation3 + $0xb8] sm:$0xff] %vm1583_vm14, %v6762_v11  ;;  %v3960_v31 = vshrl.u32 %v6066_v23, 16 }
 0x1a2   : > { %3411 = vrot.lane.b32.xlu1 %v5973_v0, %s6942_s5  ;;  %v4442_v17 = vld [vmem:[#allocation3 + $0x58] sm:$0xff]  ;;  %v2355_v25 = vsel %vm7674_vm13, %v5766_v8, %v2354_v14  ;;  %v2356_v27 = vrot.slane %v2354_v14, 4  ;;  %v6068_v28 = vld [vmem:[%s7574_s28 + $0x134] sm:$0x1]  ;;  %v3963_v32 = vshll.u32 %v6066_v23, 16  ;;  %1593 = vst.msk [vmem:[#allocation3 + $0x168] sm:$0xff] %vm1583_vm14, %v6763_v22 }
 0x1a3   : > { %2426 = vst.msk [vmem:[#allocation3 + $0x80] sm:$0xff] %vm1583_vm14, %v5770_v4  ;;  %4895 = vmatprep.mubr.bf16.mxu0 %v4442_v17  ;;  %v8153_v24 = vpop.permute.xlu0 %2565  ;;  %4103 = vrot.lane.b32.xlu0 %v6087_v13, %s6942_s5  ;;  %v3969_v36 = vshll.u32 %v6067_v18, 16  ;;  %v3973_v37 = vshrl.u32 %v6067_v18, 16  ;;  %v3979_v38 = vshll.u32 %v6068_v28, 16  ;;  %v3962_v41 = vrot.slane %v3960_v31, 4  ;;  %v6754_v49 = vld [vmem:[#allocation7 + $0xf8] sm:$0xff]  }
 0x1a4   : > { %6421 = vmatpush3.bf16.msra.mxu1 %v6744_v59  ;;  %2606 = vst.msk [vmem:[#allocation3 + $0x80] sm:$0xff] %vm2131_vm15, %v8088_v58  ;;  %4896 = vmatmul.mubr.bf16.gmra.mrb[8].mxu0 %v4441_v15  ;;  %v4502_v33 = vld [vmem:[#allocation3 + $0x238] sm:$0xff]  ;;  %v6751_v58 = vld [vmem:[#allocation7 + $0xb0] sm:$0xff]   ;;  %v2358_v39 = vsel %vm7674_vm13, %v2356_v27, %v2357_v16  ;;  %v3965_v42 = vrot.slane %v3963_v32, 5  ;;  %v2160_v55 = vld [vmem:[%s7574_s28 + $0x30] sm:$0xe] }
 0x1a5   : > { %v4080_v34 = vpop.permute.xlu1 %4079  ;;  %4991 = vmatprep.mubr.bf16.mxu1 %v4502_v33  ;;  %6422 = vmatprep.subr.bf16.mxu1 %v6747_v26  ;;  %v5936_v43 = vld [vmem:[%s7574_s28 + $0x120] sm:$0xe]  ;;  %v5782_v44 = vcombine.low %v2355_v25, %v2358_v39  ;;  %v3971_v45 = vrot.slane %v3969_v36, 5  ;;  %v3975_v46 = vrot.slane %v3973_v37, 4  ;;  %v3981_v53 = vrot.slane %v3979_v38, 5  ;;  %v4446_v30 = vld [vmem:[#allocation3 + $0x78] sm:$0xff] }
 0x1a6   : > { %4127 = vst.msk [vmem:[#allocation3 + $0x18] sm:$0xff] %vm2131_vm15, %v4080_v34  ;;  %4992 = vmatmul.mubr.bf16.gmra.mrb[8].mxu1 %v4501_v9  ;;  %v5937_v48 = vld [vmem:[%s7574_s28 + $0x124] sm:$0xf]  ;;  %v3966_v50 = vor.u32 %v3965_v42, %v3962_v41  ;;  %v5938_v40 = vld [vmem:[%s7574_s28 + $0x128] sm:$0x1]  ;;  %v5958_v51 = vrot.slane %v5936_v43, 9 }
 0x1a7   : > { %v3320_v54 = vrot.slane %v5937_v48, 5  ;;  %2438 = vst.msk [vmem:[#allocation3 + $0x260] sm:$0xff] %vm1583_vm14, %v5782_v44  ;;  %v3976_v56 = vor.u32 %v3975_v46, %v3971_v45  ;;  %v3323_v57 = vrot.slane %v5938_v40, 5  ;;  %v2161_v5 = vld [vmem:[%s7574_s28 + $0x34] sm:$0xf]  ;;  %v5755_v63 = vrot.slane %v2160_v55, 9 }
 0x1a8   : > { %6423 = vmatpush3.bf16.msra.mxu1 %v6748_v10  ;;  %v2162_v59 = vld [vmem:[%s7574_s28 + $0x38] sm:$0x1]  ;;  %v6755_v61 = vld [vmem:[#allocation7 + $0xb8] sm:$0xff]   ;;  %2618 = vst.msk [vmem:[#allocation3 + $0x260] sm:$0xff] %vm2131_vm15, %v8108_v19  ;;  %v3967_v35 = vrot.slane %v3966_v50, 4  ;;  %v2277_v21 = vrot.slane %v2161_v5, 5 }
 0x1a9   : > { %v8170_v52 = vpop.permute.xlu1 %3387  ;;  %6424 = vmatprep.subr.bf16.mxu1 %v6749_v20  ;;  %v3321_v62 = vsel %vm7674_vm13, %v5958_v51, %v3320_v54  ;;  %v3322_v15 = vrot.slane %v3320_v54, 4  ;;  %v6764_v26 = vld [vmem:[%s7574_s28 + $0x54] sm:$0xff]   ;;  %v3977_v0 = vrot.slane %v3976_v56, 4  ;;  %v2280_v1 = vrot.slane %v2162_v59, 5  ;;  %v4506_v13 = vld [vmem:[#allocation3 + $0x258] sm:$0xff] }
 0x1aa   : > { %v2094_v60 = vpop.permute.xlu0 %2093  ;;  %v3972_v2 = vsel %vm7591_vm10, %v3967_v35, %v3971_v45  ;;  %v2278_v19 = vsel %vm7674_vm13, %v5755_v63, %v2277_v21  ;;  %v2279_v4 = vrot.slane %v2277_v21, 4  ;;  %3588 = vst.msk [vmem:[#allocation3 + $0xe0] sm:$0xff] %vm1583_vm14, %v6764_v26  ;;  %v6069_v17 = vld [vmem:[%s7574_s28 + $0x138] sm:$0xf]  ;;  %v6070_v20 = vld [vmem:[%s7574_s28 + $0x13c] sm:$0xf] }
 0x1ab   : > { %2137 = vst.msk [vmem:[#allocation3 + $0xc8] sm:$0xff] %vm2131_vm15, %v2094_v60  ;;  %v3324_v3 = vsel %vm7674_vm13, %v3322_v15, %v3323_v57  ;;  %v4447_v6 = vld [vmem:[#allocation3 + $0x80] sm:$0xff]  ;;  %v3982_v7 = vsel %vm7591_vm10, %v3977_v0, %v3981_v53  ;;  %v6071_v22 = vld [vmem:[%s7574_s28 + $0x140] sm:$0x1]  ;;  %v3984_v23 = vshrl.u32 %v6069_v17, 16  ;;  %v3987_v18 = vshll.u32 %v6069_v17, 16 }
 0x1ac   : > { %6425 = vmatpush3.bf16.msra.mxu1 %v6751_v58  ;;  %v5974_v8 = vcombine.low %v3321_v62, %v3324_v3  ;;  %4903 = vmatprep.mubr.bf16.mxu0 %v4447_v6  ;;  %v6088_v10 = vcombine.low %v3972_v2, %v3982_v7  ;;  %v2281_v11 = vsel %vm7674_vm13, %v2279_v4, %v2280_v1  ;;  %v3993_v25 = vshll.u32 %v6070_v20, 16  ;;  %v5939_v37 = vld [vmem:[%s7574_s28 + $0x12c] sm:$0xe]  ;;  %v5940_v39 = vld [vmem:[%s7574_s28 + $0x130] sm:$0xf] }
 0x1ad   : > { %6426 = vmatprep.subr.bf16.mxu1 %v6754_v49  ;;  %4904 = vmatmul.mubr.bf16.gmra.mrb[12].mxu0 %v4446_v30  ;;  %v5771_v16 = vcombine.low %v2278_v19, %v2281_v11  ;;  %v3997_v27 = vshrl.u32 %v6070_v20, 16  ;;  %v4003_v28 = vshll.u32 %v6071_v22, 16  ;;  %v3986_v32 = vrot.slane %v3984_v23, 4  ;;  %v5941_v41 = vld [vmem:[%s7574_s28 + $0x134] sm:$0x1]  ;;  %v4434_v59 = vld [vmem:[#allocation3 + $0x18] sm:$0xff] }
 0x1ae   : > { %v8190_v9 = vpop.permute.xlu0 %2567  ;;  %3413 = vrot.lane.b32.xlu1 %v5974_v8, %s6942_s5  ;;  %4105 = vrot.lane.b32.xlu0 %v6088_v10, %s6942_s5  ;;  %v3989_v33 = vrot.slane %v3987_v18, 5  ;;  %v3995_v34 = vrot.slane %v3993_v25, 5  ;;  %v5959_v42 = vrot.slane %v5939_v37, 9  ;;  %v3327_v45 = vrot.slane %v5940_v39, 5  ;;  %v2163_v53 = vld [vmem:[%s7574_s28 + $0x3c] sm:$0xe] }
 0x1af   : > { %v4082_v14 = vpop.permute.xlu1 %4081  ;;  %2427 = vst.msk [vmem:[#allocation3 + $0xa8] sm:$0xff] %vm1583_vm14, %v5771_v16  ;;  %v4507_v31 = vld [vmem:[#allocation3 + $0x260] sm:$0xff]  ;;  %v3999_v36 = vrot.slane %v3997_v27, 4  ;;  %v4005_v58 = vrot.slane %v4003_v28, 5  ;;  %v3330_v46 = vrot.slane %v5941_v41, 5  ;;  %v5756_v50 = vrot.slane %v2163_v53, 9 }
 0x1b0   : > { %4128 = vst.msk [vmem:[#allocation3 + $0x40] sm:$0xff] %vm2131_vm15, %v4082_v14  ;;  %6427 = vmatpush3.bf16.msra.mxu1 %v6755_v61  ;;  %2607 = vst.msk [vmem:[#allocation3 + $0xa8] sm:$0xff] %vm2131_vm15, %v8122_v47  ;;  %4999 = vmatprep.mubr.bf16.mxu1 %v4507_v31  ;;  %v3990_v47 = vor.u32 %v3989_v33, %v3986_v32  ;;  %v2164_v48 = vld [vmem:[%s7574_s28 + $0x40] sm:$0xf]  ;;  %v2165_v49 = vld [vmem:[%s7574_s28 + $0x44] sm:$0x1]  ;;  %v3328_v56 = vsel %vm7674_vm13, %v5959_v42, %v3327_v45 }
 0x1b1   : > { %5000 = vmatmul.mubr.bf16.gmra.mrb[12].mxu1 %v4506_v13  ;;  %v4000_v44 = vor.u32 %v3999_v36, %v3995_v34  ;;  %v2284_v40 = vrot.slane %v2164_v48, 5  ;;  %v5833_v51 = vld [vmem:[%s7574_s28 + $0xc] sm:$0xf]  ;;  %v3329_v57 = vrot.slane %v3327_v45, 4  ;;  %v5834_v5 = vld [vmem:[%s7574_s28 + $0x10] sm:$0xf] }
 0x1b2   : > { %v3991_v54 = vrot.slane %v3990_v47, 4  ;;  %v2287_v60 = vrot.slane %v2165_v49, 5  ;;  %v5835_v61 = vld [vmem:[%s7574_s28 + $0x14] sm:$0x1]  ;;  %v2668_v35 = vshrl.u32 %v5833_v51, 16  ;;  %5040 = vmatprep.mubr.bf16.mxu1 %v4434_v59  ;;  %v2671_v26 = vshll.u32 %v5833_v51, 16 }
 0x1b3   : > { %v8204_v38 = vpop.permute.xlu1 %3389  ;;  %v4001_v55 = vrot.slane %v4000_v44, 4  ;;  %v2285_v63 = vsel %vm7674_vm13, %v5756_v50, %v2284_v40  ;;  %v2286_v30 = vrot.slane %v2284_v40, 4  ;;  %v3331_v21 = vsel %vm7674_vm13, %v3329_v57, %v3330_v46  ;;  %v4451_v0 = vld [vmem:[#allocation3 + $0xa0] sm:$0xff]  ;;  %v6766_v25 = vld [vmem:[%s7574_s28 + $0x60] sm:$0xff]   ;;  %v6767_v33 = vld [vmem:[#allocation7 + $0x118] sm:$0xff]  }
 0x1b4   : > { %v2096_v43 = vpop.permute.xlu0 %2095  ;;  %v3996_v62 = vsel %vm7591_vm10, %v3991_v54, %v3995_v34  ;;  %v5975_v19 = vcombine.low %v3328_v56, %v3331_v21  ;;  %v2670_v6 = vrot.slane %v2668_v35, 4  ;;  %v2673_v10 = vrot.slane %v2671_v26, 5  ;;  %v6765_v14 = vld [vmem:[%s7574_s28 + $0xf0] sm:$0xff]   ;;  %v6072_v31 = vld [vmem:[%s7574_s28 + $0x144] sm:$0xf]  ;;  %3589 = vst.msk [vmem:[#allocation3 + $0x108] sm:$0xff] %vm1583_vm14, %v6766_v25  ;;  %6550 = vmatprep.subr.bf16.mxu0 %v6767_v33 }
 0x1b5   : > { %2138 = vst.msk [vmem:[#allocation3 + $0xf0] sm:$0xff] %vm2131_vm15, %v2096_v43  ;;  %v4006_v15 = vsel %vm7591_vm10, %v4001_v55, %v4005_v58  ;;  %v2288_v4 = vsel %vm7674_vm13, %v2286_v30, %v2287_v60  ;;  %v2677_v11 = vshll.u32 %v5834_v5, 16  ;;  %v2681_v13 = vshrl.u32 %v5834_v5, 16  ;;  %v6073_v34 = vld [vmem:[%s7574_s28 + $0x148] sm:$0xf]  ;;  %6551 = vmatpush3.bf16.msra.mxu0 %v6767_v33  ;;  %v6768_v45 = vld [vmem:[%s7574_s28 + $0xfc] sm:$0xff]  }
 0x1b6   : > { %v6089_v3 = vcombine.low %v3996_v62, %v4006_v15  ;;  %v5772_v8 = vcombine.low %v2285_v63, %v2288_v4  ;;  %3415 = vrot.lane.b32.xlu1 %v5975_v19, %s6942_s5  ;;  %v2687_v16 = vshll.u32 %v5835_v61, 16  ;;  %v2674_v17 = vor.u32 %v2673_v10, %v2670_v6  ;;  %1594 = vst.msk [vmem:[#allocation3 + $0x190] sm:$0xff] %vm1583_vm14, %v6765_v14  ;;  %v6074_v36 = vld [vmem:[%s7574_s28 + $0x14c] sm:$0x1]  ;;  %v5942_v49 = vld [vmem:[%s7574_s28 + $0x138] sm:$0xe] }
 0x1b7   : > { %v4452_v7 = vld [vmem:[#allocation3 + $0xa8] sm:$0xff]  ;;  %v2679_v20 = vrot.slane %v2677_v11, 5  ;;  %v2683_v22 = vrot.slane %v2681_v13, 4  ;;  %v4008_v37 = vshrl.u32 %v6072_v31, 16  ;;  %v4011_v58 = vshll.u32 %v6072_v31, 16  ;;  %1595 = vst.msk [vmem:[#allocation3 + $0x1b8] sm:$0xff] %vm1583_vm14, %v6768_v45 }
 0x1b8   : > { %v4084_v1 = vpop.permute.xlu1 %4083  ;;  %v8225_v2 = vpop.permute.xlu0 %2569  ;;  %4911 = vmatprep.mubr.bf16.mxu0 %v4452_v7  ;;  %4107 = vrot.lane.b32.xlu0 %v6089_v3, %s6942_s5  ;;  %2428 = vst.msk [vmem:[#allocation3 + $0xd0] sm:$0xff] %vm1583_vm14, %v5772_v8  ;;  %v2689_v18 = vrot.slane %v2687_v16, 5  ;;  %v2675_v27 = vrot.slane %v2674_v17, 4  ;;  %v4017_v41 = vshll.u32 %v6073_v34, 16  ;;  %v4021_v42 = vshrl.u32 %v6073_v34, 16 }
 0x1b9   : > { %4129 = vst.msk [vmem:[#allocation3 + $0x68] sm:$0xff] %vm2131_vm15, %v4084_v1  ;;  %4912 = vmatmul.mubr.bf16.gmra.mrb[16].mxu0 %v4451_v0  ;;  %2608 = vst.msk [vmem:[#allocation3 + $0xd0] sm:$0xff] %vm2131_vm15, %v8153_v24  ;;  %v2684_v28 = vor.u32 %v2683_v22, %v2679_v20  ;;  %v4010_v43 = vrot.slane %v4008_v37, 4  ;;  %v4013_v47 = vrot.slane %v4011_v58, 5  ;;  %v4027_v44 = vshll.u32 %v6074_v36, 16 }
 0x1ba   : > { %v2680_v24 = vsel %vm7591_vm10, %v2675_v27, %v2679_v20  ;;  %v4019_v53 = vrot.slane %v4017_v41, 5  ;;  %v4023_v48 = vrot.slane %v4021_v42, 4  ;;  %v5943_v50 = vld [vmem:[%s7574_s28 + $0x13c] sm:$0xf]  ;;  %v5944_v57 = vld [vmem:[%s7574_s28 + $0x140] sm:$0x1] }
 0x1bb   : > { %v2685_v39 = vrot.slane %v2684_v28, 4  ;;  %v4014_v55 = vor.u32 %v4013_v47, %v4010_v43  ;;  %v4029_v56 = vrot.slane %v4027_v44, 5  ;;  %v5960_v5 = vrot.slane %v5942_v49, 9  ;;  %v2166_v59 = vld [vmem:[%s7574_s28 + $0x48] sm:$0xe] }
 0x1bc   : > { %v8234_v23 = vpop.permute.xlu1 %3391  ;;  %v4024_v63 = vor.u32 %v4023_v48, %v4019_v53  ;;  %v3334_v30 = vrot.slane %v5943_v50, 5  ;;  %v3337_v60 = vrot.slane %v5944_v57, 5  ;;  %v2167_v61 = vld [vmem:[%s7574_s28 + $0x4c] sm:$0xf]  ;;  %v2168_v35 = vld [vmem:[%s7574_s28 + $0x50] sm:$0x1] }
 0x1bd   : > { %v2690_v46 = vsel %vm7591_vm10, %v2685_v39, %v2689_v18  ;;  %v4015_v62 = vrot.slane %v4014_v55, 4  ;;  %v5757_v15 = vrot.slane %v2166_v59, 9  ;;  %v2291_v21 = vrot.slane %v2167_v61, 5  ;;  %v5836_v0 = vld [vmem:[%s7574_s28 + $0x18] sm:$0xf] }
 0x1be   : > { %v5881_v54 = vcombine.low %v2680_v24, %v2690_v46  ;;  %v2294_v26 = vrot.slane %v2168_v35, 5  ;;  %v4025_v1 = vrot.slane %v4024_v63, 4  ;;  %v3335_v3 = vsel %vm7674_vm13, %v5960_v5, %v3334_v30  ;;  %v5837_v4 = vld [vmem:[%s7574_s28 + $0x1c] sm:$0xf]  ;;  %v5838_v6 = vld [vmem:[%s7574_s28 + $0x20] sm:$0x1] }
 0x1bf   : > { %v2098_v32 = vpop.permute.xlu0 %2097  ;;  %v3336_v19 = vrot.slane %v3334_v30, 4  ;;  %v4020_v8 = vsel %vm7591_vm10, %v4015_v62, %v4019_v53  ;;  %v2292_v10 = vsel %vm7674_vm13, %v5757_v15, %v2291_v21  ;;  %v2293_v11 = vrot.slane %v2291_v21, 4  ;;  %v2170_v33 = vld [vmem:[%s7574_s28 + $0x58] sm:$0xf]  ;;  %v4439_v24 = vld [vmem:[#allocation3 + $0x40] sm:$0xff] }
 0x1c0   : > { %2139 = vst.msk [vmem:[#allocation3 + $0x118] sm:$0xff] %vm2131_vm15, %v2098_v32  ;;  %v2692_v13 = vshrl.u32 %v5836_v0, 16  ;;  %v4030_v14 = vsel %vm7591_vm10, %v4025_v1, %v4029_v56  ;;  %v2695_v17 = vshll.u32 %v5836_v0, 16  ;;  %v2701_v20 = vshll.u32 %v5837_v4, 16  ;;  %v4457_v31 = vld [vmem:[#allocation3 + $0xd0] sm:$0xff]  ;;  %v6769_v15 = vld [vmem:[%s7574_s28 + $0x6c] sm:$0xff]  }
 0x1c1   : > { %3115 = vst.msk [vmem:[#allocation3 + $0x10] sm:$0xff] %vm1583_vm14, %v5881_v54  ;;  %v3338_v16 = vsel %vm7674_vm13, %v3336_v19, %v3337_v60  ;;  %v6090_v18 = vcombine.low %v4020_v8, %v4030_v14  ;;  %v2295_v27 = vsel %vm7674_vm13, %v2293_v11, %v2294_v26  ;;  %v2169_v32 = vld [vmem:[%s7574_s28 + $0x54] sm:$0xe]  ;;  %v2705_v58 = vshrl.u32 %v5837_v4, 16  ;;  %4919 = vmatprep.mubr.bf16.mxu0 %v4457_v31  ;;  %v2171_v39 = vld [vmem:[%s7574_s28 + $0x5c] sm:$0x1] }
 0x1c2   : > { %v4086_v40 = vpop.permute.xlu1 %4085  ;;  %3435 = vst.msk [vmem:[#allocation3 + $0x10] sm:$0xff] %vm2131_vm15, %v8170_v52  ;;  %v4456_v52 = vld [vmem:[#allocation3 + $0xc8] sm:$0xff]  ;;  %v5976_v25 = vcombine.low %v3335_v3, %v3338_v16  ;;  %v2694_v28 = vrot.slane %v2692_v13, 4  ;;  %v5773_v34 = vcombine.low %v2292_v10, %v2295_v27  ;;  %v2697_v36 = vrot.slane %v2695_v17, 5  ;;  %v5839_v44 = vld [vmem:[%s7574_s28 + $0x24] sm:$0xf] }
 0x1c3   : > { %v8252_v51 = vpop.permute.xlu0 %2571  ;;  %4130 = vst.msk [vmem:[#allocation3 + $0x90] sm:$0xff] %vm2131_vm15, %v4086_v40  ;;  %v2703_v37 = vrot.slane %v2701_v20, 5  ;;  %4109 = vrot.lane.b32.xlu0 %v6090_v18, %s6942_s5  ;;  %v2711_v41 = vshll.u32 %v5838_v6, 16  ;;  %v5758_v42 = vrot.slane %v2169_v32, 9  ;;  %v2298_v43 = vrot.slane %v2170_v33, 5  ;;  %4920 = vmatmul.mubr.bf16.gmra.mrb[20].mxu0 %v4456_v52  ;;  %v4461_v52 = vld [vmem:[#allocation3 + $0xf0] sm:$0xff] }
 0x1c4   : > { %3417 = vrot.lane.b32.xlu1 %v5976_v25, %s6942_s5  ;;  %v2301_v47 = vrot.slane %v2171_v39, 5  ;;  %2429 = vst.msk [vmem:[#allocation3 + $0xf8] sm:$0xff] %vm1583_vm14, %v5773_v34  ;;  %v2698_v45 = vor.u32 %v2697_v36, %v2694_v28  ;;  %v2707_v46 = vrot.slane %v2705_v58, 4  ;;  %v5840_v53 = vld [vmem:[%s7574_s28 + $0x28] sm:$0xf]  ;;  %v2716_v49 = vshrl.u32 %v5839_v44, 16 }
 0x1c5   : > { %v5841_v48 = vld [vmem:[%s7574_s28 + $0x2c] sm:$0x1]  ;;  %2609 = vst.msk [vmem:[#allocation3 + $0xf8] sm:$0xff] %vm2131_vm15, %v8190_v9  ;;  %v2713_v54 = vrot.slane %v2711_v41, 5  ;;  %v2299_v56 = vsel %vm7674_vm13, %v5758_v42, %v2298_v43  ;;  %v2300_v57 = vrot.slane %v2298_v43, 4  ;;  %v2719_v5 = vshll.u32 %v5839_v44, 16 }
 0x1c6   : > { %v8268_v7 = vpop.permute.xlu1 %3393  ;;  %v2699_v59 = vrot.slane %v2698_v45, 4  ;;  %v2708_v63 = vor.u32 %v2707_v46, %v2703_v37  ;;  %v2718_v30 = vrot.slane %v2716_v49, 4  ;;  %v2725_v60 = vshll.u32 %v5840_v53, 16  ;;  %v2172_v3 = vld [vmem:[%s7574_s28 + $0xd8] sm:$0xe]  ;;  %3590 = vst.msk [vmem:[#allocation3 + $0x130] sm:$0xff] %vm1583_vm14, %v6769_v15 }
 0x1c7   : > { %v2302_v9 = vsel %vm7674_vm13, %v2300_v57, %v2301_v47  ;;  %v2721_v61 = vrot.slane %v2719_v5, 5  ;;  %v2729_v35 = vshrl.u32 %v5840_v53, 16  ;;  %v2735_v62 = vshll.u32 %v5841_v48, 16  ;;  %v2173_v10 = vld [vmem:[%s7574_s28 + $0xdc] sm:$0xf]  ;;  %v6770_v46 = vld [vmem:[%s7574_s28 + $0xf0] sm:$0xff]  }
 0x1c8   : > { %v2704_v21 = vsel %vm7591_vm10, %v2699_v59, %v2703_v37  ;;  %v2709_v26 = vrot.slane %v2708_v63, 4  ;;  %v5774_v0 = vcombine.low %v2299_v56, %v2302_v9  ;;  %v2727_v1 = vrot.slane %v2725_v60, 5  ;;  %v2174_v11 = vld [vmem:[%s7574_s28 + $0xe0] sm:$0x1]  ;;  %v5842_v20 = vld [vmem:[%s7574_s28 + $0x30] sm:$0xf] }
 0x1c9   : > { %v2100_v22 = vpop.permute.xlu0 %2099  ;;  %v4433_v55 = vld [vmem:[#allocation3 + $0x10] sm:$0xff]  ;;  %v2722_v4 = vor.u32 %v2721_v61, %v2718_v30  ;;  %v2731_v6 = vrot.slane %v2729_v35, 4  ;;  %v2737_v8 = vrot.slane %v2735_v62, 5  ;;  %v5759_v14 = vrot.slane %v2172_v3, 9  ;;  %v5843_v28 = vld [vmem:[%s7574_s28 + $0x34] sm:$0xf] }
 0x1ca   : > { %2140 = vst.msk [vmem:[#allocation3 + $0x140] sm:$0xff] %vm2131_vm15, %v2100_v22  ;;  %5041 = vmatmul.mubr.bf16.vlgmr.msra.gmra.mrb[16].mxu1 %v4433_v55  ;;  %v2714_v13 = vsel %vm7591_vm10, %v2709_v26, %v2713_v54  ;;  %v2305_v16 = vrot.slane %v2173_v10, 5  ;;  %v2308_v17 = vrot.slane %v2174_v11, 5  ;;  %v5844_v31 = vld [vmem:[%s7574_s28 + $0x38] sm:$0x1]  ;;  %v2740_v32 = vshrl.u32 %v5842_v20, 16 }
 0x1cb   : > { %5048 = vmatprep.mubr.bf16.mxu1 %v4439_v24  ;;  %2430 = vst.msk [vmem:[#allocation3 + $0x120] sm:$0xff] %vm1583_vm14, %v5774_v0  ;;  %v5882_v18 = vcombine.low %v2704_v21, %v2714_v13  ;;  %v2723_v25 = vrot.slane %v2722_v4, 4  ;;  %v2732_v27 = vor.u32 %v2731_v6, %v2727_v1  ;;  %v2743_v37 = vshll.u32 %v5842_v20, 16  ;;  %v2175_v57 = vld [vmem:[%s7574_s28 + $0xe4] sm:$0xe]  ;;  %3591 = vst.msk [vmem:[#allocation3 + $0x158] sm:$0xff] %vm1583_vm14, %v6770_v46 }
 0x1cc   : > { %v4088_v50 = vpop.permute.xlu1 %4087  ;;  %2610 = vst.msk [vmem:[#allocation3 + $0x120] sm:$0xff] %vm2131_vm15, %v8225_v2  ;;  %v4462_v33 = vld [vmem:[#allocation3 + $0xf8] sm:$0xff]  ;;  %v2306_v34 = vsel %vm7674_vm13, %v5759_v14, %v2305_v16  ;;  %v2307_v36 = vrot.slane %v2305_v16, 4  ;;  %v2749_v58 = vshll.u32 %v5843_v28, 16  ;;  %v2742_v39 = vrot.slane %v2740_v32, 4  ;;  %v6773_v61 = vld [vmem:[%s7574_s28 + $0x114] sm:$0xff]  }
 0x1cd   : > { %v8290_v40 = vpop.permute.xlu0 %2573  ;;  %4131 = vst.msk [vmem:[#allocation3 + $0xb8] sm:$0xff] %vm2131_vm15, %v4088_v50  ;;  %v2728_v2 = vsel %vm7591_vm10, %v2723_v25, %v2727_v1  ;;  %v2733_v24 = vrot.slane %v2732_v27, 4  ;;  %4927 = vmatprep.mubr.bf16.mxu0 %v4462_v33  ;;  %v2753_v41 = vshrl.u32 %v5843_v28, 16  ;;  %v2745_v43 = vrot.slane %v2743_v37, 5  ;;  %v6771_v50 = vld [vmem:[%s7574_s28 + $0xfc] sm:$0xff]   ;;  %v6772_v5 = vld [vmem:[%s7574_s28 + $0x108] sm:$0xff]  }
 0x1ce   : > { %3116 = vst.msk [vmem:[#allocation3 + $0x38] sm:$0xff] %vm1583_vm14, %v5882_v18  ;;  %4928 = vmatmul.mubr.bf16.gmra.mrb[24].mxu0 %v4461_v52  ;;  %v2309_v42 = vsel %vm7674_vm13, %v2307_v36, %v2308_v17  ;;  %v2751_v47 = vrot.slane %v2749_v58, 5  ;;  %v2759_v44 = vshll.u32 %v5844_v31, 16  ;;  %v4466_v63 = vld [vmem:[#allocation3 + $0x118] sm:$0xff]  ;;  %v5760_v9 = vrot.slane %v2175_v57, 9  ;;  %3592 = vst.msk [vmem:[#allocation3 + $0x180] sm:$0xff] %vm1583_vm14, %v6771_v50 }
 0x1cf   : > { %3436 = vst.msk [vmem:[#allocation3 + $0x38] sm:$0xff] %vm2131_vm15, %v8204_v38  ;;  %v2738_v53 = vsel %vm7591_vm10, %v2733_v24, %v2737_v8  ;;  %v5775_v48 = vcombine.low %v2306_v34, %v2309_v42  ;;  %v2755_v49 = vrot.slane %v2753_v41, 4  ;;  %v2746_v55 = vor.u32 %v2745_v43, %v2742_v39  ;;  %v2176_v30 = vld [vmem:[%s7574_s28 + $0xe8] sm:$0xf]  ;;  %v2177_v60 = vld [vmem:[%s7574_s28 + $0xec] sm:$0x1] }
 0x1d0   : > { %v8303_v19 = vpop.permute.xlu1 %3395  ;;  %v5883_v54 = vcombine.low %v2728_v2, %v2738_v53  ;;  %v2761_v56 = vrot.slane %v2759_v44, 5  ;;  %v4444_v35 = vld [vmem:[#allocation3 + $0x68] sm:$0xff]  ;;  %v2312_v21 = vrot.slane %v2176_v30, 5  ;;  %v2315_v26 = vrot.slane %v2177_v60, 5  ;;  %3593 = vst.msk [vmem:[#allocation3 + $0x1a8] sm:$0xff] %vm1583_vm14, %v6772_v5  ;;  %3594 = vst.msk [vmem:[#allocation3 + $0x1d0] sm:$0xff] %vm1583_vm14, %v6773_v61 }
 0x1d1   : > { %2431 = vst.msk [vmem:[#allocation3 + $0x148] sm:$0xff] %vm1583_vm14, %v5775_v48  ;;  %v2756_v59 = vor.u32 %v2755_v49, %v2751_v47  ;;  %v2747_v62 = vrot.slane %v2746_v55, 4  ;;  %v5845_v0 = vld [vmem:[%s7574_s28 + $0x3c] sm:$0xf]  ;;  %v5846_v4 = vld [vmem:[%s7574_s28 + $0x40] sm:$0xf] }
 0x1d2   : > { %3117 = vst.msk [vmem:[#allocation3 + $0x60] sm:$0xff] %vm1583_vm14, %v5883_v54  ;;  %v5847_v6 = vld [vmem:[%s7574_s28 + $0x44] sm:$0x1]  ;;  %v2764_v8 = vshrl.u32 %v5845_v0, 16  ;;  %v2313_v10 = vsel %vm7674_vm13, %v5760_v9, %v2312_v21  ;;  %v2314_v11 = vrot.slane %v2312_v21, 4  ;;  %v2767_v13 = vshll.u32 %v5845_v0, 16 }
 0x1d3   : > { %v2102_v22 = vpop.permute.xlu0 %2101  ;;  %2611 = vst.msk [vmem:[#allocation3 + $0x148] sm:$0xff] %vm2131_vm15, %v8252_v51  ;;  %v4467_v15 = vld [vmem:[#allocation3 + $0x120] sm:$0xff]  ;;  %3437 = vst.msk [vmem:[#allocation3 + $0x60] sm:$0xff] %vm2131_vm15, %v8234_v23  ;;  %v2757_v3 = vrot.slane %v2756_v59, 4  ;;  %v2752_v51 = vsel %vm7591_vm10, %v2747_v62, %v2751_v47  ;;  %v2773_v16 = vshll.u32 %v5846_v4, 16  ;;  %v2777_v17 = vshrl.u32 %v5846_v4, 16 }
 0x1d4   : > { %2141 = vst.msk [vmem:[#allocation3 + $0x168] sm:$0xff] %vm2131_vm15, %v2102_v22  ;;  %4935 = vmatprep.mubr.bf16.mxu0 %v4467_v15  ;;  %v2766_v14 = vrot.slane %v2764_v8, 4  ;;  %v2316_v18 = vsel %vm7674_vm13, %v2314_v11, %v2315_v26  ;;  %v2769_v25 = vrot.slane %v2767_v13, 5  ;;  %v2783_v27 = vshll.u32 %v5847_v6, 16  ;;  %v2178_v28 = vld [vmem:[%s7574_s28 + $0xf0] sm:$0xe] }
 0x1d5   : > { %v2762_v23 = vsel %vm7591_vm10, %v2757_v3, %v2761_v56  ;;  %v5776_v31 = vcombine.low %v2313_v10, %v2316_v18  ;;  %v2775_v32 = vrot.slane %v2773_v16, 5  ;;  %v2779_v33 = vrot.slane %v2777_v17, 4  ;;  %v2179_v34 = vld [vmem:[%s7574_s28 + $0xf4] sm:$0xf]  ;;  %v2180_v36 = vld [vmem:[%s7574_s28 + $0xf8] sm:$0x1] }
 0x1d6   : > { %v4438_v52 = vld [vmem:[#allocation3 + $0x38] sm:$0xff]  ;;  %v5884_v22 = vcombine.low %v2752_v51, %v2762_v23  ;;  %4936 = vmatmul.mubr.bf16.gmra.mrb[28].mxu0 %v4466_v63  ;;  %v2770_v37 = vor.u32 %v2769_v25, %v2766_v14  ;;  %v2785_v58 = vrot.slane %v2783_v27, 5  ;;  %v5761_v2 = vrot.slane %v2178_v28, 9  ;;  %v4471_v47 = vld [vmem:[#allocation3 + $0x140] sm:$0xff]  ;;  %v4449_v49 = vld [vmem:[#allocation3 + $0x90] sm:$0xff] }
 0x1d7   : > { %v4090_v45 = vpop.permute.xlu1 %4089  ;;  %v8330_v38 = vpop.permute.xlu0 %2575  ;;  %5049 = vmatmul.mubr.bf16.gmra.mrb[20].mxu1 %v4438_v52  ;;  %v2319_v24 = vrot.slane %v2179_v34, 5  ;;  %v5848_v39 = vld [vmem:[%s7574_s28 + $0x48] sm:$0xf]  ;;  %2432 = vst.msk [vmem:[#allocation3 + $0x170] sm:$0xff] %vm1583_vm14, %v5776_v31  ;;  %v2780_v42 = vor.u32 %v2779_v33, %v2775_v32  ;;  %v2322_v44 = vrot.slane %v2180_v36, 5  ;;  %v6774_v52 = vld [vmem:[%s7574_s28 + $0x120] sm:$0xff]  }
 0x1d8   : > { %4132 = vst.msk [vmem:[#allocation3 + $0xe0] sm:$0xff] %vm2131_vm15, %v4090_v45  ;;  %5056 = vmatprep.mubr.bf16.mxu1 %v4444_v35  ;;  %v5849_v45 = vld [vmem:[%s7574_s28 + $0x4c] sm:$0xf]  ;;  %v5850_v46 = vld [vmem:[%s7574_s28 + $0x50] sm:$0x1]  ;;  %2612 = vst.msk [vmem:[#allocation3 + $0x170] sm:$0xff] %vm2131_vm15, %v8290_v40 }
 0x1d9   : > { %3118 = vst.msk [vmem:[#allocation3 + $0x88] sm:$0xff] %vm1583_vm14, %v5884_v22  ;;  %v2771_v50 = vrot.slane %v2770_v37, 4  ;;  %v2321_v54 = vrot.slane %v2319_v24, 4  ;;  %v2788_v55 = vshrl.u32 %v5848_v39, 16  ;;  %v2781_v56 = vrot.slane %v2780_v42, 4  ;;  %3595 = vst.msk [vmem:[#allocation3 + $0x1f8] sm:$0xff] %vm1583_vm14, %v6774_v52 }
 0x1da   : > { %3438 = vst.msk [vmem:[#allocation3 + $0x88] sm:$0xff] %vm2131_vm15, %v8268_v7  ;;  %v4472_v43 = vld [vmem:[#allocation3 + $0x148] sm:$0xff]  ;;  %v4443_v48 = vld [vmem:[#allocation3 + $0x60] sm:$0xff]  ;;  %v2320_v7 = vsel %vm7674_vm13, %v5761_v2, %v2319_v24  ;;  %v2791_v57 = vshll.u32 %v5848_v39, 16  ;;  %v2797_v5 = vshll.u32 %v5849_v45, 16  ;;  %v2801_v59 = vshrl.u32 %v5849_v45, 16 }
 0x1db   : > { %v8345_v1 = vpop.permute.xlu1 %3397  ;;  %4943 = vmatprep.mubr.bf16.mxu0 %v4472_v43  ;;  %v2776_v63 = vsel %vm7591_vm10, %v2771_v50, %v2775_v32  ;;  %v2323_v40 = vsel %vm7674_vm13, %v2321_v54, %v2322_v44  ;;  %v2790_v30 = vrot.slane %v2788_v55, 4  ;;  %v2807_v60 = vshll.u32 %v5850_v46, 16  ;;  %v2181_v15 = vld [vmem:[%s7574_s28 + $0xfc] sm:$0xe]  ;;  %v2182_v3 = vld [vmem:[%s7574_s28 + $0x100] sm:$0xf] }
 0x1dc   : > { %v2786_v9 = vsel %vm7591_vm10, %v2781_v56, %v2785_v58  ;;  %v5777_v61 = vcombine.low %v2320_v7, %v2323_v40  ;;  %v2793_v35 = vrot.slane %v2791_v57, 5  ;;  %v2799_v62 = vrot.slane %v2797_v5, 5  ;;  %v2183_v4 = vld [vmem:[%s7574_s28 + $0x104] sm:$0x1]  ;;  %v5851_v11 = vld [vmem:[%s7574_s28 + $0x54] sm:$0xf] }
 0x1dd   : > { %v2104_v20 = vpop.permute.xlu0 %2103  ;;  %v5885_v26 = vcombine.low %v2776_v63, %v2786_v9  ;;  %v2803_v0 = vrot.slane %v2801_v59, 4  ;;  %v5762_v8 = vrot.slane %v2181_v15, 9  ;;  %v2326_v51 = vrot.slane %v2182_v3, 5  ;;  %v5852_v16 = vld [vmem:[%s7574_s28 + $0x58] sm:$0xf]  ;;  %v6775_v57 = vld [vmem:[%s7574_s28 + $0x12c] sm:$0xff]  }
 0x1de   : > { %2142 = vst.msk [vmem:[#allocation3 + $0x190] sm:$0xff] %vm2131_vm15, %v2104_v20  ;;  %4944 = vmatmul.mubr.bf16.gmra.mrb[32].mxu0 %v4471_v47  ;;  %v2794_v6 = vor.u32 %v2793_v35, %v2790_v30  ;;  %v2329_v10 = vrot.slane %v2183_v4, 5  ;;  %v2809_v14 = vrot.slane %v2807_v60, 5  ;;  %v5853_v17 = vld [vmem:[%s7574_s28 + $0x5c] sm:$0x1]  ;;  %v2812_v20 = vshrl.u32 %v5851_v11, 16 }
 0x1df   : > { %5057 = vmatmul.mubr.bf16.gmra.mrb[24].mxu1 %v4443_v48  ;;  %2433 = vst.msk [vmem:[#allocation3 + $0x198] sm:$0xff] %vm1583_vm14, %v5777_v61  ;;  %3119 = vst.msk [vmem:[#allocation3 + $0xb0] sm:$0xff] %vm1583_vm14, %v5885_v26  ;;  %v2804_v23 = vor.u32 %v2803_v0, %v2799_v62  ;;  %v4477_v25 = vld [vmem:[#allocation3 + $0x170] sm:$0xff]  ;;  %v4476_v27 = vld [vmem:[#allocation3 + $0x168] sm:$0xff]  ;;  %v2327_v28 = vsel %vm7674_vm13, %v5762_v8, %v2326_v51  ;;  %v2328_v31 = vrot.slane %v2326_v51, 4  ;;  %v2815_v32 = vshll.u32 %v5851_v11, 16 }
 0x1e0   : > { %5064 = vmatprep.mubr.bf16.mxu1 %v4449_v49  ;;  %2613 = vst.msk [vmem:[#allocation3 + $0x198] sm:$0xff] %vm2131_vm15, %v8330_v38  ;;  %3439 = vst.msk [vmem:[#allocation3 + $0xb0] sm:$0xff] %vm2131_vm15, %v8303_v19  ;;  %v2795_v18 = vrot.slane %v2794_v6, 4  ;;  %v4454_v38 = vld [vmem:[#allocation3 + $0xb8] sm:$0xff]  ;;  %4951 = vmatprep.mubr.bf16.mxu0 %v4477_v25  ;;  %v2814_v34 = vrot.slane %v2812_v20, 4  ;;  %v2821_v36 = vshll.u32 %v5852_v16, 16 }
 0x1e1   : > { %v4092_v41 = vpop.permute.xlu1 %4091  ;;  %v8373_v53 = vpop.permute.xlu0 %2577  ;;  %v4448_v22 = vld [vmem:[#allocation3 + $0x88] sm:$0xff]  ;;  %v2805_v33 = vrot.slane %v2804_v23, 4  ;;  %v2825_v37 = vshrl.u32 %v5852_v16, 16  ;;  %v2330_v58 = vsel %vm7674_vm13, %v2328_v31, %v2329_v10  ;;  %v2817_v2 = vrot.slane %v2815_v32, 5  ;;  %v5854_v48 = vld [vmem:[%s7574_s28 + $0x60] sm:$0xf] }
 0x1e2   : > { %4133 = vst.msk [vmem:[#allocation3 + $0x108] sm:$0xff] %vm2131_vm15, %v4092_v41  ;;  %v2800_v19 = vsel %vm7591_vm10, %v2795_v18, %v2799_v62  ;;  %v2831_v24 = vshll.u32 %v5853_v17, 16  ;;  %v5778_v42 = vcombine.low %v2327_v28, %v2330_v58  ;;  %v2823_v43 = vrot.slane %v2821_v36, 5  ;;  %v5855_v49 = vld [vmem:[%s7574_s28 + $0x64] sm:$0xf]  ;;  %v6776_v30 = vld [vmem:[%s7574_s28 + $0x138] sm:$0xff]  }
 0x1e3   : > { %v2810_v41 = vsel %vm7591_vm10, %v2805_v33, %v2809_v14  ;;  %v2827_v47 = vrot.slane %v2825_v37, 4  ;;  %v2818_v45 = vor.u32 %v2817_v2, %v2814_v34  ;;  %v5856_v7 = vld [vmem:[%s7574_s28 + $0x68] sm:$0x1]  ;;  %v2836_v54 = vshrl.u32 %v5854_v48, 16  ;;  %3596 = vst.msk [vmem:[#allocation3 + $0x220] sm:$0xff] %vm1583_vm14, %v6775_v57  ;;  %3597 = vst.msk [vmem:[#allocation3 + $0x248] sm:$0xff] %vm1583_vm14, %v6776_v30 }
 0x1e4   : > { %v5886_v44 = vcombine.low %v2800_v19, %v2810_v41  ;;  %v2833_v46 = vrot.slane %v2831_v24, 5  ;;  %2434 = vst.msk [vmem:[#allocation3 + $0x1c0] sm:$0xff] %vm1583_vm14, %v5778_v42  ;;  %v2839_v55 = vshll.u32 %v5854_v48, 16  ;;  %v2845_v56 = vshll.u32 %v5855_v49, 16  ;;  %v6777_v62 = vld [vmem:[%s7574_s28 + $0x144] sm:$0xff]  }
 0x1e5   : > { %v8386_v21 = vpop.permute.xlu1 %3399  ;;  %v2828_v50 = vor.u32 %v2827_v47, %v2823_v43  ;;  %2614 = vst.msk [vmem:[#allocation3 + $0x1c0] sm:$0xff] %vm2131_vm15, %v8373_v53  ;;  %v2819_v5 = vrot.slane %v2818_v45, 4  ;;  %v2849_v63 = vshrl.u32 %v5855_v49, 16  ;;  %v2855_v40 = vshll.u32 %v5856_v7, 16  ;;  %v5857_v6 = vld [vmem:[%s7574_s28 + $0xe4] sm:$0xf] }
 0x1e6   : > { %4952 = vmatmul.mubr.bf16.gmra.mrb[36].mxu0 %v4476_v27  ;;  %3120 = vst.msk [vmem:[#allocation3 + $0xd8] sm:$0xff] %vm1583_vm14, %v5886_v44  ;;  %v2838_v9 = vrot.slane %v2836_v54, 4  ;;  %v2841_v61 = vrot.slane %v2839_v55, 5  ;;  %v2847_v35 = vrot.slane %v2845_v56, 5  ;;  %v5858_v8 = vld [vmem:[%s7574_s28 + $0xe8] sm:$0xf] }
 0x1e7   : > { %5065 = vmatmul.mubr.bf16.gmra.mrb[28].mxu1 %v4448_v22  ;;  %v4482_v59 = vld [vmem:[#allocation3 + $0x198] sm:$0xff]  ;;  %3440 = vst.msk [vmem:[#allocation3 + $0xd8] sm:$0xff] %vm2131_vm15, %v8345_v1  ;;  %v2829_v60 = vrot.slane %v2828_v50, 4  ;;  %v2824_v53 = vsel %vm7591_vm10, %v2819_v5, %v2823_v43  ;;  %v2851_v15 = vrot.slane %v2849_v63, 4  ;;  %v2857_v26 = vrot.slane %v2855_v40, 5  ;;  %v4459_v1 = vld [vmem:[#allocation3 + $0xe0] sm:$0xff] }
 0x1e8   : > { %v2106_v13 = vpop.permute.xlu0 %2105  ;;  %5072 = vmatprep.mubr.bf16.mxu1 %v4454_v38  ;;  %4959 = vmatprep.mubr.bf16.mxu0 %v4482_v59  ;;  %v2842_v3 = vor.u32 %v2841_v61, %v2838_v9  ;;  %v5859_v51 = vld [vmem:[%s7574_s28 + $0xec] sm:$0x1]  ;;  %3598 = vst.msk [vmem:[#allocation3 + $0x270] sm:$0xff] %vm1583_vm14, %v6777_v62  ;;  %v4453_v10 = vld [vmem:[#allocation3 + $0xb0] sm:$0xff]  ;;  %v2860_v23 = vshrl.u32 %v5857_v6, 16  ;;  %v2863_v14 = vshll.u32 %v5857_v6, 16 }
 0x1e9   : > { %2143 = vst.msk [vmem:[#allocation3 + $0x1b8] sm:$0xff] %vm2131_vm15, %v2106_v13  ;;  %v2834_v0 = vsel %vm7591_vm10, %v2829_v60, %v2833_v46  ;;  %v4481_v13 = vld [vmem:[#allocation3 + $0x190] sm:$0xff]  ;;  %v2852_v52 = vor.u32 %v2851_v15, %v2847_v35  ;;  %v6091_v16 = vld [vmem:[%s7574_s28 + $0x18] sm:$0xe]  ;;  %v2869_v20 = vshll.u32 %v5858_v8, 16  ;;  %v2873_v22 = vshrl.u32 %v5858_v8, 16 }
 0x1ea   : > { %v5887_v11 = vcombine.low %v2824_v53, %v2834_v0  ;;  %v2843_v17 = vrot.slane %v2842_v3, 4  ;;  %v2879_v18 = vshll.u32 %v5859_v51, 16  ;;  %v6092_v25 = vld [vmem:[%s7574_s28 + $0x1c] sm:$0xf]  ;;  %v2862_v28 = vrot.slane %v2860_v23, 4 }
 0x1eb   : > { %v4094_v39 = vpop.permute.xlu1 %4093  ;;  %v2853_v27 = vrot.slane %v2852_v52, 4  ;;  %v2865_v31 = vrot.slane %v2863_v14, 5  ;;  %v6093_v32 = vld [vmem:[%s7574_s28 + $0x20] sm:$0x1]  ;;  %v6139_v38 = vrot.slane %v6091_v16, 9  ;;  %v2871_v36 = vrot.slane %v2869_v20, 5 }
 0x1ec   : > { %4134 = vst.msk [vmem:[#allocation3 + $0x130] sm:$0xff] %vm2131_vm15, %v4094_v39  ;;  %v2848_v33 = vsel %vm7591_vm10, %v2843_v17, %v2847_v35  ;;  %v4487_v34 = vld [vmem:[#allocation3 + $0x1c0] sm:$0xff]  ;;  %v2875_v37 = vrot.slane %v2873_v22, 4  ;;  %v2881_v19 = vrot.slane %v2879_v18, 5  ;;  %v6094_v58 = vld [vmem:[%s7574_s28 + $0x24] sm:$0xe] }
 0x1ed   : > { %3121 = vst.msk [vmem:[#allocation3 + $0x100] sm:$0xff] %vm1583_vm14, %v5887_v11  ;;  %v2858_v2 = vsel %vm7591_vm10, %v2853_v27, %v2857_v26  ;;  %v2866_v24 = vor.u32 %v2865_v31, %v2862_v28  ;;  %v4241_v39 = vrot.slane %v6092_v25, 5  ;;  %v4244_v41 = vrot.slane %v6093_v32, 5  ;;  %v6095_v42 = vld [vmem:[%s7574_s28 + $0x28] sm:$0xf]  ;;  %v4464_v62 = vld [vmem:[#allocation3 + $0x108] sm:$0xff] }
 0x1ee   : > { %3441 = vst.msk [vmem:[#allocation3 + $0x100] sm:$0xff] %vm2131_vm15, %v8386_v21  ;;  %4960 = vmatmul.mubr.bf16.gmra.mrb[40].mxu0 %v4481_v13  ;;  %v5888_v43 = vcombine.low %v2848_v33, %v2858_v2  ;;  %v2876_v44 = vor.u32 %v2875_v37, %v2871_v36  ;;  %v6096_v45 = vld [vmem:[%s7574_s28 + $0x2c] sm:$0x1]  ;;  %v6140_v46 = vrot.slane %v6094_v58, 9  ;;  %v4248_v48 = vrot.slane %v6095_v42, 5 }
 0x1ef   : > { %5073 = vmatmul.mubr.bf16.gmra.mrb[32].mxu1 %v4453_v10  ;;  %4967 = vmatprep.mubr.bf16.mxu0 %v4487_v34  ;;  %v3402_v47 = vpop.permute.xlu1 %3401  ;;  %v2867_v49 = vrot.slane %v2866_v24, 4  ;;  %v4242_v50 = vsel %vm7674_vm13, %v6139_v38, %v4241_v39  ;;  %v4243_v7 = vrot.slane %v4241_v39, 4  ;;  %v4251_v54 = vrot.slane %v6096_v45, 5  ;;  %v5860_v5 = vld [vmem:[%s7574_s28 + $0xf0] sm:$0xf]  ;;  %v4458_v63 = vld [vmem:[#allocation3 + $0xd8] sm:$0xff] }
 0x1f0   : > { %5080 = vmatprep.mubr.bf16.mxu1 %v4459_v1  ;;  %3122 = vst.msk [vmem:[#allocation3 + $0x128] sm:$0xff] %vm1583_vm14, %v5888_v43  ;;  %v2877_v55 = vrot.slane %v2876_v44, 4  ;;  %v4249_v56 = vsel %vm7674_vm13, %v6140_v46, %v4248_v48  ;;  %v4250_v57 = vrot.slane %v4248_v48, 4  ;;  %v5861_v59 = vld [vmem:[%s7574_s28 + $0xf4] sm:$0xf]  ;;  %v4486_v40 = vld [vmem:[#allocation3 + $0x1b8] sm:$0xff] }
 0x1f1   : > { %3442 = vst.msk [vmem:[#allocation3 + $0x128] sm:$0xff] %vm2131_vm15, %v3402_v47  ;;  %v2872_v30 = vsel %vm7591_vm10, %v2867_v49, %v2871_v36  ;;  %v4245_v60 = vsel %vm7674_vm13, %v4243_v7, %v4244_v41  ;;  %v5862_v9 = vld [vmem:[%s7574_s28 + $0xf8] sm:$0x1]  ;;  %v2884_v61 = vshrl.u32 %v5860_v5, 16  ;;  %v2887_v35 = vshll.u32 %v5860_v5, 16 }
 0x1f2   : > { %v4096_v4 = vpop.permute.xlu0 %4095  ;;  %v2882_v53 = vsel %vm7591_vm10, %v2877_v55, %v2881_v19  ;;  %v6155_v15 = vcombine.low %v4242_v50, %v4245_v60  ;;  %v4252_v26 = vsel %vm7674_vm13, %v4250_v57, %v4251_v54  ;;  %v2893_v1 = vshll.u32 %v5861_v59, 16  ;;  %v6097_v0 = vld [vmem:[%s7574_s28 + $0x30] sm:$0xe]  ;;  %v6098_v3 = vld [vmem:[%s7574_s28 + $0x34] sm:$0xf] }
 0x1f3   : > { %4135 = vst.msk [vmem:[#allocation3 + $0x158] sm:$0xff] %vm2131_vm15, %v4096_v4  ;;  %v5889_v4 = vcombine.low %v2872_v30, %v2882_v53  ;;  %v3404_v6 = vpop.permute.xlu1 %3403  ;;  %v6156_v8 = vcombine.low %v4249_v56, %v4252_v26  ;;  %v2886_v51 = vrot.slane %v2884_v61, 4  ;;  %v2889_v10 = vrot.slane %v2887_v35, 5  ;;  %v6099_v11 = vld [vmem:[%s7574_s28 + $0x38] sm:$0x1]  ;;  %v4469_v19 = vld [vmem:[#allocation3 + $0x130] sm:$0xff] }
 0x1f4   : > { %4415 = vst.msk [vmem:[#allocation3 + $0x20] sm:$0xff] %vm1583_vm14, %v6155_v15  ;;  %v2895_v13 = vrot.slane %v2893_v1, 5  ;;  %v2897_v52 = vshrl.u32 %v5861_v59, 16  ;;  %v2903_v23 = vshll.u32 %v5862_v9, 16  ;;  %v6141_v14 = vrot.slane %v6097_v0, 9 }
 0x1f5   : > { %v6100_v16 = vld [vmem:[%s7574_s28 + $0x3c] sm:$0xe]  ;;  %3123 = vst.msk [vmem:[#allocation3 + $0x150] sm:$0xff] %vm1583_vm14, %v5889_v4  ;;  %4416 = vst.msk [vmem:[#allocation3 + $0x48] sm:$0xff] %vm1583_vm14, %v6156_v8  ;;  %v2890_v17 = vor.u32 %v2889_v10, %v2886_v51  ;;  %v4255_v20 = vrot.slane %v6098_v3, 5  ;;  %v4258_v22 = vrot.slane %v6099_v11, 5 }
 0x1f6   : > { %4968 = vmatmul.mubr.bf16.gmra.mrb[44].mxu0 %v4486_v40  ;;  %v6101_v18 = vld [vmem:[%s7574_s28 + $0x40] sm:$0xf]  ;;  %v6102_v25 = vld [vmem:[%s7574_s28 + $0x44] sm:$0x1]  ;;  %3443 = vst.msk [vmem:[#allocation3 + $0x150] sm:$0xff] %vm2131_vm15, %v3404_v6  ;;  %v2899_v27 = vrot.slane %v2897_v52, 4 }
 0x1f7   : > { %v4098_v21 = vpop.permute.xlu0 %4097  ;;  %5081 = vmatmul.mubr.bf16.gmra.mrb[36].mxu1 %v4458_v63  ;;  %v6142_v28 = vrot.slane %v6100_v16, 9  ;;  %v4262_v31 = vrot.slane %v6101_v18, 5  ;;  %v4463_v32 = vld [vmem:[#allocation3 + $0x100] sm:$0xff]  ;;  %v2891_v38 = vrot.slane %v2890_v17, 4  ;;  %v4256_v33 = vsel %vm7674_vm13, %v6141_v14, %v4255_v20  ;;  %v5863_v41 = vld [vmem:[%s7574_s28 + $0xfc] sm:$0xf]  ;;  %v3406_v15 = vpop.permute.xlu1 %3405 }
 0x1f8   : > { %4136 = vst.msk [vmem:[#allocation3 + $0x180] sm:$0xff] %vm2131_vm15, %v4098_v21  ;;  %5088 = vmatprep.mubr.bf16.mxu1 %v4464_v62  ;;  %v4257_v34 = vrot.slane %v4255_v20, 4  ;;  %v4265_v36 = vrot.slane %v6102_v25, 5  ;;  %v2900_v58 = vor.u32 %v2899_v27, %v2895_v13  ;;  %v2905_v2 = vrot.slane %v2903_v23, 5  ;;  %v5864_v42 = vld [vmem:[%s7574_s28 + $0x100] sm:$0xf] }
 0x1f9   : > { %v4263_v24 = vsel %vm7674_vm13, %v6142_v28, %v4262_v31  ;;  %v4264_v39 = vrot.slane %v4262_v31, 4  ;;  %v2896_v21 = vsel %vm7591_vm10, %v2891_v38, %v2895_v13  ;;  %v5865_v47 = vld [vmem:[%s7574_s28 + $0x104] sm:$0x1]  ;;  %v2908_v44 = vshrl.u32 %v5863_v41, 16  ;;  %v6103_v46 = vld [vmem:[%s7574_s28 + $0x48] sm:$0xe] }
 0x1fa   : > { %v4259_v43 = vsel %vm7674_vm13, %v4257_v34, %v4258_v22  ;;  %v2911_v45 = vshll.u32 %v5863_v41, 16  ;;  %v2901_v48 = vrot.slane %v2900_v58, 4  ;;  %v2917_v7 = vshll.u32 %v5864_v42, 16  ;;  %v6104_v54 = vld [vmem:[%s7574_s28 + $0x4c] sm:$0xf]  ;;  %v4468_v14 = vld [vmem:[#allocation3 + $0x128] sm:$0xff] }
 0x1fb   : > { %v6157_v49 = vcombine.low %v4256_v33, %v4259_v43  ;;  %v4266_v50 = vsel %vm7674_vm13, %v4264_v39, %v4265_v36  ;;  %v6105_v55 = vld [vmem:[%s7574_s28 + $0x50] sm:$0x1]  ;;  %v2910_v5 = vrot.slane %v2908_v44, 4  ;;  %v2921_v63 = vshrl.u32 %v5864_v42, 16  ;;  %v6106_v40 = vld [vmem:[%s7574_s28 + $0x54] sm:$0xe] }
 0x1fc   : > { %v4435_v56 = vld [vmem:[#allocation3 + $0x20] sm:$0xff]  ;;  %v6158_v57 = vcombine.low %v4263_v24, %v4266_v50  ;;  %v2913_v59 = vrot.slane %v2911_v45, 5  ;;  %v4440_v30 = vld [vmem:[#allocation3 + $0x48] sm:$0xff]  ;;  %v2906_v60 = vsel %vm7591_vm10, %v2901_v48, %v2905_v2  ;;  %v2919_v9 = vrot.slane %v2917_v7, 5  ;;  %v5866_v23 = vld [vmem:[%s7574_s28 + $0x108] sm:$0xf] }
 0x1fd   : > { %6552 = vmatprep.mubr.msk.bf16.mxu0 %vm1583_vm14, %v4435_v56  ;;  %4417 = vst.msk [vmem:[#allocation3 + $0x70] sm:$0xff] %vm1583_vm14, %v6157_v49  ;;  %v2927_v61 = vshll.u32 %v5865_v47, 16  ;;  %v6143_v35 = vrot.slane %v6103_v46, 9  ;;  %v6107_v62 = vld [vmem:[%s7574_s28 + $0x58] sm:$0xf]  ;;  %v5890_v53 = vcombine.low %v2896_v21, %v2906_v60  ;;  %v2923_v1 = vrot.slane %v2921_v63, 4 }
 0x1fe   : > { %6553 = vmatmul.mubr.msk.bf16.vlgmr.msra.gmra.mrb[48].mxu0 %vm1583_vm14, %v4440_v30  ;;  %4418 = vst.msk [vmem:[#allocation3 + $0x98] sm:$0xff] %vm1583_vm14, %v6158_v57  ;;  %v2914_v26 = vor.u32 %v2913_v59, %v2910_v5  ;;  %v4269_v0 = vrot.slane %v6104_v54, 5  ;;  %v6108_v3 = vld [vmem:[%s7574_s28 + $0x5c] sm:$0x1]  ;;  %v4272_v6 = vrot.slane %v6105_v55, 5  ;;  %v6144_v8 = vrot.slane %v6106_v40, 9 }
 0x1ff   : > { %5089 = vmatmul.mubr.bf16.gmra.mrb[40].mxu1 %v4463_v32  ;;  %v2929_v4 = vrot.slane %v2927_v61, 5  ;;  %v4276_v51 = vrot.slane %v6107_v62, 5  ;;  %3124 = vst.msk [vmem:[#allocation3 + $0x178] sm:$0xff] %vm1583_vm14, %v5890_v53  ;;  %v2924_v11 = vor.u32 %v2923_v1, %v2919_v9  ;;  %v4474_v16 = vld [vmem:[#allocation3 + $0x158] sm:$0xff]  ;;  %v4279_v22 = vrot.slane %v6108_v3, 5  ;;  %v4473_v1 = vld [vmem:[#allocation3 + $0x150] sm:$0xff] }
 0x200   : > { %5096 = vmatprep.mubr.bf16.mxu1 %v4469_v19  ;;  %v2915_v10 = vrot.slane %v2914_v26, 4  ;;  %v4270_v13 = vsel %vm7674_vm13, %v6143_v35, %v4269_v0  ;;  %v4271_v52 = vrot.slane %v4269_v0, 4  ;;  %3444 = vst.msk [vmem:[#allocation3 + $0x178] sm:$0xff] %vm2131_vm15, %v3406_v15  ;;  %v5867_v18 = vld [vmem:[%s7574_s28 + $0x10c] sm:$0xf]  ;;  %v2932_v38 = vshrl.u32 %v5866_v23, 16  ;;  %v3408_v45 = vpop.permute.xlu1 %3407 }
 0x201   : > { %v4100_v37 = vpop.permute.xlu0 %4099  ;;  %v4277_v17 = vsel %vm7674_vm13, %v6144_v8, %v4276_v51  ;;  %v4278_v20 = vrot.slane %v4276_v51, 4  ;;  %v2925_v27 = vrot.slane %v2924_v11, 4  ;;  %v5868_v32 = vld [vmem:[%s7574_s28 + $0x110] sm:$0x1]  ;;  %v6109_v33 = vld [vmem:[%s7574_s28 + $0x60] sm:$0xe] }
 0x202   : > { %4137 = vst.msk [vmem:[#allocation3 + $0x1a8] sm:$0xff] %vm2131_vm15, %v4100_v37  ;;  %v2920_v25 = vsel %vm7591_vm10, %v2915_v10, %v2919_v9  ;;  %v4273_v28 = vsel %vm7674_vm13, %v4271_v52, %v4272_v6  ;;  %v2935_v37 = vshll.u32 %v5866_v23, 16  ;;  %v2941_v19 = vshll.u32 %v5867_v18, 16  ;;  %v6110_v58 = vld [vmem:[%s7574_s28 + $0x64] sm:$0xf]  ;;  %v4479_v51 = vld [vmem:[#allocation3 + $0x180] sm:$0xff] }
 0x203   : > { %v6159_v34 = vcombine.low %v4270_v13, %v4273_v28  ;;  %v4280_v36 = vsel %vm7674_vm13, %v4278_v20, %v4279_v22  ;;  %v6111_v2 = vld [vmem:[%s7574_s28 + $0x68] sm:$0x1]  ;;  %v2930_v39 = vsel %vm7591_vm10, %v2925_v27, %v2929_v4  ;;  %v2934_v42 = vrot.slane %v2932_v38, 4  ;;  %v6112_v43 = vld [vmem:[%s7574_s28 + $0x6c] sm:$0xe] }
 0x204   : > { %v4445_v24 = vld [vmem:[#allocation3 + $0x70] sm:$0xff]  ;;  %v6160_v41 = vcombine.low %v4277_v17, %v4280_v36  ;;  %v2945_v21 = vshrl.u32 %v5867_v18, 16  ;;  %v5891_v44 = vcombine.low %v2920_v25, %v2930_v39  ;;  %v2937_v46 = vrot.slane %v2935_v37, 5  ;;  %v6113_v50 = vld [vmem:[%s7574_s28 + $0x70] sm:$0xf] }
 0x205   : > { %6556 = vmatprep.mubr.msk.bf16.mxu0 %vm1583_vm14, %v4445_v24  ;;  %v4450_v47 = vld [vmem:[#allocation3 + $0x98] sm:$0xff]  ;;  %4419 = vst.msk [vmem:[#allocation3 + $0xc0] sm:$0xff] %vm1583_vm14, %v6159_v34  ;;  %v2943_v48 = vrot.slane %v2941_v19, 5  ;;  %v2951_v49 = vshll.u32 %v5868_v32, 16  ;;  %v6145_v54 = vrot.slane %v6109_v33, 9  ;;  %v4283_v55 = vrot.slane %v6110_v58, 5 }
 0x206   : > { %6557 = vmatmul.mubr.msk.bf16.gmra.mrb[52].mxu0 %vm1583_vm14, %v4450_v47  ;;  %4420 = vst.msk [vmem:[#allocation3 + $0xe8] sm:$0xff] %vm1583_vm14, %v6160_v41  ;;  %v2947_v7 = vrot.slane %v2945_v21, 4  ;;  %v4286_v56 = vrot.slane %v6111_v2, 5  ;;  %v6114_v57 = vld [vmem:[%s7574_s28 + $0x74] sm:$0x1]  ;;  %3125 = vst.msk [vmem:[#allocation3 + $0x1a0] sm:$0xff] %vm1583_vm14, %v5891_v44  ;;  %v2938_v5 = vor.u32 %v2937_v46, %v2934_v42 }
 0x207   : > { %5097 = vmatmul.mubr.bf16.gmra.mrb[44].mxu1 %v4468_v14  ;;  %v2953_v59 = vrot.slane %v2951_v49, 5  ;;  %v6146_v63 = vrot.slane %v6112_v43, 9  ;;  %v4290_v40 = vrot.slane %v6113_v50, 5  ;;  %3445 = vst.msk [vmem:[#allocation3 + $0x1a0] sm:$0xff] %vm2131_vm15, %v3408_v45  ;;  %v4284_v60 = vsel %vm7674_vm13, %v6145_v54, %v4283_v55  ;;  %v5869_v15 = vld [vmem:[%s7574_s28 + $0x114] sm:$0xf] }
 0x208   : > { %5104 = vmatprep.mubr.bf16.mxu1 %v4474_v16  ;;  %v2948_v30 = vor.u32 %v2947_v7, %v2943_v48  ;;  %v4285_v9 = vrot.slane %v4283_v55, 4  ;;  %v4293_v61 = vrot.slane %v6114_v57, 5  ;;  %v2939_v35 = vrot.slane %v2938_v5, 4  ;;  %v5870_v26 = vld [vmem:[%s7574_s28 + $0x118] sm:$0xf]  ;;  %v4478_v50 = vld [vmem:[#allocation3 + $0x178] sm:$0xff] }
 0x209   : > { %v4291_v62 = vsel %vm7674_vm13, %v6146_v63, %v4290_v40  ;;  %v4292_v53 = vrot.slane %v4290_v40, 4  ;;  %v5871_v4 = vld [vmem:[%s7574_s28 + $0x11c] sm:$0x1]  ;;  %v2956_v6 = vshrl.u32 %v5869_v15, 16  ;;  %v2959_v8 = vshll.u32 %v5869_v15, 16 }
 0x20a   : > { %v2949_v0 = vrot.slane %v2948_v30, 4  ;;  %v4287_v3 = vsel %vm7674_vm13, %v4285_v9, %v4286_v56  ;;  %v2944_v10 = vsel %vm7591_vm10, %v2939_v35, %v2943_v48  ;;  %v2965_v52 = vshll.u32 %v5870_v26, 16  ;;  %v6115_v23 = vld [vmem:[%s7574_s28 + $0xf0] sm:$0xe]  ;;  %v6116_v14 = vld [vmem:[%s7574_s28 + $0xf4] sm:$0xf] }
 0x20b   : > { %v4102_v31 = vpop.permute.xlu0 %4101  ;;  %v6161_v11 = vcombine.low %v4284_v60, %v4287_v3  ;;  %v4294_v13 = vsel %vm7674_vm13, %v4292_v53, %v4293_v61  ;;  %v2958_v22 = vrot.slane %v2956_v6, 4  ;;  %v2961_v18 = vrot.slane %v2959_v8, 5  ;;  %v6117_v25 = vld [vmem:[%s7574_s28 + $0xf8] sm:$0x1]  ;;  %v6118_v36 = vld [vmem:[%s7574_s28 + $0xfc] sm:$0xe] }
 0x20c   : > { %4138 = vst.msk [vmem:[#allocation3 + $0x1d0] sm:$0xff] %vm2131_vm15, %v4102_v31  ;;  %v4455_v16 = vld [vmem:[#allocation3 + $0xc0] sm:$0xff]  ;;  %v2954_v17 = vsel %vm7591_vm10, %v2949_v0, %v2953_v59  ;;  %v6162_v20 = vcombine.low %v4291_v62, %v4294_v13  ;;  %v3410_v31 = vpop.permute.xlu1 %3409  ;;  %v2967_v38 = vrot.slane %v2965_v52, 5  ;;  %v2969_v33 = vshrl.u32 %v5870_v26, 16  ;;  %v6119_v24 = vld [vmem:[%s7574_s28 + $0x100] sm:$0xf] }
 0x20d   : > { %6560 = vmatprep.mubr.msk.bf16.mxu0 %vm1583_vm14, %v4455_v16  ;;  %v4460_v27 = vld [vmem:[#allocation3 + $0xe8] sm:$0xff]  ;;  %v5892_v28 = vcombine.low %v2944_v10, %v2954_v17  ;;  %4421 = vst.msk [vmem:[#allocation3 + $0x110] sm:$0xff] %vm1583_vm14, %v6161_v11  ;;  %v2975_v34 = vshll.u32 %v5871_v4, 16  ;;  %v2962_v37 = vor.u32 %v2961_v18, %v2958_v22  ;;  %v6147_v19 = vrot.slane %v6115_v23, 9  ;;  %v6120_v41 = vld [vmem:[%s7574_s28 + $0x104] sm:$0x1] }
 0x20e   : > { %6561 = vmatmul.mubr.msk.bf16.gmra.mrb[56].mxu0 %vm1583_vm14, %v4460_v27  ;;  %4422 = vst.msk [vmem:[#allocation3 + $0x138] sm:$0xff] %vm1583_vm14, %v6162_v20  ;;  %v4297_v58 = vrot.slane %v6116_v14, 5  ;;  %v4300_v2 = vrot.slane %v6117_v25, 5  ;;  %v2971_v39 = vrot.slane %v2969_v33, 4  ;;  %v6148_v42 = vrot.slane %v6118_v36, 9  ;;  %v4484_v59 = vld [vmem:[#allocation3 + $0x1a8] sm:$0xff] }
 0x20f   : > { %5105 = vmatmul.mubr.bf16.gmra.mrb[48].mxu1 %v4473_v1  ;;  %3126 = vst.msk [vmem:[#allocation3 + $0x1c8] sm:$0xff] %vm1583_vm14, %v5892_v28  ;;  %v2963_v21 = vrot.slane %v2962_v37, 4  ;;  %v4304_v44 = vrot.slane %v6119_v24, 5  ;;  %v2977_v46 = vrot.slane %v2975_v34, 5  ;;  %v4307_v48 = vrot.slane %v6120_v41, 5 }
 0x210   : > { %5112 = vmatprep.mubr.bf16.mxu1 %v4479_v51  ;;  %3446 = vst.msk [vmem:[#allocation3 + $0x1c8] sm:$0xff] %vm2131_vm15, %v3410_v31  ;;  %v4298_v43 = vsel %vm7674_vm13, %v6147_v19, %v4297_v58  ;;  %v4299_v47 = vrot.slane %v4297_v58, 4  ;;  %v2972_v45 = vor.u32 %v2971_v39, %v2967_v38  ;;  %v5872_v49 = vld [vmem:[%s7574_s28 + $0x120] sm:$0xf]  ;;  %v5873_v57 = vld [vmem:[%s7574_s28 + $0x124] sm:$0xf] }
 0x211   : > { %v2968_v7 = vsel %vm7591_vm10, %v2963_v21, %v2967_v38  ;;  %v4305_v55 = vsel %vm7674_vm13, %v6148_v42, %v4304_v44  ;;  %v4306_v56 = vrot.slane %v4304_v44, 4  ;;  %v5874_v5 = vld [vmem:[%s7574_s28 + $0x128] sm:$0x1]  ;;  %v2980_v30 = vshrl.u32 %v5872_v49, 16  ;;  %v6121_v9 = vld [vmem:[%s7574_s28 + $0x108] sm:$0xe] }
 0x212   : > { %v4301_v54 = vsel %vm7674_vm13, %v4299_v47, %v4300_v2  ;;  %v2973_v63 = vrot.slane %v2972_v45, 4  ;;  %v2983_v60 = vshll.u32 %v5872_v49, 16  ;;  %v2989_v62 = vshll.u32 %v5873_v57, 16  ;;  %v6122_v26 = vld [vmem:[%s7574_s28 + $0x10c] sm:$0xf]  ;;  %v4483_v31 = vld [vmem:[#allocation3 + $0x1a0] sm:$0xff] }
 0x213   : > { %v6163_v40 = vcombine.low %v4298_v43, %v4301_v54  ;;  %v4308_v35 = vsel %vm7674_vm13, %v4306_v56, %v4307_v48  ;;  %v2993_v53 = vshrl.u32 %v5873_v57, 16  ;;  %v2999_v15 = vshll.u32 %v5874_v5, 16  ;;  %v6123_v8 = vld [vmem:[%s7574_s28 + $0x110] sm:$0x1]  ;;  %v6124_v23 = vld [vmem:[%s7574_s28 + $0x114] sm:$0xe] }
 0x214   : > { %v4465_v61 = vld [vmem:[#allocation3 + $0x110] sm:$0xff]  ;;  %v2978_v0 = vsel %vm7591_vm10, %v2973_v63, %v2977_v46  ;;  %v6164_v3 = vcombine.low %v4305_v55, %v4308_v35  ;;  %v2982_v4 = vrot.slane %v2980_v30, 4  ;;  %v2985_v6 = vrot.slane %v2983_v60, 5  ;;  %v3412_v10 = vpop.permute.xlu1 %3411  ;;  %v6125_v22 = vld [vmem:[%s7574_s28 + $0x118] sm:$0xf] }
 0x215   : > { %v4104_v32 = vpop.permute.xlu0 %4103  ;;  %6564 = vmatprep.mubr.msk.bf16.mxu0 %vm1583_vm14, %v4465_v61  ;;  %v4470_v1 = vld [vmem:[#allocation3 + $0x138] sm:$0xff]  ;;  %4423 = vst.msk [vmem:[#allocation3 + $0x160] sm:$0xff] %vm1583_vm14, %v6163_v40  ;;  %v5893_v51 = vcombine.low %v2968_v7, %v2978_v0  ;;  %v2991_v11 = vrot.slane %v2989_v62, 5  ;;  %v2995_v13 = vrot.slane %v2993_v53, 4  ;;  %v3001_v52 = vrot.slane %v2999_v15, 5 }
 0x216   : > { %4139 = vst.msk [vmem:[#allocation3 + $0x1f8] sm:$0xff] %vm2131_vm15, %v4104_v32  ;;  %6565 = vmatmul.mubr.msk.bf16.gmra.mrb[60].mxu0 %vm1583_vm14, %v4470_v1  ;;  %v2986_v14 = vor.u32 %v2985_v6, %v2982_v4  ;;  %v6149_v16 = vrot.slane %v6121_v9, 9  ;;  %v4311_v17 = vrot.slane %v6122_v26, 5  ;;  %v4314_v20 = vrot.slane %v6123_v8, 5  ;;  %v6126_v25 = vld [vmem:[%s7574_s28 + $0x11c] sm:$0x1] }
 0x217   : > { %5113 = vmatmul.mubr.bf16.gmra.mrb[52].mxu1 %v4478_v50  ;;  %4424 = vst.msk [vmem:[#allocation3 + $0x188] sm:$0xff] %vm1583_vm14, %v6164_v3  ;;  %3127 = vst.msk [vmem:[#allocation3 + $0x1f0] sm:$0xff] %vm1583_vm14, %v5893_v51  ;;  %v2996_v18 = vor.u32 %v2995_v13, %v2991_v11  ;;  %v6150_v27 = vrot.slane %v6124_v23, 9  ;;  %v4318_v28 = vrot.slane %v6125_v22, 5  ;;  %v4489_v32 = vld [vmem:[#allocation3 + $0x1d0] sm:$0xff]  ;;  %v4321_v37 = vrot.slane %v6126_v25, 5 }
 0x218   : > { %5120 = vmatprep.mubr.bf16.mxu1 %v4484_v59  ;;  %3447 = vst.msk [vmem:[#allocation3 + $0x1f0] sm:$0xff] %vm2131_vm15, %v3412_v10  ;;  %v2987_v33 = vrot.slane %v2986_v14, 4  ;;  %v4312_v34 = vsel %vm7674_vm13, %v6149_v16, %v4311_v17  ;;  %v4313_v36 = vrot.slane %v4311_v17, 4  ;;  %v5875_v24 = vld [vmem:[%s7574_s28 + $0x12c] sm:$0xf]  ;;  %v4488_v6 = vld [vmem:[#allocation3 + $0x1c8] sm:$0xff] }
 0x219   : > { %v2997_v19 = vrot.slane %v2996_v18, 4  ;;  %v4319_v58 = vsel %vm7674_vm13, %v6150_v27, %v4318_v28  ;;  %v4320_v2 = vrot.slane %v4318_v28, 4  ;;  %v5876_v39 = vld [vmem:[%s7574_s28 + $0x130] sm:$0xf]  ;;  %v5877_v21 = vld [vmem:[%s7574_s28 + $0x134] sm:$0x1] }
 0x21a   : > { %v2992_v41 = vsel %vm7591_vm10, %v2987_v33, %v2991_v11  ;;  %v4315_v42 = vsel %vm7674_vm13, %v4313_v36, %v4314_v20  ;;  %v3004_v43 = vshrl.u32 %v5875_v24, 16  ;;  %v3007_v47 = vshll.u32 %v5875_v24, 16  ;;  %v6127_v44 = vld [vmem:[%s7574_s28 + $0x120] sm:$0xe]  ;;  %v6128_v7 = vld [vmem:[%s7574_s28 + $0x124] sm:$0xf] }
 0x21b   : > { %v3002_v46 = vsel %vm7591_vm10, %v2997_v19, %v3001_v52  ;;  %v6165_v48 = vcombine.low %v4312_v34, %v4315_v42  ;;  %v4322_v49 = vsel %vm7674_vm13, %v4320_v2, %v4321_v37  ;;  %v3013_v50 = vshll.u32 %v5876_v39, 16  ;;  %v6129_v54 = vld [vmem:[%s7574_s28 + $0x128] sm:$0x1]  ;;  %v6130_v63 = vld [vmem:[%s7574_s28 + $0x12c] sm:$0xe] }
 0x21c   : > { %v4475_v45 = vld [vmem:[#allocation3 + $0x160] sm:$0xff]  ;;  %v5894_v55 = vcombine.low %v2992_v41, %v3002_v46  ;;  %v6166_v57 = vcombine.low %v4319_v58, %v4322_v49  ;;  %v3006_v5 = vrot.slane %v3004_v43, 4  ;;  %v3009_v59 = vrot.slane %v3007_v47, 5  ;;  %v5878_v16 = vld [vmem:[%s7574_s28 + $0x138] sm:$0xf] }
 0x21d   : > { %6568 = vmatprep.mubr.msk.bf16.mxu0 %vm1583_vm14, %v4475_v45  ;;  %v6131_v40 = vld [vmem:[%s7574_s28 + $0x130] sm:$0xf]  ;;  %4425 = vst.msk [vmem:[#allocation3 + $0x1b0] sm:$0xff] %vm1583_vm14, %v6165_v48  ;;  %v3015_v60 = vrot.slane %v3013_v50, 5  ;;  %v3017_v9 = vshrl.u32 %v5876_v39, 16  ;;  %v3023_v61 = vshll.u32 %v5877_v21, 16 }
 0x21e   : > { %v4480_v30 = vld [vmem:[#allocation3 + $0x188] sm:$0xff]  ;;  %v6151_v35 = vrot.slane %v6127_v44, 9  ;;  %3128 = vst.msk [vmem:[#allocation3 + $0x218] sm:$0xff] %vm1583_vm14, %v5894_v55  ;;  %4426 = vst.msk [vmem:[#allocation3 + $0x1d8] sm:$0xff] %vm1583_vm14, %v6166_v57  ;;  %v3010_v62 = vor.u32 %v3009_v59, %v3006_v5  ;;  %v4325_v53 = vrot.slane %v6128_v7, 5  ;;  %v4328_v15 = vrot.slane %v6129_v54, 5 }
 0x21f   : > { %5121 = vmatmul.mubr.bf16.gmra.mrb[56].mxu1 %v4483_v31  ;;  %6569 = vmatmul.mubr.msk.bf16.gmra.mrb[64].mxu0 %vm1583_vm14, %v4480_v30  ;;  %v6132_v26 = vld [vmem:[%s7574_s28 + $0x134] sm:$0x1]  ;;  %v6152_v1 = vrot.slane %v6130_v63, 9  ;;  %v3019_v0 = vrot.slane %v3017_v9, 4  ;;  %v4332_v3 = vrot.slane %v6131_v40, 5  ;;  %v4494_v8 = vld [vmem:[#allocation3 + $0x1f8] sm:$0xff] }
 0x220   : > { %v4106_v38 = vpop.permute.xlu0 %4105  ;;  %v3414_v56 = vpop.permute.xlu1 %3413  ;;  %5128 = vmatprep.mubr.bf16.mxu1 %v4489_v32  ;;  %v4335_v4 = vrot.slane %v6132_v26, 5  ;;  %v3011_v51 = vrot.slane %v3010_v62, 4  ;;  %v4326_v10 = vsel %vm7674_vm13, %v6151_v35, %v4325_v53  ;;  %v4327_v11 = vrot.slane %v4325_v53, 4  ;;  %v5879_v22 = vld [vmem:[%s7574_s28 + $0x13c] sm:$0xf] }
 0x221   : > { %4140 = vst.msk [vmem:[#allocation3 + $0x220] sm:$0xff] %vm2131_vm15, %v4106_v38  ;;  %3448 = vst.msk [vmem:[#allocation3 + $0x218] sm:$0xff] %vm2131_vm15, %v3414_v56  ;;  %v3020_v13 = vor.u32 %v3019_v0, %v3015_v60  ;;  %v3025_v52 = vrot.slane %v3023_v61, 5  ;;  %v4333_v23 = vsel %vm7674_vm13, %v6152_v1, %v4332_v3  ;;  %v4334_v14 = vrot.slane %v4332_v3, 4  ;;  %v5880_v18 = vld [vmem:[%s7574_s28 + $0x140] sm:$0x1] }
 0x222   : > { %v3016_v17 = vsel %vm7591_vm10, %v3011_v51, %v3015_v60  ;;  %v4329_v20 = vsel %vm7674_vm13, %v4327_v11, %v4328_v15  ;;  %v3028_v25 = vshrl.u32 %v5878_v16, 16  ;;  %v3031_v27 = vshll.u32 %v5878_v16, 16  ;;  %v6133_v34 = vld [vmem:[%s7574_s28 + $0x138] sm:$0xe]  ;;  %v6134_v36 = vld [vmem:[%s7574_s28 + $0x13c] sm:$0xf] }
 0x223   : > { %v3021_v31 = vrot.slane %v3020_v13, 4  ;;  %v6167_v32 = vcombine.low %v4326_v10, %v4329_v20  ;;  %v4336_v38 = vsel %vm7674_vm13, %v4334_v14, %v4335_v4  ;;  %v3037_v33 = vshll.u32 %v5879_v22, 16  ;;  %v6135_v39 = vld [vmem:[%s7574_s28 + $0x140] sm:$0x1]  ;;  %v6136_v44 = vld [vmem:[%s7574_s28 + $0x144] sm:$0xe] }
 0x224   : > { %v4485_v37 = vld [vmem:[#allocation3 + $0x1b0] sm:$0xff]  ;;  %v6168_v19 = vcombine.low %v4333_v23, %v4336_v38  ;;  %v3030_v58 = vrot.slane %v3028_v25, 4  ;;  %v3033_v2 = vrot.slane %v3031_v27, 5  ;;  %v3041_v24 = vshrl.u32 %v5879_v22, 16  ;;  %v6137_v7 = vld [vmem:[%s7574_s28 + $0x148] sm:$0xf] }
 0x225   : > { %6572 = vmatprep.mubr.msk.bf16.mxu0 %vm1583_vm14, %v4485_v37  ;;  %v4490_v41 = vld [vmem:[#allocation3 + $0x1d8] sm:$0xff]  ;;  %v3026_v42 = vsel %vm7591_vm10, %v3021_v31, %v3025_v52  ;;  %4427 = vst.msk [vmem:[#allocation3 + $0x200] sm:$0xff] %vm1583_vm14, %v6167_v32  ;;  %v3039_v21 = vrot.slane %v3037_v33, 5  ;;  %v3047_v43 = vshll.u32 %v5880_v18, 16  ;;  %v6153_v47 = vrot.slane %v6133_v34, 9  ;;  %v4493_v60 = vld [vmem:[#allocation3 + $0x1f0] sm:$0xff] }
 0x226   : > { %v5895_v45 = vcombine.low %v3016_v17, %v3026_v42  ;;  %4428 = vst.msk [vmem:[#allocation3 + $0x228] sm:$0xff] %vm1583_vm14, %v6168_v19  ;;  %v3034_v48 = vor.u32 %v3033_v2, %v3030_v58  ;;  %v3043_v49 = vrot.slane %v3041_v24, 4  ;;  %v4339_v50 = vrot.slane %v6134_v36, 5  ;;  %v6138_v56 = vld [vmem:[%s7574_s28 + $0x14c] sm:$0x1] }
 0x227   : > { %5129 = vmatmul.mubr.bf16.gmra.mrb[60].mxu1 %v4488_v6  ;;  %6573 = vmatmul.mubr.msk.bf16.gmra.mrb[68].mxu0 %vm1583_vm14, %v4490_v41  ;;  %v3049_v54 = vrot.slane %v3047_v43, 5  ;;  %v4342_v55 = vrot.slane %v6135_v39, 5  ;;  %v6154_v57 = vrot.slane %v6136_v44, 9  ;;  %v4346_v5 = vrot.slane %v6137_v7, 5 }
 0x228   : > { %5136 = vmatprep.mubr.bf16.mxu1 %v4494_v8  ;;  %v3416_v46 = vpop.permute.xlu1 %3415  ;;  %3129 = vst.msk [vmem:[#allocation3 + $0x240] sm:$0xff] %vm1583_vm14, %v5895_v45  ;;  %v3035_v59 = vrot.slane %v3034_v48, 4  ;;  %v3044_v63 = vor.u32 %v3043_v49, %v3039_v21  ;;  %v4340_v40 = vsel %vm7674_vm13, %v6153_v47, %v4339_v50  ;;  %v4341_v30 = vrot.slane %v4339_v50, 4  ;;  %v4499_v62 = vld [vmem:[#allocation3 + $0x220] sm:$0xff]  ;;  %v4498_v12 = vld [vmem:[#allocation3 + $0x218] sm:$0xff] }
 0x229   : > { %3449 = vst.msk [vmem:[#allocation3 + $0x240] sm:$0xff] %vm2131_vm15, %v3416_v46  ;;  %v4347_v9 = vsel %vm7674_vm13, %v6154_v57, %v4346_v5  ;;  %v4348_v61 = vrot.slane %v4346_v5, 4  ;;  %v4349_v35 = vrot.slane %v6138_v56, 5 }
 0x22a   : > { %v4108_v28 = vpop.permute.xlu0 %4107  ;;  %v3040_v53 = vsel %vm7591_vm10, %v3035_v59, %v3039_v21  ;;  %v3045_v15 = vrot.slane %v3044_v63, 4  ;;  %v4343_v26 = vsel %vm7674_vm13, %v4341_v30, %v4342_v55 }
 0x22b   : > { %4141 = vst.msk [vmem:[#allocation3 + $0x248] sm:$0xff] %vm2131_vm15, %v4108_v28  ;;  %v6169_v1 = vcombine.low %v4340_v40, %v4343_v26  ;;  %v4350_v0 = vsel %vm7674_vm13, %v4348_v61, %v4349_v35 }
 0x22c   : > { %v4495_v3 = vld [vmem:[#allocation3 + $0x200] sm:$0xff]  ;;  %v3050_v4 = vsel %vm7591_vm10, %v3045_v15, %v3049_v54  ;;  %v6170_v6 = vcombine.low %v4347_v9, %v4350_v0 }
 0x22d   : > { %6576 = vmatprep.mubr.msk.bf16.mxu0 %vm1583_vm14, %v4495_v3  ;;  %v4500_v8 = vld [vmem:[#allocation3 + $0x228] sm:$0xff]  ;;  %v5896_v51 = vcombine.low %v3040_v53, %v3050_v4  ;;  %4429 = vst.msk [vmem:[#allocation3 + $0x250] sm:$0xff] %vm1583_vm14, %v6169_v1 }
 0x22e   : > { %4430 = vst.msk [vmem:[#allocation3 + $0x278] sm:$0xff] %vm1583_vm14, %v6170_v6 }
 0x22f   : > { %5137 = vmatmul.mubr.bf16.gmra.mrb[64].mxu1 %v4493_v60  ;;  %6577 = vmatmul.mubr.msk.bf16.gmra.mrb[72].mxu0 %vm1583_vm14, %v4500_v8  ;;  %3130 = vst.msk [vmem:[#allocation3 + $0x268] sm:$0xff] %vm1583_vm14, %v5896_v51 }
 0x230   : > { %5144 = vmatprep.mubr.bf16.mxu1 %v4499_v62  ;;  %v4503_v23 = vld [vmem:[#allocation3 + $0x240] sm:$0xff] }
 0x232   : > { %v4504_v10 = vld [vmem:[#allocation3 + $0x248] sm:$0xff] }
 0x234   : > { %v4505_v29 = vld [vmem:[#allocation3 + $0x250] sm:$0xff] }
 0x235   : > { %v4110_v11 = vpop.permute.xlu0 %4109  ;;  %6580 = vmatprep.mubr.msk.bf16.mxu0 %vm1583_vm14, %v4505_v29  ;;  %v4510_v52 = vld [vmem:[#allocation3 + $0x278] sm:$0xff] }
 0x236   : > { %v3418_v13 = vpop.permute.xlu1 %3417  ;;  %4142 = vst.msk [vmem:[#allocation3 + $0x270] sm:$0xff] %vm2131_vm15, %v4110_v11 }
 0x237   : > { %5145 = vmatmul.mubr.bf16.gmra.mrb[68].mxu1 %v4498_v12  ;;  %3450 = vst.msk [vmem:[#allocation3 + $0x268] sm:$0xff] %vm2131_vm15, %v3418_v13  ;;  %6581 = vmatmul.mubr.msk.bf16.gmra.mrb[76].mxu0 %vm1583_vm14, %v4510_v52 }
 0x238   : > { %5152 = vmatprep.mubr.bf16.mxu1 %v4504_v10 }
 0x23d   : > { %v4509_v14 = vld [vmem:[#allocation3 + $0x270] sm:$0xff] }
 0x23e   : > { %v4508_v16 = vld [vmem:[#allocation3 + $0x268] sm:$0xff] }
 0x23f   : > { %5153 = vmatmul.mubr.bf16.gmra.mrb[72].mxu1 %v4503_v23 }
 0x240   : > { %5160 = vmatprep.mubr.bf16.mxu1 %v4509_v14 }
 0x247   : > { %5161 = vmatmul.mubr.bf16.gmra.mrb[76].mxu1 %v4508_v16 }
 0x265   : > { %v6316_v17 = vpop.f32.mrb[0].mxu0 }
 0x266   : > { %v6317_v20 = vpop.f32.mrb[1].mxu0  ;;  %v6388_v22 = vpop.f32.mrb[0].mxu1 }
 0x267   : > { %v8663_v18 = vadd.f32 %v6317_v20, %v6316_v17  ;;  %v6319_v25 = vpop.f32.mrb[2].mxu0  ;;  %v6389_v27 = vpop.f32.mrb[1].mxu1 }
 0x268   : > { %v6320_v28 = vpop.f32.mrb[3].mxu0  ;;  %v8665_v31 = vadd.f32 %v6389_v27, %v6388_v22  ;;  %v6391_v32 = vpop.f32.mrb[2].mxu1 }
 0x269   : > { %v6321_v38 = vadd.f32 %v6320_v28, %v6319_v25  ;;  %v6392_v33 = vpop.f32.mrb[3].mxu1 }
 0x26a   : > { %v8667_v34 = vadd.f32 %v6392_v33, %v6391_v32 }
 0x26d   : > { %v6322_v36 = vpop.f32.mrb[4].mxu0 }
 0x26e   : > { %v6323_v37 = vpop.f32.mrb[5].mxu0 }
 0x26f   : > { %v8669_v19 = vadd.f32 %v6323_v37, %v6322_v36  ;;  %v6325_v58 = vpop.f32.mrb[6].mxu0 }
 0x270   : > { %v6326_v2 = vpop.f32.mrb[7].mxu0  ;;  %v6394_v24 = vpop.f32.mrb[4].mxu1 }
 0x271   : > { %v8671_v39 = vadd.f32 %v6326_v2, %v6325_v58  ;;  %v6395_v41 = vpop.f32.mrb[5].mxu1 }
 0x272   : > { %v8673_v42 = vadd.f32 %v6395_v41, %v6394_v24  ;;  %v6397_v21 = vpop.f32.mrb[6].mxu1 }
 0x273   : > { %v6398_v43 = vpop.f32.mrb[7].mxu1 }
 0x274   : > { %v8675_v47 = vadd.f32 %v6398_v43, %v6397_v21 }
 0x277   : > { %v6328_v44 = vpop.f32.mrb[8].mxu0 }
 0x278   : > { %v6329_v45 = vpop.f32.mrb[9].mxu0 }
 0x279   : > { %v8677_v46 = vadd.f32 %v6329_v45, %v6328_v44  ;;  %v6331_v48 = vpop.f32.mrb[10].mxu0  ;;  %v6400_v49 = vpop.f32.mrb[8].mxu1 }
 0x27a   : > { %v6332_v50 = vpop.f32.mrb[11].mxu0  ;;  %v6401_v7 = vpop.f32.mrb[9].mxu1 }
 0x27b   : > { %v8679_v54 = vadd.f32 %v6332_v50, %v6331_v48  ;;  %v8681_v55 = vadd.f32 %v6401_v7, %v6400_v49  ;;  %v6403_v56 = vpop.f32.mrb[10].mxu1 }
 0x27c   : > { %v6404_v57 = vpop.f32.mrb[11].mxu1 }
 0x27d   : > { %v8683_v5 = vadd.f32 %v6404_v57, %v6403_v56 }
 0x280   : > { %v6334_v59 = vpop.f32.mrb[12].mxu0 }
 0x281   : > { %v6335_v63 = vpop.f32.mrb[13].mxu0 }
 0x282   : > { %v8685_v40 = vadd.f32 %v6335_v63, %v6334_v59  ;;  %v6337_v30 = vpop.f32.mrb[14].mxu0 }
 0x283   : > { %v6338_v60 = vpop.f32.mrb[15].mxu0 }
 0x284   : > { %v8687_v9 = vadd.f32 %v6338_v60, %v6337_v30  ;;  %v6406_v61 = vpop.f32.mrb[12].mxu1 }
 0x285   : > { %v6407_v35 = vpop.f32.mrb[13].mxu1 }
 0x286   : > { %v8689_v62 = vadd.f32 %v6407_v35, %v6406_v61  ;;  %v6409_v53 = vpop.f32.mrb[14].mxu1 }
 0x287   : > { %v6410_v15 = vpop.f32.mrb[15].mxu1 }
 0x288   : > { %v8691_v26 = vadd.f32 %v6410_v15, %v6409_v53 }
 0x28c   : > { %v6340_v1 = vpop.f32.mrb[16].mxu0 }
 0x28d   : > { %v6341_v0 = vpop.f32.mrb[17].mxu0 }
 0x28e   : > { %v8693_v3 = vadd.f32 %v6341_v0, %v6340_v1  ;;  %v6343_v4 = vpop.f32.mrb[18].mxu0 }
 0x28f   : > { %v6344_v6 = vpop.f32.mrb[19].mxu0 }
 0x290   : > { %v8695_v8 = vadd.f32 %v6344_v6, %v6343_v4 }
 0x296   : > { %v6346_v51 = vpop.f32.mrb[20].mxu0 }
 0x297   : > { %v6347_v12 = vpop.f32.mrb[21].mxu0 }
 0x298   : > { %v8697_v11 = vadd.f32 %v6347_v12, %v6346_v51  ;;  %v6349_v13 = vpop.f32.mrb[22].mxu0 }
 0x299   : > { %v6350_v52 = vpop.f32.mrb[23].mxu0 }
 0x29a   : > { %v8699_v16 = vadd.f32 %v6350_v52, %v6349_v13 }
 0x29d   : > { %v6428_v10 = vpop.f32.mrb[16].mxu1 }
 0x29e   : > { %v6429_v29 = vpop.f32.mrb[17].mxu1 }
 0x29f   : > { %v6430_v23 = vadd.f32 %v6429_v29, %v6428_v10  ;;  %v6431_v14 = vpop.f32.mrb[18].mxu1 }
 0x2a0   : > { %v6432_v17 = vpop.f32.mrb[19].mxu1 }
 0x2a1   : > { %v6433_v20 = vadd.f32 %v6432_v17, %v6431_v14  ;;  %v8702_v22 = vadd.f32 %v6430_v23, %v8663_v18  ;;  %v6352_v27 = vpop.f32.mrb[24].mxu0 }
 0x2a2   : > { %v6353_v28 = vpop.f32.mrb[25].mxu0 }
 0x2a3   : > { %v8704_v25 = vadd.f32 %v6433_v20, %v6321_v38  ;;  %v8706_v32 = vadd.f32 %v6353_v28, %v6352_v27  ;;  %v6355_v33 = vpop.f32.mrb[26].mxu0 }
 0x2a4   : > { %v6356_v36 = vpop.f32.mrb[27].mxu0 }
 0x2a5   : > { %v8708_v37 = vadd.f32 %v6356_v36, %v6355_v33 }
 0x2a9   : > { %v6358_v2 = vpop.f32.mrb[28].mxu0 }
 0x2aa   : > { %v6434_v58 = vpop.f32.mrb[20].mxu1  ;;  %v6359_v41 = vpop.f32.mrb[29].mxu0 }
 0x2ab   : > { %v6435_v24 = vpop.f32.mrb[21].mxu1  ;;  %v8710_v44 = vadd.f32 %v6359_v41, %v6358_v2  ;;  %v6361_v18 = vpop.f32.mrb[30].mxu0 }
 0x2ac   : > { %v6436_v21 = vadd.f32 %v6435_v24, %v6434_v58  ;;  %v6437_v43 = vpop.f32.mrb[22].mxu1  ;;  %v6362_v38 = vpop.f32.mrb[31].mxu0 }
 0x2ad   : > { %v6438_v45 = vpop.f32.mrb[23].mxu1  ;;  %v8712_v49 = vadd.f32 %v6362_v38, %v6361_v18 }
 0x2ae   : > { %v6439_v48 = vadd.f32 %v6438_v45, %v6437_v43  ;;  %v8715_v50 = vadd.f32 %v6436_v21, %v8669_v19 }
 0x2b0   : > { %v8718_v7 = vadd.f32 %v6439_v48, %v8671_v39 }
 0x2b1   : > { %v6364_v57 = vpop.f32.mrb[32].mxu0 }
 0x2b2   : > { %v6440_v56 = vpop.f32.mrb[24].mxu1  ;;  %v6365_v63 = vpop.f32.mrb[33].mxu0 }
 0x2b3   : > { %v6441_v59 = vpop.f32.mrb[25].mxu1  ;;  %v8720_v61 = vadd.f32 %v6365_v63, %v6364_v57  ;;  %v6367_v35 = vpop.f32.mrb[34].mxu0 }
 0x2b4   : > { %v6442_v30 = vadd.f32 %v6441_v59, %v6440_v56  ;;  %v6443_v60 = vpop.f32.mrb[26].mxu1  ;;  %v6368_v15 = vpop.f32.mrb[35].mxu0 }
 0x2b5   : > { %v6444_v53 = vpop.f32.mrb[27].mxu1  ;;  %v8722_v0 = vadd.f32 %v6368_v15, %v6367_v35 }
 0x2b6   : > { %v6445_v1 = vadd.f32 %v6444_v53, %v6443_v60  ;;  %v8725_v19 = vadd.f32 %v6442_v30, %v8677_v46 }
 0x2b8   : > { %v8728_v39 = vadd.f32 %v6445_v1, %v8679_v54 }
 0x2b9   : > { %v6370_v6 = vpop.f32.mrb[36].mxu0 }
 0x2ba   : > { %v6446_v4 = vpop.f32.mrb[28].mxu1  ;;  %v6371_v12 = vpop.f32.mrb[37].mxu0 }
 0x2bb   : > { %v6447_v51 = vpop.f32.mrb[29].mxu1  ;;  %v8730_v29 = vadd.f32 %v6371_v12, %v6370_v6  ;;  %v6373_v52 = vpop.f32.mrb[38].mxu0 }
 0x2bc   : > { %v6448_v10 = vadd.f32 %v6447_v51, %v6446_v4  ;;  %v6449_v13 = vpop.f32.mrb[30].mxu1  ;;  %v6374_v14 = vpop.f32.mrb[39].mxu0 }
 0x2bd   : > { %v6450_v23 = vpop.f32.mrb[31].mxu1  ;;  %v8732_v20 = vadd.f32 %v6374_v14, %v6373_v52 }
 0x2be   : > { %v6451_v17 = vadd.f32 %v6450_v23, %v6449_v13  ;;  %v5067_v46 = vadd.f32 %v6448_v10, %v8685_v40 }
 0x2c0   : > { %v8736_v27 = vadd.f32 %v6451_v17, %v8687_v9 }
 0x2c1   : > { %v6376_v28 = vpop.f32.mrb[40].mxu0 }
 0x2c2   : > { %v6452_v54 = vpop.f32.mrb[32].mxu1  ;;  %v6377_v36 = vpop.f32.mrb[41].mxu0 }
 0x2c3   : > { %v6453_v33 = vpop.f32.mrb[33].mxu1  ;;  %v8738_v24 = vadd.f32 %v6377_v36, %v6376_v28  ;;  %v6379_v41 = vpop.f32.mrb[42].mxu0 }
 0x2c4   : > { %v6454_v58 = vadd.f32 %v6453_v33, %v6452_v54  ;;  %v6455_v2 = vpop.f32.mrb[34].mxu1  ;;  %v6380_v43 = vpop.f32.mrb[43].mxu0 }
 0x2c5   : > { %v6456_v21 = vpop.f32.mrb[35].mxu1  ;;  %v8740_v45 = vadd.f32 %v6380_v43, %v6379_v41 }
 0x2c6   : > { %v6457_v18 = vadd.f32 %v6456_v21, %v6455_v2  ;;  %v8743_v38 = vadd.f32 %v6454_v58, %v8693_v3 }
 0x2c8   : > { %v8746_v40 = vadd.f32 %v6457_v18, %v8695_v8 }
 0x2c9   : > { %v6382_v48 = vpop.f32.mrb[44].mxu0 }
 0x2ca   : > { %v6458_v9 = vpop.f32.mrb[36].mxu1  ;;  %v6383_v57 = vpop.f32.mrb[45].mxu0 }
 0x2cb   : > { %v6459_v56 = vpop.f32.mrb[37].mxu1  ;;  %v8748_v30 = vadd.f32 %v6383_v57, %v6382_v48  ;;  %v6385_v60 = vpop.f32.mrb[46].mxu0 }
 0x2cc   : > { %v6460_v59 = vadd.f32 %v6459_v56, %v6458_v9  ;;  %v6461_v63 = vpop.f32.mrb[38].mxu1  ;;  %v6386_v53 = vpop.f32.mrb[47].mxu0 }
 0x2cd   : > { %v6462_v35 = vpop.f32.mrb[39].mxu1  ;;  %v8750_v1 = vadd.f32 %v6386_v53, %v6385_v60 }
 0x2ce   : > { %v6463_v15 = vadd.f32 %v6462_v35, %v6461_v63  ;;  %v8753_v3 = vadd.f32 %v6460_v59, %v8697_v11 }
 0x2d0   : > { %v8756_v8 = vadd.f32 %v6463_v15, %v8699_v16 }
 0x2d1   : > { %v6554_v51 = vpop.f32.mrb[48].mxu0 }
 0x2d2   : > { %v6464_v4 = vpop.f32.mrb[40].mxu1  ;;  %v5212_v13 = vadd.f32 %v6554_v51, %v8715_v50  ;;  %v5203_v52 = vpop.f32.mrb[49].mxu0 }
 0x2d3   : > { %v6465_v6 = vpop.f32.mrb[41].mxu1  ;;  %v5204_v14 = vadd.f32 %v5203_v52, %v8702_v22  ;;  %v6555_v17 = vpop.f32.mrb[50].mxu0 }
 0x2d4   : > { %v6466_v12 = vadd.f32 %v6465_v6, %v6464_v4  ;;  %v6467_v10 = vpop.f32.mrb[42].mxu1  ;;  %5444 = vst [vmem:[%s7103_s23 + $0x10] sm:$0xff] %v5212_v13  ;;  %v5215_v16 = vadd.f32 %v6555_v17, %v8718_v7  ;;  %v5206_v54 = vpop.f32.mrb[51].mxu0  ;;  %v5373_v21 = vmul.f32 %v5212_v13, %v5212_v13 }
 0x2d5   : > { %v6468_v23 = vpop.f32.mrb[43].mxu1  ;;  %5442 = vst [vmem:[%s7103_s23] sm:$0xff] %v5204_v14  ;;  %v5207_v33 = vadd.f32 %v5206_v54, %v8704_v25  ;;  %v5371_v36 = vmul.f32 %v5204_v14, %v5204_v14 }
 0x2d6   : > { %v6469_v11 = vadd.f32 %v6468_v23, %v6467_v10  ;;  %v8763_v28 = vadd.f32 %v6466_v12, %v8706_v32  ;;  %5445 = vst [vmem:[%s7103_s23 + $0x18] sm:$0xff] %v5215_v16 }
 0x2d7   : > { %v5331_v58 = vadd.f32 %v5207_v33, %v5204_v14  ;;  %v5372_v2 = vmul.f32 %v5207_v33, %v5207_v33  ;;  %5443 = vst [vmem:[%s7103_s23 + $0x8] sm:$0xff] %v5207_v33 }
 0x2d8   : > { %v8769_v50 = vadd.f32 %v6469_v11, %v8708_v37  ;;  %v5374_v37 = vmul.f32 %v5215_v16, %v5215_v16 }
 0x2d9   : > { %v5332_v7 = vadd.f32 %v5331_v58, %v5212_v13  ;;  %v5403_v43 = vadd.f32 %v5372_v2, %v5371_v36  ;;  %v6558_v18 = vpop.f32.mrb[52].mxu0 }
 0x2da   : > { %v6470_v22 = vpop.f32.mrb[44].mxu1  ;;  %v5228_v48 = vadd.f32 %v6558_v18, %v5067_v46  ;;  %v5219_v25 = vpop.f32.mrb[53].mxu0 }
 0x2db   : > { %v6471_v41 = vpop.f32.mrb[45].mxu1  ;;  %v5404_v57 = vadd.f32 %v5403_v43, %v5373_v21  ;;  %v5220_v59 = vadd.f32 %v5219_v25, %v8725_v19  ;;  %v5333_v63 = vadd.f32 %v5332_v7, %v5215_v16  ;;  %v6559_v60 = vpop.f32.mrb[54].mxu0 }
 0x2dc   : > { %v6472_v32 = vadd.f32 %v6471_v41, %v6470_v22  ;;  %v6473_v9 = vpop.f32.mrb[46].mxu1  ;;  %5448 = vst [vmem:[%s7103_s23 + $0x30] sm:$0xff] %v5228_v48  ;;  %v5231_v53 = vadd.f32 %v6559_v60, %v8736_v27  ;;  %v5222_v15 = vpop.f32.mrb[55].mxu0  ;;  %v5377_v27 = vmul.f32 %v5228_v48, %v5228_v48 }
 0x2dd   : > { %v6474_v56 = vpop.f32.mrb[47].mxu1  ;;  %v5334_v6 = vadd.f32 %v5333_v63, %v5220_v59  ;;  %v5375_v46 = vmul.f32 %v5220_v59, %v5220_v59  ;;  %v5405_v51 = vadd.f32 %v5404_v57, %v5374_v37  ;;  %5446 = vst [vmem:[%s7103_s23 + $0x20] sm:$0xff] %v5220_v59  ;;  %v5223_v12 = vadd.f32 %v5222_v15, %v8728_v39 }
 0x2de   : > { %v6475_v35 = vadd.f32 %v6474_v56, %v6473_v9  ;;  %v5099_v4 = vadd.f32 %v6472_v32, %v8710_v44  ;;  %5449 = vst [vmem:[%s7103_s23 + $0x38] sm:$0xff] %v5231_v53 }
 0x2df   : > { %v5406_v19 = vadd.f32 %v5405_v51, %v5375_v46  ;;  %v5335_v13 = vadd.f32 %v5334_v6, %v5223_v12  ;;  %v5376_v52 = vmul.f32 %v5223_v12, %v5223_v12  ;;  %5447 = vst [vmem:[%s7103_s23 + $0x28] sm:$0xff] %v5223_v12 }
 0x2e0   : > { %v5102_v10 = vadd.f32 %v6475_v35, %v8712_v49  ;;  %v5378_v49 = vmul.f32 %v5231_v53, %v5231_v53 }
 0x2e1   : > { %v5336_v17 = vadd.f32 %v5335_v13, %v5228_v48  ;;  %v5407_v11 = vadd.f32 %v5406_v19, %v5376_v52  ;;  %v6562_v44 = vpop.f32.mrb[56].mxu0 }
 0x2e2   : > { %v6476_v23 = vpop.f32.mrb[48].mxu1  ;;  %v5244_v33 = vadd.f32 %v6562_v44, %v8753_v3  ;;  %v5235_v39 = vpop.f32.mrb[57].mxu0 }
 0x2e3   : > { %v6477_v14 = vpop.f32.mrb[49].mxu1  ;;  %v5408_v58 = vadd.f32 %v5407_v11, %v5377_v27  ;;  %v5236_v2 = vadd.f32 %v5235_v39, %v8743_v38  ;;  %v5337_v22 = vadd.f32 %v5336_v17, %v5231_v53  ;;  %v6563_v41 = vpop.f32.mrb[58].mxu0 }
 0x2e4   : > { %v6478_v16 = vadd.f32 %v6477_v14, %v6476_v23  ;;  %v6479_v54 = vpop.f32.mrb[50].mxu1  ;;  %5452 = vst [vmem:[%s7103_s23 + $0x50] sm:$0xff] %v5244_v33  ;;  %v5247_v7 = vadd.f32 %v6563_v41, %v8756_v8  ;;  %v5238_v43 = vpop.f32.mrb[59].mxu0  ;;  %v5381_v8 = vmul.f32 %v5244_v33, %v5244_v33 }
 0x2e5   : > { %v6480_v36 = vpop.f32.mrb[51].mxu1  ;;  %v5338_v32 = vadd.f32 %v5337_v22, %v5236_v2  ;;  %v5379_v3 = vmul.f32 %v5236_v2, %v5236_v2  ;;  %v5409_v9 = vadd.f32 %v5408_v58, %v5378_v49  ;;  %5450 = vst [vmem:[%s7103_s23 + $0x40] sm:$0xff] %v5236_v2  ;;  %v5239_v48 = vadd.f32 %v5238_v43, %v8746_v40 }
 0x2e6   : > { %v6481_v21 = vadd.f32 %v6480_v36, %v6479_v54  ;;  %v5107_v18 = vadd.f32 %v6478_v16, %v8720_v61  ;;  %5453 = vst [vmem:[%s7103_s23 + $0x58] sm:$0xff] %v5247_v7  ;;  %v5382_v46 = vmul.f32 %v5247_v7, %v5247_v7 }
 0x2e7   : > { %v5410_v38 = vadd.f32 %v5409_v9, %v5379_v3  ;;  %v5339_v56 = vadd.f32 %v5338_v32, %v5239_v48  ;;  %v5380_v37 = vmul.f32 %v5239_v48, %v5239_v48  ;;  %5451 = vst [vmem:[%s7103_s23 + $0x48] sm:$0xff] %v5239_v48 }
 0x2e8   : > { %v5110_v25 = vadd.f32 %v6481_v21, %v8722_v0 }
 0x2e9   : > { %v5340_v63 = vadd.f32 %v5339_v56, %v5244_v33  ;;  %v5411_v60 = vadd.f32 %v5410_v38, %v5380_v37  ;;  %v6566_v61 = vpop.f32.mrb[60].mxu0 }
 0x2ea   : > { %v6482_v57 = vpop.f32.mrb[52].mxu1  ;;  %v5260_v15 = vadd.f32 %v6566_v61, %v5099_v4  ;;  %v5251_v6 = vpop.f32.mrb[61].mxu0 }
 0x2eb   : > { %v6483_v59 = vpop.f32.mrb[53].mxu1  ;;  %v5412_v0 = vadd.f32 %v5411_v60, %v5381_v8  ;;  %v5252_v51 = vadd.f32 %v5251_v6, %v8763_v28  ;;  %v5341_v12 = vadd.f32 %v5340_v63, %v5247_v7  ;;  %v6567_v19 = vpop.f32.mrb[62].mxu0 }
 0x2ec   : > { %v6484_v35 = vadd.f32 %v6483_v59, %v6482_v57  ;;  %v6485_v53 = vpop.f32.mrb[54].mxu1  ;;  %5456 = vst [vmem:[%s7103_s23 + $0x70] sm:$0xff] %v5260_v15  ;;  %v5263_v52 = vadd.f32 %v6567_v19, %v5102_v10  ;;  %v5254_v23 = vpop.f32.mrb[63].mxu0  ;;  %v5385_v36 = vmul.f32 %v5260_v15, %v5260_v15 }
 0x2ed   : > { %v6486_v40 = vpop.f32.mrb[55].mxu1  ;;  %v5342_v27 = vadd.f32 %v5341_v12, %v5252_v51  ;;  %v5383_v17 = vmul.f32 %v5252_v51, %v5252_v51  ;;  %v5413_v4 = vadd.f32 %v5412_v0, %v5382_v46  ;;  %5454 = vst [vmem:[%s7103_s23 + $0x60] sm:$0xff] %v5252_v51  ;;  %v5255_v11 = vadd.f32 %v5254_v23, %v8769_v50 }
 0x2ee   : > { %v6487_v13 = vadd.f32 %v6486_v40, %v6485_v53  ;;  %v5115_v14 = vadd.f32 %v6484_v35, %v8730_v29  ;;  %5457 = vst [vmem:[%s7103_s23 + $0x78] sm:$0xff] %v5263_v52  ;;  %v5386_v41 = vmul.f32 %v5263_v52, %v5263_v52 }
 0x2ef   : > { %v5414_v16 = vadd.f32 %v5413_v4, %v5383_v17  ;;  %v5343_v28 = vadd.f32 %v5342_v27, %v5255_v11  ;;  %v5384_v54 = vmul.f32 %v5255_v11, %v5255_v11  ;;  %5455 = vst [vmem:[%s7103_s23 + $0x68] sm:$0xff] %v5255_v11 }
 0x2f0   : > { %v5118_v44 = vadd.f32 %v6487_v13, %v8732_v20 }
 0x2f1   : > { %v5344_v10 = vadd.f32 %v5343_v28, %v5260_v15  ;;  %v5415_v49 = vadd.f32 %v5414_v16, %v5384_v54 }
 0x2f2   : > { %v6488_v33 = vpop.f32.mrb[56].mxu1  ;;  %v6570_v2 = vpop.f32.mrb[64].mxu0 }
 0x2f3   : > { %v6489_v39 = vpop.f32.mrb[57].mxu1  ;;  %v5416_v50 = vadd.f32 %v5415_v49, %v5385_v36  ;;  %v5276_v21 = vadd.f32 %v6570_v2, %v5115_v14  ;;  %v5267_v20 = vpop.f32.mrb[65].mxu0  ;;  %v5345_v7 = vadd.f32 %v5344_v10, %v5263_v52 }
 0x2f4   : > { %v6490_v29 = vadd.f32 %v6489_v39, %v6488_v33  ;;  %v6491_v58 = vpop.f32.mrb[58].mxu1  ;;  %v5268_v32 = vadd.f32 %v5267_v20, %v5107_v18  ;;  %v6571_v3 = vpop.f32.mrb[66].mxu0 }
 0x2f5   : > { %v6492_v22 = vpop.f32.mrb[59].mxu1  ;;  %5460 = vst [vmem:[%s7103_s23 + $0x90] sm:$0xff] %v5276_v21  ;;  %v5417_v48 = vadd.f32 %v5416_v50, %v5386_v41  ;;  %v5279_v38 = vadd.f32 %v6571_v3, %v5118_v44  ;;  %v5270_v56 = vpop.f32.mrb[67].mxu0 }
 0x2f6   : > { %v6493_v43 = vadd.f32 %v6492_v22, %v6491_v58  ;;  %v5123_v9 = vadd.f32 %v6490_v29, %v8738_v24  ;;  %v5346_v37 = vadd.f32 %v5345_v7, %v5268_v32  ;;  %v5387_v57 = vmul.f32 %v5268_v32, %v5268_v32  ;;  %5458 = vst [vmem:[%s7103_s23 + $0x80] sm:$0xff] %v5268_v32 }
 0x2f7   : > { %v5271_v59 = vadd.f32 %v5270_v56, %v5110_v25  ;;  %5461 = vst [vmem:[%s7103_s23 + $0x98] sm:$0xff] %v5279_v38  ;;  %v5389_v24 = vmul.f32 %v5276_v21, %v5276_v21  ;;  %v5390_v51 = vmul.f32 %v5279_v38, %v5279_v38 }
 0x2f8   : > { %v5126_v8 = vadd.f32 %v6493_v43, %v8740_v45  ;;  %v5418_v60 = vadd.f32 %v5417_v48, %v5387_v57 }
 0x2f9   : > { %v5347_v61 = vadd.f32 %v5346_v37, %v5271_v59  ;;  %v5388_v35 = vmul.f32 %v5271_v59, %v5271_v59  ;;  %5459 = vst [vmem:[%s7103_s23 + $0x88] sm:$0xff] %v5271_v59 }
 0x2fa   : > { %v6494_v63 = vpop.f32.mrb[60].mxu1  ;;  %v6574_v46 = vpop.f32.mrb[68].mxu0 }
 0x2fb   : > { %v6495_v18 = vpop.f32.mrb[61].mxu1  ;;  %v5348_v6 = vadd.f32 %v5347_v61, %v5276_v21  ;;  %v5419_v40 = vadd.f32 %v5418_v60, %v5388_v35  ;;  %v5283_v12 = vpop.f32.mrb[69].mxu0 }
 0x2fc   : > { %v6496_v53 = vadd.f32 %v6495_v18, %v6494_v63  ;;  %v6497_v15 = vpop.f32.mrb[62].mxu1  ;;  %v5284_v13 = vadd.f32 %v5283_v12, %v5123_v9  ;;  %v6575_v52 = vpop.f32.mrb[70].mxu0 }
 0x2fd   : > { %v6498_v0 = vpop.f32.mrb[63].mxu1  ;;  %v5420_v45 = vadd.f32 %v5419_v40, %v5389_v24  ;;  %v5349_v23 = vadd.f32 %v5348_v6, %v5279_v38  ;;  %v5286_v14 = vpop.f32.mrb[71].mxu0 }
 0x2fe   : > { %v6499_v25 = vadd.f32 %v6498_v0, %v6497_v15  ;;  %v5131_v19 = vadd.f32 %v6496_v53, %v8748_v30  ;;  %v5391_v17 = vmul.f32 %v5284_v13, %v5284_v13  ;;  %5462 = vst [vmem:[%s7103_s23 + $0xa0] sm:$0xff] %v5284_v13  ;;  %v5287_v16 = vadd.f32 %v5286_v14, %v5126_v8 }
 0x2ff   : > { %v5421_v4 = vadd.f32 %v5420_v45, %v5390_v51  ;;  %v5350_v44 = vadd.f32 %v5349_v23, %v5284_v13 }
 0x300   : > { %v5292_v27 = vadd.f32 %v6574_v46, %v5131_v19  ;;  %v5134_v11 = vadd.f32 %v6499_v25, %v8750_v1  ;;  %v5392_v36 = vmul.f32 %v5287_v16, %v5287_v16  ;;  %5463 = vst [vmem:[%s7103_s23 + $0xa8] sm:$0xff] %v5287_v16 }
 0x301   : > { %v5422_v54 = vadd.f32 %v5421_v4, %v5391_v17  ;;  %v5351_v30 = vadd.f32 %v5350_v44, %v5287_v16 }
 0x302   : > { %v6500_v28 = vpop.f32.mrb[64].mxu1  ;;  %5464 = vst [vmem:[%s7103_s23 + $0xb0] sm:$0xff] %v5292_v27  ;;  %v5295_v33 = vadd.f32 %v6575_v52, %v5134_v11  ;;  %v6578_v29 = vpop.f32.mrb[72].mxu0  ;;  %v5393_v2 = vmul.f32 %v5292_v27, %v5292_v27 }
 0x303   : > { %v6501_v39 = vpop.f32.mrb[65].mxu1  ;;  %v5352_v22 = vadd.f32 %v5351_v30, %v5292_v27  ;;  %v5423_v41 = vadd.f32 %v5422_v54, %v5392_v36  ;;  %v5299_v1 = vpop.f32.mrb[73].mxu0 }
 0x304   : > { %v6502_v10 = vadd.f32 %v6501_v39, %v6500_v28  ;;  %v6503_v49 = vpop.f32.mrb[66].mxu1  ;;  %5465 = vst [vmem:[%s7103_s23 + $0xb8] sm:$0xff] %v5295_v33  ;;  %v6579_v20 = vpop.f32.mrb[74].mxu0  ;;  %v5394_v7 = vmul.f32 %v5295_v33, %v5295_v33 }
 0x305   : > { %v6504_v58 = vpop.f32.mrb[67].mxu1  ;;  %v5424_v43 = vadd.f32 %v5423_v41, %v5393_v2  ;;  %v5353_v32 = vadd.f32 %v5352_v22, %v5295_v33  ;;  %v5302_v3 = vpop.f32.mrb[75].mxu0 }
 0x306   : > { %v6505_v50 = vadd.f32 %v6504_v58, %v6503_v49  ;;  %v5139_v21 = vadd.f32 %v6502_v10, %v8665_v31 }
 0x307   : > { %v5425_v38 = vadd.f32 %v5424_v43, %v5394_v7 }
 0x308   : > { %v5300_v9 = vadd.f32 %v5299_v1, %v5139_v21  ;;  %v5142_v48 = vadd.f32 %v6505_v50, %v8667_v34 }
 0x30a   : > { %v6506_v56 = vpop.f32.mrb[68].mxu1  ;;  %v5354_v37 = vadd.f32 %v5353_v32, %v5300_v9  ;;  %v5395_v57 = vmul.f32 %v5300_v9, %v5300_v9  ;;  %5466 = vst [vmem:[%s7103_s23 + $0xc0] sm:$0xff] %v5300_v9  ;;  %v5303_v59 = vadd.f32 %v5302_v3, %v5142_v48  ;;  %v6582_v18 = vpop.f32.mrb[76].mxu0 }
 0x30b   : > { %v6507_v8 = vpop.f32.mrb[69].mxu1  ;;  %v5315_v15 = vpop.f32.mrb[77].mxu0 }
 0x30c   : > { %v6508_v63 = vadd.f32 %v6507_v8, %v6506_v56  ;;  %v6509_v60 = vpop.f32.mrb[70].mxu1  ;;  %v5426_v31 = vadd.f32 %v5425_v38, %v5395_v57  ;;  %v5355_v61 = vadd.f32 %v5354_v37, %v5303_v59  ;;  %v5396_v35 = vmul.f32 %v5303_v59, %v5303_v59  ;;  %5467 = vst [vmem:[%s7103_s23 + $0xc8] sm:$0xff] %v5303_v59  ;;  %v6583_v40 = vpop.f32.mrb[78].mxu0 }
 0x30d   : > { %v6510_v53 = vpop.f32.mrb[71].mxu1  ;;  %v5318_v46 = vpop.f32.mrb[79].mxu0 }
 0x30e   : > { %v6511_v24 = vadd.f32 %v6510_v53, %v6509_v60  ;;  %v5147_v34 = vadd.f32 %v6508_v63, %v8673_v42  ;;  %v5427_v6 = vadd.f32 %v5426_v31, %v5396_v35  ;;  %v5370_v31 = vld [vmem:[#allocation12] sm:$0x1] }
 0x310   : > { %v5308_v0 = vadd.f32 %v6578_v29, %v5147_v34  ;;  %v5150_v51 = vadd.f32 %v6511_v24, %v8675_v47 }
 0x312   : > { %v5397_v12 = vmul.f32 %v5308_v0, %v5308_v0  ;;  %5468 = vst [vmem:[%s7103_s23 + $0xd0] sm:$0xff] %v5308_v0  ;;  %v5311_v25 = vadd.f32 %v6579_v20, %v5150_v51  ;;  %v5356_v45 = vadd.f32 %v5355_v61, %v5308_v0  ;;  %v6512_v19 = vpop.f32.mrb[72].mxu1 }
 0x313   : > { %v6513_v13 = vpop.f32.mrb[73].mxu1 }
 0x314   : > { %v5398_v52 = vmul.f32 %v5311_v25, %v5311_v25  ;;  %5469 = vst [vmem:[%s7103_s23 + $0xd8] sm:$0xff] %v5311_v25  ;;  %v5428_v23 = vadd.f32 %v5427_v6, %v5397_v12  ;;  %v6514_v14 = vadd.f32 %v6513_v13, %v6512_v19  ;;  %v6515_v27 = vpop.f32.mrb[74].mxu1  ;;  %v5357_v17 = vadd.f32 %v5356_v45, %v5311_v25 }
 0x315   : > { %v6516_v42 = vpop.f32.mrb[75].mxu1 }
 0x316   : > { %v6517_v4 = vadd.f32 %v6516_v42, %v6515_v27  ;;  %v5155_v11 = vadd.f32 %v6514_v14, %v8681_v55  ;;  %v5429_v44 = vadd.f32 %v5428_v23, %v5398_v52 }
 0x318   : > { %v5316_v47 = vadd.f32 %v5315_v15, %v5155_v11  ;;  %v5158_v16 = vadd.f32 %v6517_v4, %v8683_v5 }
 0x31a   : > { %v5358_v28 = vadd.f32 %v5357_v17, %v5316_v47  ;;  %v5399_v54 = vmul.f32 %v5316_v47, %v5316_v47  ;;  %5470 = vst [vmem:[%s7103_s23 + $0xe0] sm:$0xff] %v5316_v47  ;;  %v5319_v33 = vadd.f32 %v5318_v46, %v5158_v16  ;;  %v6518_v39 = vpop.f32.mrb[76].mxu1 }
 0x31b   : > { %v6519_v30 = vpop.f32.mrb[77].mxu1 }
 0x31c   : > { %v5430_v36 = vadd.f32 %v5429_v44, %v5399_v54  ;;  %v5359_v10 = vadd.f32 %v5358_v28, %v5319_v33  ;;  %v5400_v49 = vmul.f32 %v5319_v33, %v5319_v33  ;;  %5471 = vst [vmem:[%s7103_s23 + $0xe8] sm:$0xff] %v5319_v33  ;;  %v6520_v29 = vadd.f32 %v6519_v30, %v6518_v39  ;;  %v6521_v58 = vpop.f32.mrb[78].mxu1 }
 0x31d   : > { %v6522_v2 = vpop.f32.mrb[79].mxu1 }
 0x31e   : > { %v5431_v55 = vadd.f32 %v5430_v36, %v5400_v49  ;;  %v5163_v22 = vadd.f32 %v6520_v29, %v8689_v62  ;;  %v6523_v41 = vadd.f32 %v6522_v2, %v6521_v58 }
 0x320   : > { %v5324_v5 = vadd.f32 %v6582_v18, %v5163_v22  ;;  %v5166_v1 = vadd.f32 %v6523_v41, %v8691_v26  ;;  %v5330_v26 = vld [vmem:[#allocation10] sm:$0x1] }
 0x322   : > { %v5360_v50 = vadd.f32 %v5359_v10, %v5324_v5  ;;  %v5401_v21 = vmul.f32 %v5324_v5, %v5324_v5  ;;  %5472 = vst [vmem:[%s7103_s23 + $0xf0] sm:$0xff] %v5324_v5  ;;  %v5327_v20 = vadd.f32 %v6583_v40, %v5166_v1 }
 0x324   : > { %v5432_v7 = vadd.f32 %v5431_v55, %v5401_v21  ;;  %v5361_v43 = vadd.f32 %v5360_v50, %v5327_v20  ;;  %v5402_v32 = vmul.f32 %v5327_v20, %v5327_v20  ;;  %5473 = vst [vmem:[%s7103_s23 + $0xf8] sm:$0xff] %v5327_v20 }
 0x326   : > { %v5362_v3 = vrot.slane %v5361_v43, 4  ;;  %v5433_v9 = vadd.f32 %v5432_v7, %v5402_v32 }
 0x328   : > { %v5363_v48 = vadd.f32 %v5362_v3, %v5361_v43  ;;  %v5434_v38 = vrot.slane %v5433_v9, 4 }
 0x32a   : > { %v5364_v56 = vrot.slane %v5363_v48, 2  ;;  %v5435_v37 = vadd.f32 %v5434_v38, %v5433_v9 }
 0x32c   : > { %v5365_v62 = vadd.f32 %v5364_v56, %v5363_v48  ;;  %v5436_v57 = vrot.slane %v5435_v37, 2 }
 0x32e   : > { %v5366_v59 = vrot.slane %v5365_v62, 1  ;;  %v5437_v8 = vadd.f32 %v5436_v57, %v5435_v37 }
 0x330   : > { %v5367_v63 = vadd.f32 %v5366_v59, %v5365_v62  ;;  %v5438_v60 = vrot.slane %v5437_v8, 1 }
 0x332   : > { %v5368_v61 = vadd.f32 %v5367_v63, %v5330_v26  ;;  %v5439_v35 = vadd.f32 %v5438_v60, %v5437_v8 }
 0x334   : > { %5369 = vst [vmem:[#allocation10] sm:$0x1] %v5368_v61  ;;  %v5440_v18 = vadd.f32 %v5439_v35, %v5370_v31 }
 0x336   : > { %5441 = vst [vmem:[#allocation12] sm:$0x1] %v5440_v18 }
 0x337   : > { %s6299_s8 = sshll.u32 %s6998_s19, 11  ;;  %s5505_s9 = sshll.u32 %s7103_s23, 4  ;;  %s5506_s9 = int_to_ptr.vmem [resolvable:$true] %s5505_s9 }
 0x338   : > { %s5488_s12 = scalar_lea.hbm %s8907_s2, %s6299_s8  ;;  %s6943_s29 = smov 2048  }
 0x339   : > { %p8934_p10 = scmp.ne.s32.totalorder %s8914_s25, 0  ;;  %s6944_s13 = smov 4096  }
 0x33a   : > { %s6945_s14 = smov 16   ;;  %s6946_s20 = smov 128  }
 0x33b   : > { %6608 = sst [smem:[#allocation14]] (%p8934_p10), %s6943_s29  ;;  %s6947_s22 = smov 8  }
 0x33c   : > { %6609 = sst [smem:[#allocation14 + $0x1]] (%p8934_p10), %s6944_s13  ;;  %s6948_s30 = smov [#allocation13]  }
 0x33d   : > { %6610 = sst [smem:[#allocation14 + $0x2]] (%p8934_p10), %s6945_s14  ;;  %s6949_s6 = smov 0  }
 0x33e   : > { %6611 = sst [smem:[#allocation14 + $0x3]] (%p8934_p10), %s6946_s20  ;;  %s6950_s23 = smov [#allocation10]  }
 0x33f   : > { %6612 = sst [smem:[#allocation14 + $0x4]] (%p8934_p10), %s6946_s20  ;;  %s5532_s27 = sshll.u32 %s6950_s23, 4  ;;  %s5533_s27 = int_to_ptr.vmem [resolvable:$true] %s5532_s27 }
 0x340   : > { %6613 = sst [smem:[#allocation14 + $0x5]] (%p8934_p10), %s6947_s22  ;;  %s6951_s28 = smov [#allocation12]  }
 0x341   : > { %6614 = dma.general (%p8934_p10), %s5506_s9, 4096, %s5488_s12, %s5475_s7, %s6948_s30, [#allocation14], %s6949_s6, 0  }
 0x342   : > { %s5543_s5 = sshll.u32 %s6951_s28, 4  ;;  %s6834_s8 = scalar_lea.vmem %s5533_s27, 16  ;;  %s5544_s5 = int_to_ptr.vmem [resolvable:$true] %s5543_s5 }
 0x343   : > { %p6835_p11 = scmp.ne.s32.totalorder %s5533_s27, %s6834_s8  ;;  %p8935_p0 = scmp.eq.s32.totalorder %s6998_s19, 1 }
 0x344   : > { %s6840_s10 = scalar_lea.vmem %s5533_s27, 32  ;;  %p6841_p7 = scmp.lt.s32.totalorder %s5533_s27, %s5533_s27 }
 0x345   : > { %p6836_p3 = pnand %p6835_p11, %p8935_p0  ;;  %p6842_p8 = scmp.lt.s32.totalorder %s6840_s10, %s6834_s8 }
 0x347   : > { %p6837_p4 = pneg %p6836_p3  ;;  %p6843_p12 = por %p6842_p8, %p6841_p7 }
 0x349   : > { %p6844_p2 = pnand %p6843_p12, %p6837_p4 }
 0x34b   : > { %6847 = shalt.err (!%p6844_p2)
}
 0x34c   : > { %s6848_s7 = scalar_lea.hbm %s8908_s3, 16  ;;  %p8936_p5 = pmov %p8935_p0 }
 0x34d   : > { %p6849_p1 = scmp.ne.s32.totalorder %s8908_s3, %s6848_s7  ;;  %p6854_p13 = scmp.lt.u32.totalorder %s6848_s7, %s8908_s3 }
 0x34f   : > { %p6850_p6 = pnand %p6849_p1, %p8936_p5 }
 0x351   : > { %p6851_p9 = pneg %p6850_p6 }
 0x353   : > { %p6856_p10 = pnand %p6854_p13, %p6851_p9 }
 0x355   : > { %6859 = shalt.err (!%p6856_p10)
}
 0x356   : > { %p8937_p11 = pmov %p8935_p0  ;;  %s6860_s22 = scalar_lea.vmem %s5544_s5, 16 }
 0x357   : > { %p6861_p0 = scmp.ne.s32.totalorder %s5544_s5, %s6860_s22  ;;  %p8938_p3 = pmov %p8936_p5 }
 0x358   : > { %6616 = dma.vmem_to_hbm [thread:$0]  (%p8937_p11), %s5533_s27, 16, %s8908_s3, [#allocation11]  }
 0x359   : > { %p6862_p4 = pnand %p6861_p0, %p8938_p3  ;;  %s6866_s30 = scalar_lea.vmem %s5544_s5, 32 }
 0x35a   : > { %p6867_p8 = scmp.lt.s32.totalorder %s5544_s5, %s5544_s5  ;;  %p6868_p12 = scmp.lt.s32.totalorder %s6866_s30, %s6860_s22 }
 0x35b   : > { %p6863_p7 = pneg %p6862_p4 }
 0x35c   : > { %p6869_p2 = por %p6868_p12, %p6867_p8 }
 0x35e   : > { %p6870_p1 = pnand %p6869_p2, %p6863_p7 }
 0x360   : > { %6873 = shalt.err (!%p6870_p1)
}
 0x361   : > { %s6874_s28 = scalar_lea.hbm %s8909_s4, 16  ;;  %p8939_p6 = pmov %p8938_p3 }
 0x362   : > { %p6875_p5 = scmp.ne.s32.totalorder %s8909_s4, %s6874_s28  ;;  %p6880_p10 = scmp.lt.u32.totalorder %s6874_s28, %s8909_s4 }
 0x364   : > { %p6876_p9 = pnand %p6875_p5, %p8939_p6 }
 0x366   : > { %p6877_p13 = pneg %p6876_p9 }
 0x368   : > { %p6882_p11 = pnand %p6880_p10, %p6877_p13 }
 0x36a   : > { %6885 = shalt.err (!%p6882_p11)
}
 0x36b   : > { %p8940_p0 = pmov %p8938_p3 }
 0x36d   : > { %6618 = dma.vmem_to_hbm [thread:$0]  (%p8940_p0), %s5544_s5, 16, %s8909_s4, [#allocation11]  }
 0x36e   : > { %p8941_p3 = pmov %p8940_p0 }
 0x36f   : > { %p8942_p4 = pmov %p8940_p0 }
 0x370   : > { %6911 = dma.done.wait (%p8941_p3), [#allocation11], 32  }
 0x371   : > { %6913 = vsyncadd (%p8942_p4), [#allocation11], 4294967264 }
 0x372 PF: > { %p6643_p7 = scmp.ge.s32.totalorder %s6932_s18, 2  ;;  %s5563_s9 = sand.u32 1, %s6920_s15  }
 0x373   : > { %p8943_p8 = scmp.ne.s32.totalorder %s8915_s26, 0  ;;  %s5564_s12 = scalar_lea.sflag [#allocation6], %s5563_s9 }
 0x375   : > { %p6632_p12 = pnand %p6643_p7, %p8943_p8 }
 0x377   : > { %6915 = dma.done.wait (!%p6632_p12), %s5564_s12, 4096  }
 0x378   : > { %6917 = vsyncadd (!%p6632_p12), %s5564_s12, 4294963200  ;;  %p18_p2 = scmp.ge.s32.totalorder %s7002_s21, 4   ;;  %s8944_s15 = smov %s6924_s16 }
 0x379   : > { %s8945_s16 = smov %s6928_s17  ;;  %s8946_s17 = smov %s7013_s24 }
 0x37a   : > { %s8947_s18 = smov %s7002_s21  ;;  %20 = sbr.rel (!%p18_p2) target bundleno = 6 (0x6), region = 100 }
 0x381   :  { %5569 = vsyncpa [#allocation5], 1 }
 0x382   :  { %5571 = vsyncpa [#allocation5 + $0x1], 1 }
 0x383   :  { %5572 = vsyncpa [#allocation8], 1 }
 0x384   :  { %5573 = vsyncpa [#allocation6], 1 }
 0x385   :  { %5575 = vsyncpa [#allocation6 + $0x1], 1 }
 0x386   :  { %5576 = vsyncpa [#allocation11], 1 }

</bundles_post_ra>
